<compile_context>
chip_gen: v6e
topology: v6e:2x2x1
jax: 0.10.0
libtpu: 0.0.40
codegen_flags: <defaults>
</compile_context>

<pallas_src>
import functools

import jax
import jax.numpy as jnp
import numpy as np
from jax import lax
from jax.experimental import pallas as pl
from jax.experimental.pallas import tpu as pltpu


# ----------------------------- Pallas kernel --------------------------------
def _double_conv_kernel(xcol_ref, w1_ref, b1_ref, w2_ref, b2_ref, o_ref,
                        mid3_ref, *, blk_rows):
    """Fused (Conv3x3 + folded BN) x 2 for one batch element.

    xcol_ref: (1, H, W, 9*Cin)   bf16 im2col slab of the input
    w1_ref:   (9*Cin, Cp)        bf16 conv1 weights, BN1 scale folded, Cout padded
    b1_ref:   (1, Cp)            f32  folded BN1 bias (zero in padded channels)
    w2_ref:   (9*Cp, Cp)         bf16 conv2 weights, BN2 scale folded, both C padded
    b2_ref:   (1, Cp)            f32  folded BN2 bias
    o_ref:    (1, H, W, Cp)      bf16 output tile (lane-dense, padded channels = 0)
    mid3_ref: (H+2, W, 3*Cp)     bf16 scratch: conv1 output, lane blocks = [y1[w-1], y1[w], y1[w+1]]
    """
    H = o_ref.shape[1]
    W = o_ref.shape[2]
    Cp = o_ref.shape[3]
    K1 = w1_ref.shape[0]               # 9 * Cin
    R = blk_rows                       # image rows per M-tile
    n_blk = H // R
    mdt = mid3_ref.dtype

    # ---- zero only the mid3 halo (O(perimeter), not O(area)); every grid step
    #      for megacore safety.  Interior stores below never touch these cells. ----
    mid3_ref[0:1, :, :] = jnp.zeros((1, W, 3 * Cp), mdt)                     # row above image
    mid3_ref[H + 1:H + 2, :, :] = jnp.zeros((1, W, 3 * Cp), mdt)             # row below image
    mid3_ref[:, 0:1, 0:Cp] = jnp.zeros((H + 2, 1, Cp), mdt)                  # left-shift border col
    mid3_ref[:, W - 1:W, 2 * Cp:3 * Cp] = jnp.zeros((H + 2, 1, Cp), mdt)     # right-shift border col

    xcol = xcol_ref.at[0]              # (H, W, 9*Cin) ref view
    o_view = o_ref.at[0]               # (H, W, Cp)    ref view
    w1 = w1_ref[...]                   # (9*Cin, Cp) bf16, hoisted out of the loops
    b1 = b1_ref[...]                   # (1, Cp) f32
    b2 = b2_ref[...]

    # ---------------- stage 1: Conv(Cin->Cp) + BN1 bias, per M-tile ----------------
    def stage1_body(i, carry):
        r0 = i * R
        patch = xcol[pl.ds(r0, R), :, :].reshape(R * W, K1)           # aligned view (W % 8 == 0)
        acc = jnp.dot(patch, w1, preferred_element_type=jnp.float32)  # single K=9*Cin matmul
        y1 = (acc + b1).astype(mdt).reshape(R, W, Cp)
        row = pl.ds(r0 + 1, R)
        # center block: aligned full-width store
        mid3_ref[row, :, Cp:2 * Cp] = y1
        # left block holds y1[w-1]  (column 0 stays zero from the halo init)
        mid3_ref[row, 1:W, 0:Cp] = y1[:, 0:W - 1, :]
        # right block holds y1[w+1] (column W-1 stays zero from the halo init)
        mid3_ref[row, 0:W - 1, 2 * Cp:3 * Cp] = y1[:, 1:W, :]
        return carry

    lax.fori_loop(0, n_blk, stage1_body, None, unroll=True)

    # ---------------- stage 2: Conv(Cp->Cp) + BN2 bias, per M-tile ----------------
    def stage2_body(i, carry):
        r0 = i * R
        # dy = 0 initializes the accumulator; dy = 1, 2 accumulate into the same value
        # (lets Mosaic keep the accumulation in the MXU result buffer on v7x).
        patch0 = mid3_ref[pl.ds(r0, R), :, :].reshape(R * W, 3 * Cp)  # aligned view
        acc = jnp.dot(patch0, w2_ref[0:3 * Cp, :],
                      preferred_element_type=jnp.float32)
        for dy in (1, 2):
            patch = mid3_ref[pl.ds(r0 + dy, R), :, :].reshape(R * W, 3 * Cp)
            w_dy = w2_ref[dy * 3 * Cp:(dy + 1) * 3 * Cp, :]
            acc = acc + jnp.dot(patch, w_dy, preferred_element_type=jnp.float32)
        o_view[pl.ds(r0, R), :, :] = (acc + b2).astype(o_ref.dtype).reshape(R, W, Cp)
        return carry

    lax.fori_loop(0, n_blk, stage2_body, None, unroll=True)


# ------------------------------ wrappers --------------------------------------
def _fold_bn_conv(w_hwio, scale, bias, cin_pad, cout_pad):
    """Fold BN scale into conv weights, zero-pad channels, flatten to a lane-dense
    (kh*kw*cin_pad, cout_pad) bf16 slab; return padded f32 bias row."""
    kh, kw, cin, cout = w_hwio.shape
    w = w_hwio * scale[None, None, None, :]                  # fold gamma / sqrt(var+eps)
    wp = jnp.zeros((kh, kw, cin_pad, cout_pad), jnp.float32)
    wp = wp.at[:, :, :cin, :cout].set(w)
    w2d = wp.reshape(kh * kw * cin_pad, cout_pad).astype(jnp.bfloat16)
    b = jnp.zeros((1, cout_pad), jnp.float32).at[0, :cout].set(bias)
    return w2d, b


def double_conv_nhwc(x_nhwc, params):
    """Fused DoubleConv.  Returns channel-padded, lane-dense NHWC bf16 (N, H, W, Cp);
    padded channels are exactly zero.  Preferred entry point for chaining (avoids the
    slice + transpose HBM passes of the NCHW shim)."""
    N, H, W, Cin = x_nhwc.shape
    Cout = params["w1"].shape[-1]
    Cp = 128 * pl.cdiv(Cout, 128)

    assert W % 8 == 0, "W must be a multiple of 8 (sublane tile) for the in-kernel views"
    # rows per M-tile: keep accumulator rows ~<= 64 so the f32 acc + bf16 patch fit in vregs
    R = max(1, min(H, max(1, 64 // W)))
    while H % R:
        R -= 1

    w1p, b1p = _fold_bn_conv(params["w1"], params["scale1"], params["bias1"], Cin, Cp)
    w2p, b2p = _fold_bn_conv(params["w2"], params["scale2"], params["bias2"], Cp, Cp)

    # conv1 im2col slab (bf16); tap order (dy, dx, cin) matches the w1 slab row order.
    xb = x_nhwc.astype(jnp.bfloat16)
    xpad = jnp.pad(xb, ((0, 0), (1, 1), (1, 1), (0, 0)))
    x_col = jnp.concatenate(
        [xpad[:, dy:dy + H, dx:dx + W, :] for dy in range(3) for dx in range(3)],
        axis=-1)                                             # (N, H, W, 9*Cin)

    kernel = functools.partial(_double_conv_kernel, blk_rows=R)

    out = pl.pallas_call(
        kernel,
        out_shape=jax.ShapeDtypeStruct((N, H, W, Cp), jnp.bfloat16),
        grid_spec=pltpu.PrefetchScalarGridSpec(
            num_scalar_prefetch=0,
            grid=(N,),
            in_specs=[
                pl.BlockSpec((1, H, W, 9 * Cin), lambda n: (n, 0, 0, 0)),
                pl.BlockSpec((9 * Cin, Cp), lambda n: (0, 0)),
                pl.BlockSpec((1, Cp), lambda n: (0, 0)),
                pl.BlockSpec((9 * Cp, Cp), lambda n: (0, 0)),
                pl.BlockSpec((1, Cp), lambda n: (0, 0)),
            ],
            out_specs=pl.BlockSpec((1, H, W, Cp), lambda n: (n, 0, 0, 0)),
            scratch_shapes=[
                pltpu.VMEM((H + 2, W, 3 * Cp), jnp.bfloat16),   # pre-shifted intermediate
            ],
        ),
        compiler_params=pltpu.CompilerParams(
            dimension_semantics=("parallel",),
        ),
    )(x_col, w1p, b1p, w2p, b2p)
    return out


def double_conv(x_nchw, params):
    """PyTorch-layout (NCHW in / NCHW out, bf16) convenience shim around the fused kernel."""
    Cout = params["w1"].shape[-1]
    x_nhwc = jnp.transpose(x_nchw, (0, 2, 3, 1))
    out = double_conv_nhwc(x_nhwc, params)
    # slice BEFORE transposing so only the Cout useful channels are re-read from HBM
    return jnp.transpose(out[..., :Cout], (0, 3, 1, 2))


# ------------------------- parameter construction ---------------------------
def make_params(key, in_channels, out_channels, eps=1e-5):
    ks = jax.random.split(key, 10)

    def bn_fold(kg, kb, km, kv, c):
        gamma = 1.0 + 0.1 * jax.random.normal(kg, (c,), jnp.float32)
        beta = 0.1 * jax.random.normal(kb, (c,), jnp.float32)
        mean = 0.1 * jax.random.normal(km, (c,), jnp.float32)
        var = jnp.abs(jax.random.normal(kv, (c,), jnp.float32)) + 0.5
        scale = gamma / jnp.sqrt(var + eps)
        bias = beta - mean * scale
        return scale, bias

    # Conv weights in HWIO layout (3, 3, Cin, Cout)
    w1 = 0.1 * jax.random.normal(ks[0], (3, 3, in_channels, out_channels), jnp.float32)
    w2 = 0.1 * jax.random.normal(ks[1], (3, 3, out_channels, out_channels), jnp.float32)
    scale1, bias1 = bn_fold(ks[2], ks[3], ks[4], ks[5], out_channels)
    scale2, bias2 = bn_fold(ks[6], ks[7], ks[8], ks[9], out_channels)
    return {"w1": w1, "scale1": scale1, "bias1": bias1,
            "w2": w2, "scale2": scale2, "bias2": bias2}


# ------------------------------ reference ------------------------------------
def double_conv_ref(x_nchw, params):
    """Reference mirroring the kernel's numerics: BN scale folded into the conv
    weights, operands rounded to bf16, f32 accumulation, bias added in f32."""
    def block(x, w_hwio, scale, bias):
        w = (w_hwio * scale[None, None, None, :]).astype(jnp.bfloat16).astype(jnp.float32)
        xb = x.astype(jnp.bfloat16).astype(jnp.float32)
        w_oihw = jnp.transpose(w, (3, 2, 0, 1))
        y = lax.conv_general_dilated(
            xb, w_oihw, window_strides=(1, 1), padding=((1, 1), (1, 1)),
            dimension_numbers=("NCHW", "OIHW", "NCHW"),
            precision=lax.Precision.HIGHEST)
        return y + bias[None, :, None, None]

    x = block(x_nchw, params["w1"], params["scale1"], params["bias1"])
    x = block(x, params["w2"], params["scale2"], params["bias2"])
    return x


# --------------------------------- main --------------------------------------
if __name__ == "__main__":
    key = jax.random.PRNGKey(0)
    k_x, k_p = jax.random.split(key)

    N, C_IN, C_OUT, H, W = 2, 4, 8, 16, 16
    x = jax.random.normal(k_x, (N, C_IN, H, W), jnp.float32)   # NCHW like PyTorch
    params = make_params(k_p, C_IN, C_OUT)

    out = jax.jit(double_conv)(x, params)
    out = jax.block_until_ready(out)

    ref = double_conv_ref(x, params)
    out_f32 = np.asarray(jnp.asarray(out, jnp.float32))
    np.testing.assert_allclose(out_f32, np.asarray(ref), rtol=2e-2, atol=2e-2)

    assert out.shape == (N, C_OUT, H, W)
    print("KERNEL_OK")
</pallas_src>

<mosaic_0001>
module attributes {stable_mosaic.version = 11 : i64} {
  func.func @_double_conv_kernel(%arg0: i32, %arg1: memref<1x16x16x36xbf16, #tpu.memory_space<vmem>>, %arg2: memref<36x128xbf16, #tpu.memory_space<vmem>>, %arg3: memref<1x128xf32, #tpu.memory_space<vmem>>, %arg4: memref<1152x128xbf16, #tpu.memory_space<vmem>>, %arg5: memref<1x128xf32, #tpu.memory_space<vmem>>, %arg6: memref<1x16x16x128xbf16, #tpu.memory_space<vmem>>, %arg7: memref<18x16x384xbf16, #tpu.memory_space<vmem>>) attributes {dimension_semantics = [#tpu.dimension_semantics<parallel>], iteration_bounds = array<i64: 2>, scalar_prefetch = 0 : i64, scratch_operands = 1 : i64, tpu.core_type = #tpu.core_type<tc>, window_params = [{transform_indices = @transform_0, window_bounds = array<i64: 1, 16, 16, 36>}, {pipeline_mode = #tpu.pipeline_mode<synchronous>, transform_indices = @transform_1, window_bounds = array<i64: 36, 128>}, {pipeline_mode = #tpu.pipeline_mode<synchronous>, transform_indices = @transform_2, window_bounds = array<i64: 1, 128>}, {pipeline_mode = #tpu.pipeline_mode<synchronous>, transform_indices = @transform_3, window_bounds = array<i64: 1152, 128>}, {pipeline_mode = #tpu.pipeline_mode<synchronous>, transform_indices = @transform_4, window_bounds = array<i64: 1, 128>}, {transform_indices = @transform_5, window_bounds = array<i64: 1, 16, 16, 128>}]} {
    %cst = arith.constant 0.000000e+00 : bf16
    %0 = vector.broadcast %cst : bf16 to vector<1x16x384xbf16>
    %c0 = arith.constant 0 : index
    %c0_0 = arith.constant 0 : index
    %c0_1 = arith.constant 0 : index
    %1 = vector.load %arg7[%c0, %c0_0, %c0_1] : memref<18x16x384xbf16, #tpu.memory_space<vmem>>, vector<1x16x384xbf16>
    tpu.vector_store %arg7[%c0, %c0_0, %c0_1], %0 {strides = array<i32>} : memref<18x16x384xbf16, #tpu.memory_space<vmem>>, vector<1x16x384xbf16>,
    %cst_2 = arith.constant 0.000000e+00 : bf16
    %2 = vector.broadcast %cst_2 : bf16 to vector<1x16x384xbf16>
    %c17 = arith.constant 17 : index
    %c0_3 = arith.constant 0 : index
    %c0_4 = arith.constant 0 : index
    %3 = vector.load %arg7[%c17, %c0_3, %c0_4] : memref<18x16x384xbf16, #tpu.memory_space<vmem>>, vector<1x16x384xbf16>
    tpu.vector_store %arg7[%c17, %c0_3, %c0_4], %2 {strides = array<i32>} : memref<18x16x384xbf16, #tpu.memory_space<vmem>>, vector<1x16x384xbf16>,
    %cst_5 = arith.constant 0.000000e+00 : bf16
    %4 = vector.broadcast %cst_5 : bf16 to vector<18x1x128xbf16>
    %c0_6 = arith.constant 0 : index
    %c0_7 = arith.constant 0 : index
    %c0_8 = arith.constant 0 : index
    %5 = vector.load %arg7[%c0_6, %c0_7, %c0_8] : memref<18x16x384xbf16, #tpu.memory_space<vmem>>, vector<18x1x128xbf16>
    tpu.vector_store %arg7[%c0_6, %c0_7, %c0_8], %4 {strides = array<i32>} : memref<18x16x384xbf16, #tpu.memory_space<vmem>>, vector<18x1x128xbf16>,
    %cst_9 = arith.constant 0.000000e+00 : bf16
    %6 = vector.broadcast %cst_9 : bf16 to vector<18x1x128xbf16>
    %c0_10 = arith.constant 0 : index
    %c15 = arith.constant 15 : index
    %c256 = arith.constant 256 : index
    %7 = vector.load %arg7[%c0_10, %c15, %c256] : memref<18x16x384xbf16, #tpu.memory_space<vmem>>, vector<18x1x128xbf16>
    tpu.vector_store %arg7[%c0_10, %c15, %c256], %6 {strides = array<i32>} : memref<18x16x384xbf16, #tpu.memory_space<vmem>>, vector<18x1x128xbf16>,
    %c0_11 = arith.constant 0 : index
    %c0_12 = arith.constant 0 : index
    %8 = vector.load %arg2[%c0_11, %c0_12] : memref<36x128xbf16, #tpu.memory_space<vmem>>, vector<36x128xbf16>
    %c0_13 = arith.constant 0 : index
    %c0_14 = arith.constant 0 : index
    %9 = vector.load %arg3[%c0_13, %c0_14] : memref<1x128xf32, #tpu.memory_space<vmem>>, vector<1x128xf32>
    %c0_15 = arith.constant 0 : index
    %c0_16 = arith.constant 0 : index
    %10 = vector.load %arg5[%c0_15, %c0_16] : memref<1x128xf32, #tpu.memory_space<vmem>>, vector<1x128xf32>
    %c0_i32 = arith.constant 0 : i32
    %c0_i32_17 = arith.constant 0 : i32
    %c4_i32 = arith.constant 4 : i32
    %11 = arith.muli %c0_i32_17, %c4_i32 : i32
    %c0_i32_18 = arith.constant 0 : i32
    %c0_i32_19 = arith.constant 0 : i32
    %c0_i32_20 = arith.constant 0 : i32
    %12 = tpu.memref_slice %arg1[%c0_i32, %c0_i32_18, %c0_i32_19, %c0_i32_20] : memref<1x16x16x36xbf16, #tpu.memory_space<vmem>> -> memref<1x16x16x36xbf16, #tpu.memory_space<vmem>>
    %13 = tpu.memref_squeeze %12 : memref<1x16x16x36xbf16, #tpu.memory_space<vmem>> -> memref<16x16x36xbf16, #tpu.memory_space<vmem>>
    %14 = arith.index_cast %11 : i32 to index
    %c0_21 = arith.constant 0 : index
    %c0_22 = arith.constant 0 : index
    %15 = vector.load %13[%14, %c0_21, %c0_22] : memref<16x16x36xbf16, #tpu.memory_space<vmem>>, vector<4x16x36xbf16>
    %16 = vector.shape_cast %15 : vector<4x16x36xbf16> to vector<64x36xbf16>
    %cst_23 = arith.constant dense<0.000000e+00> : vector<64x128xf32>
    %17 = tpu.matmul %16, %8, %cst_23 {dimension_numbers = #tpu.dot_dimension_numbers<[1], [0], [0], [1], [0, 0, 1, 1], [], []>} : vector<64x36xbf16>, vector<36x128xbf16>, vector<64x128xf32> -> vector<64x128xf32>
    %18 = vector.broadcast %9 : vector<1x128xf32> to vector<64x128xf32>
    %19 = arith.addf %17, %18 : vector<64x128xf32>
    %20 = arith.truncf %19 : vector<64x128xf32> to vector<64x128xbf16>
    %21 = vector.shape_cast %20 : vector<64x128xbf16> to vector<4x16x128xbf16>
    %c1_i32 = arith.constant 1 : i32
    %22 = arith.addi %11, %c1_i32 : i32
    %23 = arith.index_cast %22 : i32 to index
    %c0_24 = arith.constant 0 : index
    %c128 = arith.constant 128 : index
    %24 = vector.load %arg7[%23, %c0_24, %c128] : memref<18x16x384xbf16, #tpu.memory_space<vmem>>, vector<4x16x128xbf16>
    tpu.vector_store %arg7[%23, %c0_24, %c128], %21 {strides = array<i32>} : memref<18x16x384xbf16, #tpu.memory_space<vmem>>, vector<4x16x128xbf16>,
    %25 = vector.extract_strided_slice %21 {offsets = [0, 0, 0], sizes = [4, 15, 128], strides = [1, 1, 1]} : vector<4x16x128xbf16> to vector<4x15x128xbf16>
    %26 = arith.index_cast %22 : i32 to index
    %c1 = arith.constant 1 : index
    %c0_25 = arith.constant 0 : index
    %27 = vector.load %arg7[%26, %c1, %c0_25] : memref<18x16x384xbf16, #tpu.memory_space<vmem>>, vector<4x15x128xbf16>
    tpu.vector_store %arg7[%26, %c1, %c0_25], %25 {strides = array<i32>} : memref<18x16x384xbf16, #tpu.memory_space<vmem>>, vector<4x15x128xbf16>,
    %28 = vector.extract_strided_slice %21 {offsets = [0, 1, 0], sizes = [4, 15, 128], strides = [1, 1, 1]} : vector<4x16x128xbf16> to vector<4x15x128xbf16>
    %29 = arith.index_cast %22 : i32 to index
    %c0_26 = arith.constant 0 : index
    %c256_27 = arith.constant 256 : index
    %30 = vector.load %arg7[%29, %c0_26, %c256_27] : memref<18x16x384xbf16, #tpu.memory_space<vmem>>, vector<4x15x128xbf16>
    tpu.vector_store %arg7[%29, %c0_26, %c256_27], %28 {strides = array<i32>} : memref<18x16x384xbf16, #tpu.memory_space<vmem>>, vector<4x15x128xbf16>,
    %c1_i32_28 = arith.constant 1 : i32
    %c4_i32_29 = arith.constant 4 : i32
    %31 = arith.muli %c1_i32_28, %c4_i32_29 : i32
    %c0_i32_30 = arith.constant 0 : i32
    %c0_i32_31 = arith.constant 0 : i32
    %c0_i32_32 = arith.constant 0 : i32
    %32 = tpu.memref_slice %arg1[%c0_i32, %c0_i32_30, %c0_i32_31, %c0_i32_32] : memref<1x16x16x36xbf16, #tpu.memory_space<vmem>> -> memref<1x16x16x36xbf16, #tpu.memory_space<vmem>>
    %33 = tpu.memref_squeeze %32 : memref<1x16x16x36xbf16, #tpu.memory_space<vmem>> -> memref<16x16x36xbf16, #tpu.memory_space<vmem>>
    %34 = arith.index_cast %31 : i32 to index
    %c0_33 = arith.constant 0 : index
    %c0_34 = arith.constant 0 : index
    %35 = vector.load %33[%34, %c0_33, %c0_34] : memref<16x16x36xbf16, #tpu.memory_space<vmem>>, vector<4x16x36xbf16>
    %36 = vector.shape_cast %35 : vector<4x16x36xbf16> to vector<64x36xbf16>
    %cst_35 = arith.constant dense<0.000000e+00> : vector<64x128xf32>
    %37 = tpu.matmul %36, %8, %cst_35 {dimension_numbers = #tpu.dot_dimension_numbers<[1], [0], [0], [1], [0, 0, 1, 1], [], []>} : vector<64x36xbf16>, vector<36x128xbf16>, vector<64x128xf32> -> vector<64x128xf32>
    %38 = vector.broadcast %9 : vector<1x128xf32> to vector<64x128xf32>
    %39 = arith.addf %37, %38 : vector<64x128xf32>
    %40 = arith.truncf %39 : vector<64x128xf32> to vector<64x128xbf16>
    %41 = vector.shape_cast %40 : vector<64x128xbf16> to vector<4x16x128xbf16>
    %c1_i32_36 = arith.constant 1 : i32
    %42 = arith.addi %31, %c1_i32_36 : i32
    %43 = arith.index_cast %42 : i32 to index
    %c0_37 = arith.constant 0 : index
    %c128_38 = arith.constant 128 : index
    %44 = vector.load %arg7[%43, %c0_37, %c128_38] : memref<18x16x384xbf16, #tpu.memory_space<vmem>>, vector<4x16x128xbf16>
    tpu.vector_store %arg7[%43, %c0_37, %c128_38], %41 {strides = array<i32>} : memref<18x16x384xbf16, #tpu.memory_space<vmem>>, vector<4x16x128xbf16>,
    %45 = vector.extract_strided_slice %41 {offsets = [0, 0, 0], sizes = [4, 15, 128], strides = [1, 1, 1]} : vector<4x16x128xbf16> to vector<4x15x128xbf16>
    %46 = arith.index_cast %42 : i32 to index
    %c1_39 = arith.constant 1 : index
    %c0_40 = arith.constant 0 : index
    %47 = vector.load %arg7[%46, %c1_39, %c0_40] : memref<18x16x384xbf16, #tpu.memory_space<vmem>>, vector<4x15x128xbf16>
    tpu.vector_store %arg7[%46, %c1_39, %c0_40], %45 {strides = array<i32>} : memref<18x16x384xbf16, #tpu.memory_space<vmem>>, vector<4x15x128xbf16>,
    %48 = vector.extract_strided_slice %41 {offsets = [0, 1, 0], sizes = [4, 15, 128], strides = [1, 1, 1]} : vector<4x16x128xbf16> to vector<4x15x128xbf16>
    %49 = arith.index_cast %42 : i32 to index
    %c0_41 = arith.constant 0 : index
    %c256_42 = arith.constant 256 : index
    %50 = vector.load %arg7[%49, %c0_41, %c256_42] : memref<18x16x384xbf16, #tpu.memory_space<vmem>>, vector<4x15x128xbf16>
    tpu.vector_store %arg7[%49, %c0_41, %c256_42], %48 {strides = array<i32>} : memref<18x16x384xbf16, #tpu.memory_space<vmem>>, vector<4x15x128xbf16>,
    %c2_i32 = arith.constant 2 : i32
    %c4_i32_43 = arith.constant 4 : i32
    %51 = arith.muli %c2_i32, %c4_i32_43 : i32
    %c0_i32_44 = arith.constant 0 : i32
    %c0_i32_45 = arith.constant 0 : i32
    %c0_i32_46 = arith.constant 0 : i32
    %52 = tpu.memref_slice %arg1[%c0_i32, %c0_i32_44, %c0_i32_45, %c0_i32_46] : memref<1x16x16x36xbf16, #tpu.memory_space<vmem>> -> memref<1x16x16x36xbf16, #tpu.memory_space<vmem>>
    %53 = tpu.memref_squeeze %52 : memref<1x16x16x36xbf16, #tpu.memory_space<vmem>> -> memref<16x16x36xbf16, #tpu.memory_space<vmem>>
    %54 = arith.index_cast %51 : i32 to index
    %c0_47 = arith.constant 0 : index
    %c0_48 = arith.constant 0 : index
    %55 = vector.load %53[%54, %c0_47, %c0_48] : memref<16x16x36xbf16, #tpu.memory_space<vmem>>, vector<4x16x36xbf16>
    %56 = vector.shape_cast %55 : vector<4x16x36xbf16> to vector<64x36xbf16>
    %cst_49 = arith.constant dense<0.000000e+00> : vector<64x128xf32>
    %57 = tpu.matmul %56, %8, %cst_49 {dimension_numbers = #tpu.dot_dimension_numbers<[1], [0], [0], [1], [0, 0, 1, 1], [], []>} : vector<64x36xbf16>, vector<36x128xbf16>, vector<64x128xf32> -> vector<64x128xf32>
    %58 = vector.broadcast %9 : vector<1x128xf32> to vector<64x128xf32>
    %59 = arith.addf %57, %58 : vector<64x128xf32>
    %60 = arith.truncf %59 : vector<64x128xf32> to vector<64x128xbf16>
    %61 = vector.shape_cast %60 : vector<64x128xbf16> to vector<4x16x128xbf16>
    %c1_i32_50 = arith.constant 1 : i32
    %62 = arith.addi %51, %c1_i32_50 : i32
    %63 = arith.index_cast %62 : i32 to index
    %c0_51 = arith.constant 0 : index
    %c128_52 = arith.constant 128 : index
    %64 = vector.load %arg7[%63, %c0_51, %c128_52] : memref<18x16x384xbf16, #tpu.memory_space<vmem>>, vector<4x16x128xbf16>
    tpu.vector_store %arg7[%63, %c0_51, %c128_52], %61 {strides = array<i32>} : memref<18x16x384xbf16, #tpu.memory_space<vmem>>, vector<4x16x128xbf16>,
    %65 = vector.extract_strided_slice %61 {offsets = [0, 0, 0], sizes = [4, 15, 128], strides = [1, 1, 1]} : vector<4x16x128xbf16> to vector<4x15x128xbf16>
    %66 = arith.index_cast %62 : i32 to index
    %c1_53 = arith.constant 1 : index
    %c0_54 = arith.constant 0 : index
    %67 = vector.load %arg7[%66, %c1_53, %c0_54] : memref<18x16x384xbf16, #tpu.memory_space<vmem>>, vector<4x15x128xbf16>
    tpu.vector_store %arg7[%66, %c1_53, %c0_54], %65 {strides = array<i32>} : memref<18x16x384xbf16, #tpu.memory_space<vmem>>, vector<4x15x128xbf16>,
    %68 = vector.extract_strided_slice %61 {offsets = [0, 1, 0], sizes = [4, 15, 128], strides = [1, 1, 1]} : vector<4x16x128xbf16> to vector<4x15x128xbf16>
    %69 = arith.index_cast %62 : i32 to index
    %c0_55 = arith.constant 0 : index
    %c256_56 = arith.constant 256 : index
    %70 = vector.load %arg7[%69, %c0_55, %c256_56] : memref<18x16x384xbf16, #tpu.memory_space<vmem>>, vector<4x15x128xbf16>
    tpu.vector_store %arg7[%69, %c0_55, %c256_56], %68 {strides = array<i32>} : memref<18x16x384xbf16, #tpu.memory_space<vmem>>, vector<4x15x128xbf16>,
    %c3_i32 = arith.constant 3 : i32
    %c4_i32_57 = arith.constant 4 : i32
    %71 = arith.muli %c3_i32, %c4_i32_57 : i32
    %c0_i32_58 = arith.constant 0 : i32
    %c0_i32_59 = arith.constant 0 : i32
    %c0_i32_60 = arith.constant 0 : i32
    %72 = tpu.memref_slice %arg1[%c0_i32, %c0_i32_58, %c0_i32_59, %c0_i32_60] : memref<1x16x16x36xbf16, #tpu.memory_space<vmem>> -> memref<1x16x16x36xbf16, #tpu.memory_space<vmem>>
    %73 = tpu.memref_squeeze %72 : memref<1x16x16x36xbf16, #tpu.memory_space<vmem>> -> memref<16x16x36xbf16, #tpu.memory_space<vmem>>
    %74 = arith.index_cast %71 : i32 to index
    %c0_61 = arith.constant 0 : index
    %c0_62 = arith.constant 0 : index
    %75 = vector.load %73[%74, %c0_61, %c0_62] : memref<16x16x36xbf16, #tpu.memory_space<vmem>>, vector<4x16x36xbf16>
    %76 = vector.shape_cast %75 : vector<4x16x36xbf16> to vector<64x36xbf16>
    %cst_63 = arith.constant dense<0.000000e+00> : vector<64x128xf32>
    %77 = tpu.matmul %76, %8, %cst_63 {dimension_numbers = #tpu.dot_dimension_numbers<[1], [0], [0], [1], [0, 0, 1, 1], [], []>} : vector<64x36xbf16>, vector<36x128xbf16>, vector<64x128xf32> -> vector<64x128xf32>
    %78 = vector.broadcast %9 : vector<1x128xf32> to vector<64x128xf32>
    %79 = arith.addf %77, %78 : vector<64x128xf32>
    %80 = arith.truncf %79 : vector<64x128xf32> to vector<64x128xbf16>
    %81 = vector.shape_cast %80 : vector<64x128xbf16> to vector<4x16x128xbf16>
    %c1_i32_64 = arith.constant 1 : i32
    %82 = arith.addi %71, %c1_i32_64 : i32
    %83 = arith.index_cast %82 : i32 to index
    %c0_65 = arith.constant 0 : index
    %c128_66 = arith.constant 128 : index
    %84 = vector.load %arg7[%83, %c0_65, %c128_66] : memref<18x16x384xbf16, #tpu.memory_space<vmem>>, vector<4x16x128xbf16>
    tpu.vector_store %arg7[%83, %c0_65, %c128_66], %81 {strides = array<i32>} : memref<18x16x384xbf16, #tpu.memory_space<vmem>>, vector<4x16x128xbf16>,
    %85 = vector.extract_strided_slice %81 {offsets = [0, 0, 0], sizes = [4, 15, 128], strides = [1, 1, 1]} : vector<4x16x128xbf16> to vector<4x15x128xbf16>
    %86 = arith.index_cast %82 : i32 to index
    %c1_67 = arith.constant 1 : index
    %c0_68 = arith.constant 0 : index
    %87 = vector.load %arg7[%86, %c1_67, %c0_68] : memref<18x16x384xbf16, #tpu.memory_space<vmem>>, vector<4x15x128xbf16>
    tpu.vector_store %arg7[%86, %c1_67, %c0_68], %85 {strides = array<i32>} : memref<18x16x384xbf16, #tpu.memory_space<vmem>>, vector<4x15x128xbf16>,
    %88 = vector.extract_strided_slice %81 {offsets = [0, 1, 0], sizes = [4, 15, 128], strides = [1, 1, 1]} : vector<4x16x128xbf16> to vector<4x15x128xbf16>
    %89 = arith.index_cast %82 : i32 to index
    %c0_69 = arith.constant 0 : index
    %c256_70 = arith.constant 256 : index
    %90 = vector.load %arg7[%89, %c0_69, %c256_70] : memref<18x16x384xbf16, #tpu.memory_space<vmem>>, vector<4x15x128xbf16>
    tpu.vector_store %arg7[%89, %c0_69, %c256_70], %88 {strides = array<i32>} : memref<18x16x384xbf16, #tpu.memory_space<vmem>>, vector<4x15x128xbf16>,
    %c4_i32_71 = arith.constant 4 : i32
    %c0_i32_72 = arith.constant 0 : i32
    %c0_i32_73 = arith.constant 0 : i32
    %c4_i32_74 = arith.constant 4 : i32
    %91 = arith.muli %c0_i32_73, %c4_i32_74 : i32
    %92 = arith.index_cast %91 : i32 to index
    %c0_75 = arith.constant 0 : index
    %c0_76 = arith.constant 0 : index
    %93 = vector.load %arg7[%92, %c0_75, %c0_76] : memref<18x16x384xbf16, #tpu.memory_space<vmem>>, vector<4x16x384xbf16>
    %94 = vector.shape_cast %93 : vector<4x16x384xbf16> to vector<64x384xbf16>
    %c0_77 = arith.constant 0 : index
    %c0_78 = arith.constant 0 : index
    %95 = vector.load %arg4[%c0_77, %c0_78] : memref<1152x128xbf16, #tpu.memory_space<vmem>>, vector<384x128xbf16>
    %cst_79 = arith.constant dense<0.000000e+00> : vector<64x128xf32>
    %96 = tpu.matmul %94, %95, %cst_79 {dimension_numbers = #tpu.dot_dimension_numbers<[1], [0], [0], [1], [0, 0, 1, 1], [], []>} : vector<64x384xbf16>, vector<384x128xbf16>, vector<64x128xf32> -> vector<64x128xf32>
    %c1_i32_80 = arith.constant 1 : i32
    %97 = arith.addi %91, %c1_i32_80 : i32
    %98 = arith.index_cast %97 : i32 to index
    %c0_81 = arith.constant 0 : index
    %c0_82 = arith.constant 0 : index
    %99 = vector.load %arg7[%98, %c0_81, %c0_82] : memref<18x16x384xbf16, #tpu.memory_space<vmem>>, vector<4x16x384xbf16>
    %100 = vector.shape_cast %99 : vector<4x16x384xbf16> to vector<64x384xbf16>
    %c384 = arith.constant 384 : index
    %c0_83 = arith.constant 0 : index
    %101 = vector.load %arg4[%c384, %c0_83] : memref<1152x128xbf16, #tpu.memory_space<vmem>>, vector<384x128xbf16>
    %cst_84 = arith.constant dense<0.000000e+00> : vector<64x128xf32>
    %102 = tpu.matmul %100, %101, %cst_84 {dimension_numbers = #tpu.dot_dimension_numbers<[1], [0], [0], [1], [0, 0, 1, 1], [], []>} : vector<64x384xbf16>, vector<384x128xbf16>, vector<64x128xf32> -> vector<64x128xf32>
    %103 = arith.addf %96, %102 : vector<64x128xf32>
    %c2_i32_85 = arith.constant 2 : i32
    %104 = arith.addi %91, %c2_i32_85 : i32
    %105 = arith.index_cast %104 : i32 to index
    %c0_86 = arith.constant 0 : index
    %c0_87 = arith.constant 0 : index
    %106 = vector.load %arg7[%105, %c0_86, %c0_87] : memref<18x16x384xbf16, #tpu.memory_space<vmem>>, vector<4x16x384xbf16>
    %107 = vector.shape_cast %106 : vector<4x16x384xbf16> to vector<64x384xbf16>
    %c768 = arith.constant 768 : index
    %c0_88 = arith.constant 0 : index
    %108 = vector.load %arg4[%c768, %c0_88] : memref<1152x128xbf16, #tpu.memory_space<vmem>>, vector<384x128xbf16>
    %cst_89 = arith.constant dense<0.000000e+00> : vector<64x128xf32>
    %109 = tpu.matmul %107, %108, %cst_89 {dimension_numbers = #tpu.dot_dimension_numbers<[1], [0], [0], [1], [0, 0, 1, 1], [], []>} : vector<64x384xbf16>, vector<384x128xbf16>, vector<64x128xf32> -> vector<64x128xf32>
    %110 = arith.addf %103, %109 : vector<64x128xf32>
    %111 = vector.broadcast %10 : vector<1x128xf32> to vector<64x128xf32>
    %112 = arith.addf %110, %111 : vector<64x128xf32>
    %113 = arith.truncf %112 : vector<64x128xf32> to vector<64x128xbf16>
    %114 = vector.shape_cast %113 : vector<64x128xbf16> to vector<4x16x128xbf16>
    %c0_i32_90 = arith.constant 0 : i32
    %c0_i32_91 = arith.constant 0 : i32
    %c0_i32_92 = arith.constant 0 : i32
    %115 = tpu.memref_slice %arg6[%c0_i32_72, %c0_i32_90, %c0_i32_91, %c0_i32_92] : memref<1x16x16x128xbf16, #tpu.memory_space<vmem>> -> memref<1x16x16x128xbf16, #tpu.memory_space<vmem>>
    %116 = tpu.memref_squeeze %115 : memref<1x16x16x128xbf16, #tpu.memory_space<vmem>> -> memref<16x16x128xbf16, #tpu.memory_space<vmem>>
    %117 = arith.index_cast %91 : i32 to index
    %c0_93 = arith.constant 0 : index
    %c0_94 = arith.constant 0 : index
    %118 = vector.load %116[%117, %c0_93, %c0_94] : memref<16x16x128xbf16, #tpu.memory_space<vmem>>, vector<4x16x128xbf16>
    tpu.vector_store %116[%117, %c0_93, %c0_94], %114 {strides = array<i32>} : memref<16x16x128xbf16, #tpu.memory_space<vmem>>, vector<4x16x128xbf16>,
    %c1_i32_95 = arith.constant 1 : i32
    %c4_i32_96 = arith.constant 4 : i32
    %119 = arith.muli %c1_i32_95, %c4_i32_96 : i32
    %120 = arith.index_cast %119 : i32 to index
    %c0_97 = arith.constant 0 : index
    %c0_98 = arith.constant 0 : index
    %121 = vector.load %arg7[%120, %c0_97, %c0_98] : memref<18x16x384xbf16, #tpu.memory_space<vmem>>, vector<4x16x384xbf16>
    %122 = vector.shape_cast %121 : vector<4x16x384xbf16> to vector<64x384xbf16>
    %c0_99 = arith.constant 0 : index
    %c0_100 = arith.constant 0 : index
    %123 = vector.load %arg4[%c0_99, %c0_100] : memref<1152x128xbf16, #tpu.memory_space<vmem>>, vector<384x128xbf16>
    %cst_101 = arith.constant dense<0.000000e+00> : vector<64x128xf32>
    %124 = tpu.matmul %122, %123, %cst_101 {dimension_numbers = #tpu.dot_dimension_numbers<[1], [0], [0], [1], [0, 0, 1, 1], [], []>} : vector<64x384xbf16>, vector<384x128xbf16>, vector<64x128xf32> -> vector<64x128xf32>
    %c1_i32_102 = arith.constant 1 : i32
    %125 = arith.addi %119, %c1_i32_102 : i32
    %126 = arith.index_cast %125 : i32 to index
    %c0_103 = arith.constant 0 : index
    %c0_104 = arith.constant 0 : index
    %127 = vector.load %arg7[%126, %c0_103, %c0_104] : memref<18x16x384xbf16, #tpu.memory_space<vmem>>, vector<4x16x384xbf16>
    %128 = vector.shape_cast %127 : vector<4x16x384xbf16> to vector<64x384xbf16>
    %c384_105 = arith.constant 384 : index
    %c0_106 = arith.constant 0 : index
    %129 = vector.load %arg4[%c384_105, %c0_106] : memref<1152x128xbf16, #tpu.memory_space<vmem>>, vector<384x128xbf16>
    %cst_107 = arith.constant dense<0.000000e+00> : vector<64x128xf32>
    %130 = tpu.matmul %128, %129, %cst_107 {dimension_numbers = #tpu.dot_dimension_numbers<[1], [0], [0], [1], [0, 0, 1, 1], [], []>} : vector<64x384xbf16>, vector<384x128xbf16>, vector<64x128xf32> -> vector<64x128xf32>
    %131 = arith.addf %124, %130 : vector<64x128xf32>
    %c2_i32_108 = arith.constant 2 : i32
    %132 = arith.addi %119, %c2_i32_108 : i32
    %133 = arith.index_cast %132 : i32 to index
    %c0_109 = arith.constant 0 : index
    %c0_110 = arith.constant 0 : index
    %134 = vector.load %arg7[%133, %c0_109, %c0_110] : memref<18x16x384xbf16, #tpu.memory_space<vmem>>, vector<4x16x384xbf16>
    %135 = vector.shape_cast %134 : vector<4x16x384xbf16> to vector<64x384xbf16>
    %c768_111 = arith.constant 768 : index
    %c0_112 = arith.constant 0 : index
    %136 = vector.load %arg4[%c768_111, %c0_112] : memref<1152x128xbf16, #tpu.memory_space<vmem>>, vector<384x128xbf16>
    %cst_113 = arith.constant dense<0.000000e+00> : vector<64x128xf32>
    %137 = tpu.matmul %135, %136, %cst_113 {dimension_numbers = #tpu.dot_dimension_numbers<[1], [0], [0], [1], [0, 0, 1, 1], [], []>} : vector<64x384xbf16>, vector<384x128xbf16>, vector<64x128xf32> -> vector<64x128xf32>
    %138 = arith.addf %131, %137 : vector<64x128xf32>
    %139 = vector.broadcast %10 : vector<1x128xf32> to vector<64x128xf32>
    %140 = arith.addf %138, %139 : vector<64x128xf32>
    %141 = arith.truncf %140 : vector<64x128xf32> to vector<64x128xbf16>
    %142 = vector.shape_cast %141 : vector<64x128xbf16> to vector<4x16x128xbf16>
    %c0_i32_114 = arith.constant 0 : i32
    %c0_i32_115 = arith.constant 0 : i32
    %c0_i32_116 = arith.constant 0 : i32
    %143 = tpu.memref_slice %arg6[%c0_i32_72, %c0_i32_114, %c0_i32_115, %c0_i32_116] : memref<1x16x16x128xbf16, #tpu.memory_space<vmem>> -> memref<1x16x16x128xbf16, #tpu.memory_space<vmem>>
    %144 = tpu.memref_squeeze %143 : memref<1x16x16x128xbf16, #tpu.memory_space<vmem>> -> memref<16x16x128xbf16, #tpu.memory_space<vmem>>
    %145 = arith.index_cast %119 : i32 to index
    %c0_117 = arith.constant 0 : index
    %c0_118 = arith.constant 0 : index
    %146 = vector.load %144[%145, %c0_117, %c0_118] : memref<16x16x128xbf16, #tpu.memory_space<vmem>>, vector<4x16x128xbf16>
    tpu.vector_store %144[%145, %c0_117, %c0_118], %142 {strides = array<i32>} : memref<16x16x128xbf16, #tpu.memory_space<vmem>>, vector<4x16x128xbf16>,
    %c2_i32_119 = arith.constant 2 : i32
    %c4_i32_120 = arith.constant 4 : i32
    %147 = arith.muli %c2_i32_119, %c4_i32_120 : i32
    %148 = arith.index_cast %147 : i32 to index
    %c0_121 = arith.constant 0 : index
    %c0_122 = arith.constant 0 : index
    %149 = vector.load %arg7[%148, %c0_121, %c0_122] : memref<18x16x384xbf16, #tpu.memory_space<vmem>>, vector<4x16x384xbf16>
    %150 = vector.shape_cast %149 : vector<4x16x384xbf16> to vector<64x384xbf16>
    %c0_123 = arith.constant 0 : index
    %c0_124 = arith.constant 0 : index
    %151 = vector.load %arg4[%c0_123, %c0_124] : memref<1152x128xbf16, #tpu.memory_space<vmem>>, vector<384x128xbf16>
    %cst_125 = arith.constant dense<0.000000e+00> : vector<64x128xf32>
    %152 = tpu.matmul %150, %151, %cst_125 {dimension_numbers = #tpu.dot_dimension_numbers<[1], [0], [0], [1], [0, 0, 1, 1], [], []>} : vector<64x384xbf16>, vector<384x128xbf16>, vector<64x128xf32> -> vector<64x128xf32>
    %c1_i32_126 = arith.constant 1 : i32
    %153 = arith.addi %147, %c1_i32_126 : i32
    %154 = arith.index_cast %153 : i32 to index
    %c0_127 = arith.constant 0 : index
    %c0_128 = arith.constant 0 : index
    %155 = vector.load %arg7[%154, %c0_127, %c0_128] : memref<18x16x384xbf16, #tpu.memory_space<vmem>>, vector<4x16x384xbf16>
    %156 = vector.shape_cast %155 : vector<4x16x384xbf16> to vector<64x384xbf16>
    %c384_129 = arith.constant 384 : index
    %c0_130 = arith.constant 0 : index
    %157 = vector.load %arg4[%c384_129, %c0_130] : memref<1152x128xbf16, #tpu.memory_space<vmem>>, vector<384x128xbf16>
    %cst_131 = arith.constant dense<0.000000e+00> : vector<64x128xf32>
    %158 = tpu.matmul %156, %157, %cst_131 {dimension_numbers = #tpu.dot_dimension_numbers<[1], [0], [0], [1], [0, 0, 1, 1], [], []>} : vector<64x384xbf16>, vector<384x128xbf16>, vector<64x128xf32> -> vector<64x128xf32>
    %159 = arith.addf %152, %158 : vector<64x128xf32>
    %c2_i32_132 = arith.constant 2 : i32
    %160 = arith.addi %147, %c2_i32_132 : i32
    %161 = arith.index_cast %160 : i32 to index
    %c0_133 = arith.constant 0 : index
    %c0_134 = arith.constant 0 : index
    %162 = vector.load %arg7[%161, %c0_133, %c0_134] : memref<18x16x384xbf16, #tpu.memory_space<vmem>>, vector<4x16x384xbf16>
    %163 = vector.shape_cast %162 : vector<4x16x384xbf16> to vector<64x384xbf16>
    %c768_135 = arith.constant 768 : index
    %c0_136 = arith.constant 0 : index
    %164 = vector.load %arg4[%c768_135, %c0_136] : memref<1152x128xbf16, #tpu.memory_space<vmem>>, vector<384x128xbf16>
    %cst_137 = arith.constant dense<0.000000e+00> : vector<64x128xf32>
    %165 = tpu.matmul %163, %164, %cst_137 {dimension_numbers = #tpu.dot_dimension_numbers<[1], [0], [0], [1], [0, 0, 1, 1], [], []>} : vector<64x384xbf16>, vector<384x128xbf16>, vector<64x128xf32> -> vector<64x128xf32>
    %166 = arith.addf %159, %165 : vector<64x128xf32>
    %167 = vector.broadcast %10 : vector<1x128xf32> to vector<64x128xf32>
    %168 = arith.addf %166, %167 : vector<64x128xf32>
    %169 = arith.truncf %168 : vector<64x128xf32> to vector<64x128xbf16>
    %170 = vector.shape_cast %169 : vector<64x128xbf16> to vector<4x16x128xbf16>
    %c0_i32_138 = arith.constant 0 : i32
    %c0_i32_139 = arith.constant 0 : i32
    %c0_i32_140 = arith.constant 0 : i32
    %171 = tpu.memref_slice %arg6[%c0_i32_72, %c0_i32_138, %c0_i32_139, %c0_i32_140] : memref<1x16x16x128xbf16, #tpu.memory_space<vmem>> -> memref<1x16x16x128xbf16, #tpu.memory_space<vmem>>
    %172 = tpu.memref_squeeze %171 : memref<1x16x16x128xbf16, #tpu.memory_space<vmem>> -> memref<16x16x128xbf16, #tpu.memory_space<vmem>>
    %173 = arith.index_cast %147 : i32 to index
    %c0_141 = arith.constant 0 : index
    %c0_142 = arith.constant 0 : index
    %174 = vector.load %172[%173, %c0_141, %c0_142] : memref<16x16x128xbf16, #tpu.memory_space<vmem>>, vector<4x16x128xbf16>
    tpu.vector_store %172[%173, %c0_141, %c0_142], %170 {strides = array<i32>} : memref<16x16x128xbf16, #tpu.memory_space<vmem>>, vector<4x16x128xbf16>,
    %c3_i32_143 = arith.constant 3 : i32
    %c4_i32_144 = arith.constant 4 : i32
    %175 = arith.muli %c3_i32_143, %c4_i32_144 : i32
    %176 = arith.index_cast %175 : i32 to index
    %c0_145 = arith.constant 0 : index
    %c0_146 = arith.constant 0 : index
    %177 = vector.load %arg7[%176, %c0_145, %c0_146] : memref<18x16x384xbf16, #tpu.memory_space<vmem>>, vector<4x16x384xbf16>
    %178 = vector.shape_cast %177 : vector<4x16x384xbf16> to vector<64x384xbf16>
    %c0_147 = arith.constant 0 : index
    %c0_148 = arith.constant 0 : index
    %179 = vector.load %arg4[%c0_147, %c0_148] : memref<1152x128xbf16, #tpu.memory_space<vmem>>, vector<384x128xbf16>
    %cst_149 = arith.constant dense<0.000000e+00> : vector<64x128xf32>
    %180 = tpu.matmul %178, %179, %cst_149 {dimension_numbers = #tpu.dot_dimension_numbers<[1], [0], [0], [1], [0, 0, 1, 1], [], []>} : vector<64x384xbf16>, vector<384x128xbf16>, vector<64x128xf32> -> vector<64x128xf32>
    %c1_i32_150 = arith.constant 1 : i32
    %181 = arith.addi %175, %c1_i32_150 : i32
    %182 = arith.index_cast %181 : i32 to index
    %c0_151 = arith.constant 0 : index
    %c0_152 = arith.constant 0 : index
    %183 = vector.load %arg7[%182, %c0_151, %c0_152] : memref<18x16x384xbf16, #tpu.memory_space<vmem>>, vector<4x16x384xbf16>
    %184 = vector.shape_cast %183 : vector<4x16x384xbf16> to vector<64x384xbf16>
    %c384_153 = arith.constant 384 : index
    %c0_154 = arith.constant 0 : index
    %185 = vector.load %arg4[%c384_153, %c0_154] : memref<1152x128xbf16, #tpu.memory_space<vmem>>, vector<384x128xbf16>
    %cst_155 = arith.constant dense<0.000000e+00> : vector<64x128xf32>
    %186 = tpu.matmul %184, %185, %cst_155 {dimension_numbers = #tpu.dot_dimension_numbers<[1], [0], [0], [1], [0, 0, 1, 1], [], []>} : vector<64x384xbf16>, vector<384x128xbf16>, vector<64x128xf32> -> vector<64x128xf32>
    %187 = arith.addf %180, %186 : vector<64x128xf32>
    %c2_i32_156 = arith.constant 2 : i32
    %188 = arith.addi %175, %c2_i32_156 : i32
    %189 = arith.index_cast %188 : i32 to index
    %c0_157 = arith.constant 0 : index
    %c0_158 = arith.constant 0 : index
    %190 = vector.load %arg7[%189, %c0_157, %c0_158] : memref<18x16x384xbf16, #tpu.memory_space<vmem>>, vector<4x16x384xbf16>
    %191 = vector.shape_cast %190 : vector<4x16x384xbf16> to vector<64x384xbf16>
    %c768_159 = arith.constant 768 : index
    %c0_160 = arith.constant 0 : index
    %192 = vector.load %arg4[%c768_159, %c0_160] : memref<1152x128xbf16, #tpu.memory_space<vmem>>, vector<384x128xbf16>
    %cst_161 = arith.constant dense<0.000000e+00> : vector<64x128xf32>
    %193 = tpu.matmul %191, %192, %cst_161 {dimension_numbers = #tpu.dot_dimension_numbers<[1], [0], [0], [1], [0, 0, 1, 1], [], []>} : vector<64x384xbf16>, vector<384x128xbf16>, vector<64x128xf32> -> vector<64x128xf32>
    %194 = arith.addf %187, %193 : vector<64x128xf32>
    %195 = vector.broadcast %10 : vector<1x128xf32> to vector<64x128xf32>
    %196 = arith.addf %194, %195 : vector<64x128xf32>
    %197 = arith.truncf %196 : vector<64x128xf32> to vector<64x128xbf16>
    %198 = vector.shape_cast %197 : vector<64x128xbf16> to vector<4x16x128xbf16>
    %c0_i32_162 = arith.constant 0 : i32
    %c0_i32_163 = arith.constant 0 : i32
    %c0_i32_164 = arith.constant 0 : i32
    %199 = tpu.memref_slice %arg6[%c0_i32_72, %c0_i32_162, %c0_i32_163, %c0_i32_164] : memref<1x16x16x128xbf16, #tpu.memory_space<vmem>> -> memref<1x16x16x128xbf16, #tpu.memory_space<vmem>>
    %200 = tpu.memref_squeeze %199 : memref<1x16x16x128xbf16, #tpu.memory_space<vmem>> -> memref<16x16x128xbf16, #tpu.memory_space<vmem>>
    %201 = arith.index_cast %175 : i32 to index
    %c0_165 = arith.constant 0 : index
    %c0_166 = arith.constant 0 : index
    %202 = vector.load %200[%201, %c0_165, %c0_166] : memref<16x16x128xbf16, #tpu.memory_space<vmem>>, vector<4x16x128xbf16>
    tpu.vector_store %200[%201, %c0_165, %c0_166], %198 {strides = array<i32>} : memref<16x16x128xbf16, #tpu.memory_space<vmem>>, vector<4x16x128xbf16>,
    %c4_i32_167 = arith.constant 4 : i32
    return
  }
  func.func @transform_0(%arg0: i32) -> (i32, i32, i32, i32) {
    %c0_i32 = arith.constant 0 : i32
    %c0_i32_0 = arith.constant 0 : i32
    %c0_i32_1 = arith.constant 0 : i32
    %c0_i32_2 = arith.constant 0 : i32
    return %arg0, %c0_i32, %c0_i32_0, %c0_i32_1 : i32, i32, i32, i32
  }
  func.func @transform_1(%arg0: i32) -> (i32, i32) {
    %c0_i32 = arith.constant 0 : i32
    %c0_i32_0 = arith.constant 0 : i32
    %c0_i32_1 = arith.constant 0 : i32
    return %c0_i32, %c0_i32_0 : i32, i32
  }
  func.func @transform_2(%arg0: i32) -> (i32, i32) {
    %c0_i32 = arith.constant 0 : i32
    %c0_i32_0 = arith.constant 0 : i32
    %c0_i32_1 = arith.constant 0 : i32
    return %c0_i32, %c0_i32_0 : i32, i32
  }
  func.func @transform_3(%arg0: i32) -> (i32, i32) {
    %c0_i32 = arith.constant 0 : i32
    %c0_i32_0 = arith.constant 0 : i32
    %c0_i32_1 = arith.constant 0 : i32
    return %c0_i32, %c0_i32_0 : i32, i32
  }
  func.func @transform_4(%arg0: i32) -> (i32, i32) {
    %c0_i32 = arith.constant 0 : i32
    %c0_i32_0 = arith.constant 0 : i32
    %c0_i32_1 = arith.constant 0 : i32
    return %c0_i32, %c0_i32_0 : i32, i32
  }
  func.func @transform_5(%arg0: i32) -> (i32, i32, i32, i32) {
    %c0_i32 = arith.constant 0 : i32
    %c0_i32_0 = arith.constant 0 : i32
    %c0_i32_1 = arith.constant 0 : i32
    %c0_i32_2 = arith.constant 0 : i32
    return %arg0, %c0_i32, %c0_i32_0, %c0_i32_1 : i32, i32, i32, i32
  }
}

</mosaic_0001>

<bundles_post_ra>
// kernel: double_conv.1
= control target key start
LH: loop header
LB: loop body
LE: loop exit
PB: predicated region body
PF: predicated region fallthrough
CT: control target
= control target key end

     0   :  { %s8906_s18 = smov 0   ;;  %s10954_s0 = inlined_call_operand.vmem [shape: bf16[2,16,16,36], index: 0, kind: input, shape index: {}]   ;;  %s10955_s1 = inlined_call_operand.vmem [shape: bf16[36,128], index: 1, kind: input, shape index: {}]   ;;  %s10956_s2 = inlined_call_operand.vmem [shape: f32[1,128], index: 2, kind: input, shape index: {}]   ;;  %s10957_s3 = inlined_call_operand.vmem [shape: bf16[1152,128], index: 3, kind: input, shape index: {}]   ;;  %s10958_s4 = inlined_call_operand.vmem [shape: f32[1,128], index: 4, kind: input, shape index: {}]   ;;  %s10959_s5 = inlined_call_operand.vmem [shape: bf16[2,16,16,128], index: 5, kind: output, shape index: {}]  }
   0x1 LB: > { %s6689_s19 = sadd.s32 4294967295, %s8873_s18   ;;  %p6693_p0 = scmp.ge.s32.totalorder %s8873_s18, 1  ;;  %s8873_s18 = sphi %s8906_s18, %s15_s18  }
   0x2   : > { %p187_p1 = scmp.lt.s32.totalorder %s8873_s18, 3 }
   0x4   : > { %p188_p2 = pnand %p6693_p0, %p187_p1 }
   0x5   : > { %p215_p3 = scmp.lt.s32.totalorder (!%p188_p2), %s6689_s19, 1 }
   0x6   : > { %191 = sbr.rel (%p188_p2) target bundleno = 835 (0x343), region = 40 }
   0xb   : > { %v8451_v0 = vld [vmem:[%s10955_s1 + $0x10] ss:$0 sps:$4 sm:$0x33]   ;;  %vm418_vm0 = vcmask 1041408   ;;  %v8452_v1 = vld [vmem:[%s10955_s1 + $0x8] sm:$0xff]   ;;  %s10973_s19 = smov (!%p215_p3, %s6689_s19), 1 }
   0xc   : > { %8438 = vmatprep.subr.msk.bf16.mxu0 %vm418_vm0, %v8451_v0  ;;  %v420_v2 = vsel %vm418_vm0, %v8451_v0, 0  ;;  %8439 = vmatprep.subr.msk.bf16.mxu1 %vm418_vm0, %v8451_v0  ;;  %v8453_v3 = vld [vmem:[%s10955_s1] sm:$0xff]   ;;  %s7281_s26 = sshll.u32 %s10973_s19, 7  ;;  %vm405_vm1 = vcmask 293888   ;;  %vm236_vm2 = vsmask.f32 256 }
   0xd   : > { %8095 = vmatpush3.bf16.msra.mxu0 %v420_v2  ;;  %8109 = vmatpush3.bf16.msra.mxu1 %v420_v2  ;;  %s8934_s29 = scalar_lea.vmem %s10954_s0, %s7281_s26  ;;  %v244_v10 = vld [vmem:[#allocation2 + $0x30] sm:$0x1]  ;;  %vm235_vm3 = vcmask 1040384   ;;  %v8464_v15 = vld [vmem:[%s10957_s3 + $0x138] sm:$0xff]   ;;  %v8474_v28 = vld [vmem:[%s10957_s3 + $0x128] sm:$0xff]   ;;  %vm292_vm5 = vcmask 1043459   ;;  %s10407_s16 = scalar_lea.vmem %s10959_s5, %s7281_s26 }
   0xe   : > { %8096 = vmatprep.subr.bf16.mxu0 %v8452_v1  ;;  %8110 = vmatprep.subr.bf16.mxu1 %v8452_v1  ;;  %v8454_v4 = vld [vmem:[%s8934_s29] sm:$0xff]   ;;  %v8455_v5 = vld [vmem:[%s8934_s29 + $0x8] sm:$0xff]   ;;  %v8456_v6 = vld [vmem:[%s8934_s29 + $0x10] sm:$0xff]   ;;  %vm293_vm6 = vsmask.f32 7950  ;;  %vm602_vm8 = vcmask 1043456  }
   0xf   : > { %8100 = vmatprep.mubr.msk.bf16.mxu0 %vm405_vm1, %v8454_v4  ;;  %v8458_v7 = vld [vmem:[%s8934_s29 + $0x20] sm:$0xff]   ;;  %v8459_v8 = vld [vmem:[%s8934_s29 + $0x28] sm:$0xff]   ;;  %v8460_v9 = vld [vmem:[%s8934_s29 + $0x30] sm:$0xff]   ;;  %vm603_vm9 = vsmask.f32 7938 }
  0x10   : > { %8114 = vmatprep.mubr.msk.bf16.mxu1 %vm405_vm1, %v8458_v7  ;;  %v8457_v11 = vld [vmem:[%s8934_s29 + $0x18] sm:$0xff]   ;;  %v8462_v13 = vld [vmem:[%s8934_s29 + $0x40] sm:$0xff]   ;;  %vm8958_vm4 = vmand %vm235_vm3, %vm236_vm2  ;;  %vm621_vm10 = vsmask.f32 3328  ;;  %vm528_vm11 = vsmask.f32 4368 }
  0x11   : > { %8097 = vmatpush3.bf16.msra.mxu0 %v8452_v1  ;;  %8111 = vmatpush3.bf16.msra.mxu1 %v8452_v1  ;;  %v8461_v12 = vld [vmem:[%s8934_s29 + $0x38] sm:$0xff]   ;;  %v8466_v14 = vld [vmem:[%s8934_s29 + $0x60] sm:$0xff]   ;;  %v245_v18 = vsel %vm8958_vm4, 0, %v244_v10  ;;  %v8463_v19 = vld [vmem:[%s8934_s29 + $0x48] sm:$0xff]   ;;  %vm622_vm12 = vsmask.f32 7440 }
  0x12   : > { %8098 = vmatprep.subr.bf16.mxu0 %v8453_v3  ;;  %8112 = vmatprep.subr.bf16.mxu1 %v8453_v3  ;;  %v8467_v17 = vld [vmem:[%s10957_s3 + $0x178] sm:$0xff]   ;;  %246 = vst [vmem:[#allocation2 + $0x30] sm:$0x1] %v245_v18  ;;  %v8468_v20 = vld [vmem:[%s8934_s29 + $0x68] sm:$0xff]   ;;  %v8469_v22 = vld [vmem:[%s10957_s3 + $0x130] sm:$0xff]  }
  0x13   : > { %v8465_v21 = vld [vmem:[%s10957_s3 + $0xf8] sm:$0xff]   ;;  %v8470_v23 = vld [vmem:[%s10957_s3 + $0xf0] sm:$0xff]   ;;  %v8475_v30 = vld [vmem:[%s10957_s3 + $0xe8] sm:$0xff]  }
  0x14   : > { %v8472_v24 = vld [vmem:[%s10957_s3 + $0x170] sm:$0xff]   ;;  %v8473_v26 = vld [vmem:[%s8934_s29 + $0x58] sm:$0xff]   ;;  %v8476_v31 = vld [vmem:[%s10957_s3 + $0x168] sm:$0xff]  }
  0x15   : > { %8099 = vmatpush3.bf16.msra.mxu0 %v8453_v3  ;;  %8113 = vmatpush3.bf16.msra.mxu1 %v8453_v3  ;;  %v8471_v25 = vld [vmem:[%s8934_s29 + $0x50] sm:$0xff]   ;;  %v241_v27 = vld [vmem:[#allocation2 + $0x18] sm:$0x1]  ;;  %vm9002_vm7 = vmand %vm292_vm5, %vm293_vm6 }
  0x16   : > { %8440 = vmatprep.subr.msk.bf16.mxu0 %vm418_vm0, %v8451_v0  ;;  %8441 = vmatprep.subr.msk.bf16.mxu1 %vm418_vm0, %v8451_v0  ;;  %v242_v29 = vsel %vm8958_vm4, 0, %v241_v27  ;;  %v301_v33 = vld [vmem:[#allocation2 + $0x44] sm:$0x8]  ;;  %v298_v35 = vld [vmem:[#allocation2 + $0x2c] sm:$0x8]  ;;  %v8480_v44 = vld [vmem:[%s10957_s3 + $0x118] sm:$0xff]  }
  0x17   : > { %243 = vst [vmem:[#allocation2 + $0x18] sm:$0x1] %v242_v29  ;;  %v302_v34 = vsel %vm9002_vm7, 0, %v301_v33  ;;  %v8477_v36 = vld [vmem:[%s10957_s3 + $0x120] sm:$0xff]   ;;  %v299_v37 = vsel %vm9002_vm7, 0, %v298_v35  ;;  %v8481_v46 = vld [vmem:[%s10957_s3 + $0xd8] sm:$0xff]   ;;  %vm9118_vm13 = vmand %vm602_vm8, %vm603_vm9 }
  0x18   : > { %8101 = vmatmul.mubr.msk.bf16.vlgmr.msra.gmra.mxu0 %vm405_vm1, %v8455_v5  ;;  %8115 = vmatmul.mubr.msk.bf16.vlgmr.msra.gmra.mxu1 %vm405_vm1, %v8459_v8  ;;  %303 = vst [vmem:[#allocation2 + $0x44] sm:$0x8] %v302_v34  ;;  %v8478_v38 = vld [vmem:[%s10957_s3 + $0xe0] sm:$0xff]   ;;  %300 = vst [vmem:[#allocation2 + $0x2c] sm:$0x8] %v299_v37  ;;  %v8482_v47 = vld [vmem:[%s10957_s3 + $0x158] sm:$0xff]  }
  0x19   : > { %8104 = vmatprep.mubr.msk.bf16.mxu0 %vm405_vm1, %v8456_v6  ;;  %8118 = vmatprep.mubr.msk.bf16.mxu1 %vm405_vm1, %v8460_v9  ;;  %v8479_v39 = vld [vmem:[%s10957_s3 + $0x160] sm:$0xff]   ;;  %v247_v42 = vld [vmem:[#allocation2 + $0x48] sm:$0x1]  ;;  %v307_v45 = vld [vmem:[#allocation2 + $0x74] sm:$0x8]  ;;  %v8875_v0 = vmov 0  }
  0x1a   : > { %8123 = vmatpush3.bf16.msra.mxu0 %v420_v2  ;;  %8137 = vmatpush3.bf16.msra.mxu1 %v420_v2  ;;  %v250_v40 = vld [vmem:[#allocation2 + $0x60] sm:$0x1]  ;;  %v248_v43 = vsel %vm8958_vm4, 0, %v247_v42  ;;  %v308_v48 = vsel %vm9002_vm7, 0, %v307_v45  ;;  %v8483_v49 = vld [vmem:[%s10957_s3 + $0x110] sm:$0xff]   ;;  %v8486_v54 = vld [vmem:[%s10957_s3 + $0x108] sm:$0xff]  }
  0x1b   : > { %8124 = vmatprep.subr.bf16.mxu0 %v8452_v1  ;;  %8138 = vmatprep.subr.bf16.mxu1 %v8452_v1  ;;  %v251_v41 = vsel %vm8958_vm4, 0, %v250_v40  ;;  %249 = vst [vmem:[#allocation2 + $0x48] sm:$0x1] %v248_v43  ;;  %309 = vst [vmem:[#allocation2 + $0x74] sm:$0x8] %v308_v48  ;;  %v8484_v50 = vld [vmem:[%s10957_s3 + $0xd0] sm:$0xff]  }
  0x1c   : > { %252 = vst [vmem:[#allocation2 + $0x60] sm:$0x1] %v251_v41  ;;  %v8485_v51 = vld [vmem:[%s10957_s3 + $0x150] sm:$0xff]   ;;  %v304_v52 = vld [vmem:[#allocation2 + $0x5c] sm:$0x8]  ;;  %v8487_v55 = vld [vmem:[%s10957_s3 + $0xc8] sm:$0xff]  }
  0x1d   : > { %v305_v53 = vsel %vm9002_vm7, 0, %v304_v52  ;;  %v8488_v56 = vld [vmem:[%s8934_s29 + $0x70] sm:$0xff]   ;;  %v8489_v57 = vld [vmem:[%s10957_s3 + $0x148] sm:$0xff]   ;;  %v8490_v58 = vld [vmem:[%s8934_s29 + $0x78] sm:$0xff]   ;;  %226 = vst [vmem:[#allocation2] sm:$0xff] %v8875_v0 }
  0x1e   : > { %8125 = vmatpush3.bf16.msra.mxu0 %v8452_v1  ;;  %8139 = vmatpush3.bf16.msra.mxu1 %v8452_v1  ;;  %306 = vst [vmem:[#allocation2 + $0x5c] sm:$0x8] %v305_v53  ;;  %v8491_v59 = vld [vmem:[%s10957_s3 + $0x100] sm:$0xff]   ;;  %v8497_v62 = vld [vmem:[%s10957_s3 + $0x78] sm:$0xff]   ;;  %228 = vst [vmem:[#allocation2 + $0xc] sm:$0xff] %v8875_v0 }
  0x1f   : > { %8126 = vmatprep.subr.bf16.mxu0 %v8453_v3  ;;  %8140 = vmatprep.subr.bf16.mxu1 %v8453_v3  ;;  %v8492_v60 = vld [vmem:[%s10957_s3 + $0xc0] sm:$0xff]   ;;  %v9073_v63 = vld [vmem:[%s10957_s3 + $0xb8] sm:$0xff]   ;;  %227 = vst [vmem:[#allocation2 + $0x8] sm:$0xf] %v8875_v0  ;;  %229 = vst [vmem:[#allocation2 + $0x14] sm:$0xf] %v8875_v0 }
  0x20   : > { %8105 = vmatmul.mubr.msk.bf16.gmra.mxu0 %vm405_vm1, %v8457_v11  ;;  %8119 = vmatmul.mubr.msk.bf16.gmra.mxu1 %vm405_vm1, %v8461_v12  ;;  %v8493_v61 = vld [vmem:[%s10957_s3 + $0x140] sm:$0xff]   ;;  %231 = vst [vmem:[#allocation2 + $0x198] sm:$0xff] %v8875_v0  ;;  %232 = vst [vmem:[#allocation2 + $0x1a0] sm:$0xf] %v8875_v0  ;;  %v256_v5 = vld [vmem:[#allocation2 + $0x90] sm:$0x1] }
  0x21   : > { %8128 = vmatprep.mubr.msk.bf16.mxu0 %vm405_vm1, %v8462_v13  ;;  %8142 = vmatprep.mubr.msk.bf16.mxu1 %vm405_vm1, %v8466_v14  ;;  %234 = vst [vmem:[#allocation2 + $0x1ac] sm:$0xf] %v8875_v0  ;;  %v257_v6 = vsel %vm8958_vm4, 0, %v256_v5  ;;  %v253_v7 = vld [vmem:[#allocation2 + $0x78] sm:$0x1]  ;;  %vm9136_vm14 = vmor %vm621_vm10, %vm622_vm12 }
  0x22   : > { %8127 = vmatpush3.bf16.msra.mxu0 %v8453_v3  ;;  %8141 = vmatpush3.bf16.msra.mxu1 %v8453_v3  ;;  %258 = vst [vmem:[#allocation2 + $0x90] sm:$0x1] %v257_v6  ;;  %v254_v8 = vsel %vm8958_vm4, 0, %v253_v7  ;;  %v313_v9 = vld [vmem:[#allocation2 + $0xa4] sm:$0x8]  ;;  %vm9142_vm15 = vmor %vm236_vm2, %vm528_vm11  ;;  %v8764_v32 = vld [vmem:[%s10957_s3 + $0x178] sm:$0xff]  }
  0x23   : > { %7470 = vmatprep.subr.bf16.mxu0 %v8464_v15  ;;  %8150 = vmatprep.subr.bf16.mxu1 %v8467_v17  ;;  %255 = vst [vmem:[#allocation2 + $0x78] sm:$0x1] %v254_v8  ;;  %v314_v10 = vsel %vm9002_vm7, 0, %v313_v9  ;;  %v310_v11 = vld [vmem:[#allocation2 + $0x8c] sm:$0x8]  ;;  %vm9154_vm0 = vmand %vm602_vm8, %vm621_vm10  ;;  %v8592_v9 = vld [vmem:[%s10957_s3 + $0xc0] sm:$0xff]  }
  0x24   : > { %v238_v1 = vld [vmem:[#allocation2] sm:$0x1]  ;;  %315 = vst [vmem:[#allocation2 + $0xa4] sm:$0x8] %v314_v10  ;;  %v311_v12 = vsel %vm9002_vm7, 0, %v310_v11 }
  0x25   : > { %v239_v2 = vsel %vm8958_vm4, 0, %v238_v1  ;;  %312 = vst [vmem:[#allocation2 + $0x8c] sm:$0x8] %v311_v12  ;;  %v262_v13 = vld [vmem:[#allocation2 + $0xc0] sm:$0x1] }
  0x26   : > { %240 = vst [vmem:[#allocation2] sm:$0x1] %v239_v2  ;;  %v295_v3 = vld [vmem:[#allocation2 + $0x14] sm:$0x8]  ;;  %v263_v14 = vsel %vm8958_vm4, 0, %v262_v13 }
  0x27   : > { %v296_v4 = vsel %vm9002_vm7, 0, %v295_v3  ;;  %264 = vst [vmem:[#allocation2 + $0xc0] sm:$0x1] %v263_v14  ;;  %v259_v15 = vld [vmem:[#allocation2 + $0xa8] sm:$0x1] }
  0x28   : > { %8129 = vmatmul.mubr.msk.bf16.vlgmr.msra.gmra.mxu0 %vm405_vm1, %v8463_v19  ;;  %8143 = vmatmul.mubr.msk.bf16.vlgmr.msra.gmra.mxu1 %vm405_vm1, %v8468_v20  ;;  %297 = vst [vmem:[#allocation2 + $0x14] sm:$0x8] %v296_v4  ;;  %v319_v18 = vld [vmem:[#allocation2 + $0xd4] sm:$0x8]  ;;  %v316_v20 = vld [vmem:[#allocation2 + $0xbc] sm:$0x8] }
  0x29   : > { %7471 = vmatpush3.bf16.msra.mxu0 %v8465_v21  ;;  %8151 = vmatpush3.bf16.msra.mxu1 %v8467_v17  ;;  %v260_v17 = vsel %vm8958_vm4, 0, %v259_v15  ;;  %v320_v19 = vsel %vm9002_vm7, 0, %v319_v18  ;;  %v317_v21 = vsel %vm9002_vm7, 0, %v316_v20  ;;  %v609_v40 = vld [vmem:[#allocation2 + $0x30] sm:$0xf] }
  0x2a   : > { %7472 = vmatprep.subr.bf16.mxu0 %v8469_v22  ;;  %8152 = vmatprep.subr.bf16.mxu1 %v8472_v24  ;;  %261 = vst [vmem:[#allocation2 + $0xa8] sm:$0x1] %v260_v17  ;;  %321 = vst [vmem:[#allocation2 + $0xd4] sm:$0x8] %v320_v19  ;;  %v9099_v22 = vld [vmem:[%s10956_s2] ss:$0 sm:$0xff] }
  0x2b   : > { %8132 = vmatprep.mubr.msk.bf16.mxu0 %vm405_vm1, %v8471_v25  ;;  %8146 = vmatprep.mubr.msk.bf16.mxu1 %vm405_vm1, %v8488_v56  ;;  %318 = vst [vmem:[#allocation2 + $0xbc] sm:$0x8] %v317_v21  ;;  %v605_v52 = vld [vmem:[#allocation2 + $0x18] sm:$0xf]  ;;  %v674_v15 = vld [vmem:[#allocation2 + $0x44] sm:$0xf] }
  0x2d   : > { %7473 = vmatpush3.bf16.msra.mxu0 %v8470_v23  ;;  %8153 = vmatpush3.bf16.msra.mxu1 %v8472_v24 }
  0x2e   : > { %7474 = vmatprep.subr.bf16.mxu0 %v8474_v28  ;;  %8154 = vmatprep.subr.bf16.mxu1 %v8476_v31 }
  0x30   : > { %8133 = vmatmul.mubr.msk.bf16.gmra.mxu0 %vm405_vm1, %v8473_v26  ;;  %8147 = vmatmul.mubr.msk.bf16.gmra.mxu1 %vm405_vm1, %v8490_v58 }
  0x31   : > { %7475 = vmatpush3.bf16.msra.mxu0 %v8475_v30  ;;  %8155 = vmatpush3.bf16.msra.mxu1 %v8476_v31 }
  0x32   : > { %7476 = vmatprep.subr.bf16.mxu0 %v8477_v36  ;;  %8156 = vmatprep.subr.bf16.mxu1 %v8479_v39 }
  0x35   : > { %7477 = vmatpush3.bf16.msra.mxu0 %v8478_v38  ;;  %8157 = vmatpush3.bf16.msra.mxu1 %v8479_v39 }
  0x36   : > { %7478 = vmatprep.subr.bf16.mxu0 %v8480_v44  ;;  %8158 = vmatprep.subr.bf16.mxu1 %v8482_v47 }
  0x39   : > { %7479 = vmatpush3.bf16.msra.mxu0 %v8481_v46  ;;  %8159 = vmatpush3.bf16.msra.mxu1 %v8482_v47 }
  0x3a   : > { %7480 = vmatprep.subr.bf16.mxu0 %v8483_v49  ;;  %8160 = vmatprep.subr.bf16.mxu1 %v8485_v51 }
  0x3d   : > { %7481 = vmatpush3.bf16.msra.mxu0 %v8484_v50  ;;  %8161 = vmatpush3.bf16.msra.mxu1 %v8485_v51 }
  0x3e   : > { %7482 = vmatprep.subr.bf16.mxu0 %v8486_v54  ;;  %8162 = vmatprep.subr.bf16.mxu1 %v8489_v57 }
  0x41   : > { %7483 = vmatpush3.bf16.msra.mxu0 %v8487_v55  ;;  %8163 = vmatpush3.bf16.msra.mxu1 %v8489_v57 }
  0x42   : > { %7484 = vmatprep.subr.bf16.mxu0 %v8491_v59  ;;  %8164 = vmatprep.subr.bf16.mxu1 %v8493_v61 }
  0x45   : > { %7485 = vmatpush3.bf16.msra.mxu0 %v8492_v60  ;;  %8165 = vmatpush3.bf16.msra.mxu1 %v8493_v61 }
  0x46   : > { %7522 = vmatprep.subr.bf16.mxu0 %v8497_v62  ;;  %8174 = vmatprep.subr.bf16.mxu1 %v9073_v63 }
  0xd8   : > { %v8102_v23 = vpop.f32.mrf.mxu0  ;;  %v8116_v24 = vpop.f32.mrf.mxu1 }
  0xd9   : > { %v465_v25 = vadd.f32 %v8102_v23, %v9099_v22  ;;  %v769_v26 = vadd.f32 %v8116_v24, %v9099_v22 }
  0xda   : > { %v456_v27 = vpop.f32.mrf.mxu0  ;;  %v760_v28 = vpop.f32.mrf.mxu1 }
  0xdb   : > { %v7285_v29 = vpack.c.bf16 %v465_v25, %v465_v25  ;;  %v457_v30 = vadd.f32 %v9099_v22, %v456_v27  ;;  %v9104_v31 = vpack.c.bf16 %v769_v26, %v769_v26  ;;  %v761_v33 = vadd.f32 %v9099_v22, %v760_v28  ;;  %v8595_v26 = vld [vmem:[%s10957_s3 + $0x38] sm:$0xff]  }
  0xdc   : > { %v8103_v34 = vpop.f32.mrf.mxu0  ;;  %v8117_v39 = vpop.f32.mrf.mxu1 }
  0xdd   : > { %522 = vst [vmem:[#allocation2 + $0x34] sm:$0xf] %v7285_v29  ;;  %v547_v35 = vshrl.u32 %v7285_v29, 16  ;;  %v550_v36 = vshll.u32 %v7285_v29, 16  ;;  %v7283_v37 = vpack.c.bf16 %v457_v30, %v457_v30  ;;  %v468_v38 = vadd.f32 %v8103_v34, %v9099_v22  ;;  %826 = vst [vmem:[#allocation2 + $0x94] sm:$0xf] %v9104_v31 }
  0xde   : > { %v459_v41 = vpop.f32.mrf.mxu0  ;;  %v849_v42 = vshrl.u32 %v9104_v31, 16  ;;  %v852_v43 = vshll.u32 %v9104_v31, 16  ;;  %v9111_v44 = vpack.c.bf16 %v761_v33, %v761_v33  ;;  %v9114_v45 = vadd.f32 %v8117_v39, %v9099_v22  ;;  %v9158_v33 = vpop.f32.mrf.mxu1  ;;  %v8509_v31 = vld [vmem:[%s10957_s3 + $0x28] sm:$0xff]  }
  0xdf   : > { %v549_v46 = vrot.slane %v547_v35, 7  ;;  %v633_v47 = vrot.slane %v547_v35, 4  ;;  %v634_v48 = vrot.slane %v550_v36, 5  ;;  %520 = vst [vmem:[#allocation2 + $0x1c] sm:$0xf] %v7283_v37  ;;  %v531_v49 = vshrl.u32 %v7283_v37, 16 }
  0xe0   : > { %v534_v51 = vshll.u32 %v7283_v37, 16  ;;  %v7286_v53 = vpack.c.bf16 %v468_v38, %v468_v38  ;;  %v460_v54 = vadd.f32 %v9099_v22, %v459_v41  ;;  %v8106_v55 = vpop.f32.mrf.mxu0  ;;  %v9125_v56 = vrot.slane %v849_v42, 7  ;;  %824 = vst [vmem:[#allocation2 + $0x7c] sm:$0xf] %v9111_v44 }
  0xe1   : > { %v552_v57 = vor.u32 %v550_v36, %v549_v46  ;;  %v553_v58 = vrot.slane %v549_v46, 4  ;;  %v635_v59 = vor.u32 %v634_v48, %v633_v47  ;;  %v9128_v60 = vrot.slane %v531_v49, 7  ;;  %v8120_v46 = vpop.f32.mrf.mxu1  ;;  %v670_v48 = vld [vmem:[#allocation2 + $0x2c] sm:$0xf] }
  0xe2   : > { %v624_v61 = vrot.slane %v531_v49, 4  ;;  %v625_v62 = vrot.slane %v534_v51, 5  ;;  %523 = vst [vmem:[#allocation2 + $0x40] sm:$0xf] %v7286_v53  ;;  %v555_v0 = vshrl.u32 %v7286_v53, 16  ;;  %v558_v1 = vshll.u32 %v7286_v53, 16  ;;  %v472_v2 = vpop.f32.mrf.mxu0 }
  0xe3   : > { %v610_v3 = vsel %vm9118_vm13, %v552_v57, %v609_v40  ;;  %v636_v4 = vrot.slane %v635_v59, 4  ;;  %v536_v5 = vor.u32 %v534_v51, %v9128_v60  ;;  %v537_v6 = vrot.slane %v9128_v60, 4  ;;  %v617_v51 = vld [vmem:[#allocation2 + $0x60] sm:$0xf] }
  0xe4   : > { %611 = vst [vmem:[#allocation2 + $0x30] sm:$0xf] %v610_v3  ;;  %v626_v8 = vor.u32 %v625_v62, %v624_v61  ;;  %v557_v10 = vrot.slane %v555_v0, 7  ;;  %v637_v11 = vrot.slane %v558_v1, 5  ;;  %v639_v12 = vrot.slane %v555_v0, 4  ;;  %v8107_v13 = vpop.f32.mrf.mxu0 }
  0xe5   : > { %v606_v14 = vsel %vm9118_vm13, %v536_v5, %v605_v52  ;;  %v7284_v17 = vpack.c.bf16 %v460_v54, %v460_v54  ;;  %v481_v18 = vadd.f32 %v8106_v55, %v9099_v22  ;;  %v473_v19 = vadd.f32 %v9099_v22, %v472_v2  ;;  %v613_v62 = vld [vmem:[#allocation2 + $0x48] sm:$0xf]  ;;  %v908_v5 = vld [vmem:[#allocation2 + $0x90] sm:$0xf] }
  0xe6   : > { %607 = vst [vmem:[#allocation2 + $0x18] sm:$0xf] %v606_v14  ;;  %v627_v20 = vrot.slane %v626_v8, 4  ;;  %v560_v21 = vor.u32 %v558_v1, %v557_v10  ;;  %v638_v23 = vsel %vm9136_vm14, %v636_v4, %v637_v11  ;;  %v640_v24 = vor.u32 %v639_v12, %v637_v11  ;;  %v475_v25 = vpop.f32.mrf.mxu0  ;;  %v9176_v8 = vpop.f32.mrf.mxu1 }
  0xe7   : > { %673 = vst [vmem:[#allocation2 + $0x38] sm:$0xf] %v638_v23  ;;  %521 = vst [vmem:[#allocation2 + $0x28] sm:$0xf] %v7284_v17  ;;  %v539_v27 = vshrl.u32 %v7284_v17, 16  ;;  %v542_v28 = vshll.u32 %v7284_v17, 16  ;;  %v7289_v29 = vpack.c.bf16 %v481_v18, %v481_v18  ;;  %v7287_v30 = vpack.c.bf16 %v473_v19, %v473_v19 }
  0xe8   : > { %v561_v34 = vsel %vm9142_vm15, %v553_v58, %v560_v21  ;;  %v641_v35 = vrot.slane %v640_v24, 4  ;;  %v484_v36 = vadd.f32 %v8107_v13, %v9099_v22  ;;  %v476_v37 = vadd.f32 %v9099_v22, %v475_v25 }
  0xe9   : > { %612 = vst [vmem:[#allocation2 + $0x3c] sm:$0xf] %v561_v34  ;;  %v541_v38 = vrot.slane %v539_v27, 7  ;;  %v628_v39 = vrot.slane %v542_v28, 5  ;;  %v630_v40 = vrot.slane %v539_v27, 4  ;;  %v579_v41 = vshrl.u32 %v7289_v29, 16 }
  0xea   : > { %526 = vst [vmem:[#allocation2 + $0x64] sm:$0xf] %v7289_v29  ;;  %524 = vst [vmem:[#allocation2 + $0x4c] sm:$0xf] %v7287_v30  ;;  %v675_v47 = vsel %vm9154_vm0, %v641_v35, %v674_v15  ;;  %v582_v49 = vshll.u32 %v7289_v29, 16  ;;  %v563_v52 = vshrl.u32 %v7287_v30, 16  ;;  %v7290_v15 = vpack.c.bf16 %v484_v36, %v484_v36 }
  0xeb   : > { %v566_v53 = vshll.u32 %v7287_v30, 16  ;;  %676 = vst [vmem:[#allocation2 + $0x44] sm:$0xf] %v675_v47  ;;  %v544_v54 = vor.u32 %v542_v28, %v541_v38  ;;  %v629_v55 = vsel %vm9136_vm14, %v627_v20, %v628_v39  ;;  %v631_v57 = vor.u32 %v630_v40, %v628_v39  ;;  %v8121_v28 = vpop.f32.mrf.mxu1  ;;  %v8498_v40 = vld [vmem:[%s10957_s3 + $0x38] sm:$0xff]  }
  0xec   : > { %v9168_v58 = vrot.slane %v579_v41, 7  ;;  %668 = vst [vmem:[#allocation2 + $0x20] sm:$0xf] %v629_v55  ;;  %v651_v59 = vrot.slane %v579_v41, 4  ;;  %v652_v60 = vrot.slane %v582_v49, 5  ;;  %v9170_v61 = vrot.slane %v563_v52, 7 }
  0xed   : > { %v642_v0 = vrot.slane %v563_v52, 4  ;;  %v545_v1 = vsel %vm9142_vm15, %v537_v6, %v544_v54  ;;  %v632_v2 = vrot.slane %v631_v57, 4  ;;  %v643_v13 = vrot.slane %v566_v53, 5  ;;  %527 = vst [vmem:[#allocation2 + $0x70] sm:$0xf] %v7290_v15 }
  0xee   : > { %v584_v3 = vor.u32 %v582_v49, %v9168_v58  ;;  %v585_v4 = vrot.slane %v9168_v58, 4  ;;  %608 = vst [vmem:[#allocation2 + $0x24] sm:$0xf] %v545_v1  ;;  %v653_v10 = vor.u32 %v652_v60, %v651_v59  ;;  %v568_v11 = vor.u32 %v566_v53, %v9170_v61  ;;  %v682_v41 = vld [vmem:[#allocation2 + $0x74] sm:$0xf]  ;;  %v779_v59 = vpop.f32.mrf.mxu1 }
  0xef   : > { %v569_v12 = vrot.slane %v9170_v61, 4  ;;  %v671_v14 = vsel %vm9154_vm0, %v632_v2, %v670_v48  ;;  %v7288_v17 = vpack.c.bf16 %v476_v37, %v476_v37  ;;  %v644_v20 = vor.u32 %v643_v13, %v642_v0  ;;  %v678_v55 = vld [vmem:[#allocation2 + $0x5c] sm:$0xf] }
  0xf0   : > { %v618_v6 = vsel %vm9118_vm13, %v584_v3, %v617_v51  ;;  %672 = vst [vmem:[#allocation2 + $0x2c] sm:$0xf] %v671_v14  ;;  %v654_v18 = vrot.slane %v653_v10, 4  ;;  %v614_v19 = vsel %vm9118_vm13, %v568_v11, %v613_v62  ;;  %v854_v21 = vor.u32 %v852_v43, %v9125_v56  ;;  %v9207_v58 = vld [vmem:[#allocation2 + $0x1c] ss:$12 sps:$4 sm:$0xff]   ;;  %v8505_v10 = vld [vmem:[%s10957_s3 + $0x30] sm:$0xff]  }
  0xf1   : > { %619 = vst [vmem:[#allocation2 + $0x60] sm:$0xf] %v618_v6  ;;  %615 = vst [vmem:[#allocation2 + $0x48] sm:$0xf] %v614_v19  ;;  %v587_v23 = vshrl.u32 %v7290_v15, 16  ;;  %v590_v24 = vshll.u32 %v7290_v15, 16  ;;  %v9194_v35 = vpack.c.bf16 %v9114_v45, %v9114_v45  ;;  %v764_v49 = vadd.f32 %v9099_v22, %v9158_v33  ;;  %1938 = vmatprep.mubr.bf16.mxu0 %v9207_v58 }
  0xf2   : > { %525 = vst [vmem:[#allocation2 + $0x58] sm:$0xf] %v7288_v17  ;;  %v571_v25 = vshrl.u32 %v7288_v17, 16  ;;  %v574_v27 = vshll.u32 %v7288_v17, 16  ;;  %v645_v29 = vrot.slane %v644_v20, 4  ;;  %v855_v30 = vrot.slane %v9125_v56, 4 }
  0xf3   : > { %v909_v34 = vsel %vm9118_vm13, %v854_v21, %v908_v5  ;;  %v589_v36 = vrot.slane %v587_v23, 7  ;;  %v655_v37 = vrot.slane %v590_v24, 5  ;;  %v657_v38 = vrot.slane %v587_v23, 4  ;;  %827 = vst [vmem:[#allocation2 + $0xa0] sm:$0xf] %v9194_v35  ;;  %v8507_v20 = vld [vmem:[%s10957_s3 + $0x68] sm:$0xff]  }
  0xf4   : > { %v573_v39 = vrot.slane %v571_v25, 7  ;;  %910 = vst [vmem:[#allocation2 + $0x90] sm:$0xf] %v909_v34  ;;  %v646_v47 = vrot.slane %v574_v27, 5  ;;  %v648_v48 = vrot.slane %v571_v25, 4  ;;  %v785_v45 = vadd.f32 %v8120_v46, %v9099_v22  ;;  %v8504_v46 = vld [vmem:[%s10957_s3 + $0x70] sm:$0xff]  }
  0xf5   : > { %v592_v51 = vor.u32 %v590_v24, %v589_v36  ;;  %v656_v52 = vsel %vm9136_vm14, %v654_v18, %v655_v37  ;;  %v658_v53 = vor.u32 %v657_v38, %v655_v37  ;;  %v9205_v57 = vld [vmem:[#allocation2 + $0x18] ss:$12 sps:$4 sm:$0xff]   ;;  %v9211_v33 = vld [vmem:[#allocation2 + $0x34] ss:$12 sps:$4 sm:$0xff]   ;;  %v9216_v62 = vpack.c.bf16 %v764_v49, %v764_v49  ;;  %v8513_v37 = vld [vmem:[%s10957_s3 + $0xa8] sm:$0xff]  }
  0xf6   : > { %v576_v54 = vor.u32 %v574_v27, %v573_v39  ;;  %681 = vst [vmem:[#allocation2 + $0x68] sm:$0xf] %v656_v52  ;;  %v647_v60 = vsel %vm9136_vm14, %v645_v29, %v646_v47  ;;  %v649_v61 = vor.u32 %v648_v48, %v646_v47  ;;  %v9218_v0 = vpack.c.bf16 %v785_v45, %v785_v45  ;;  %v8503_v15 = vld [vmem:[#allocation2 + $0x38] ss:$12 sps:$4 sm:$0xff]   ;;  %v9261_v29 = vld [vmem:[#allocation2 + $0x30] ss:$12 sps:$4 sm:$0xff]  }
  0xf7   : > { %v593_v1 = vsel %vm9142_vm15, %v585_v4, %v592_v51  ;;  %v659_v2 = vrot.slane %v658_v53, 4  ;;  %677 = vst [vmem:[#allocation2 + $0x50] sm:$0xf] %v647_v60  ;;  %v8501_v5 = vld [vmem:[#allocation2 + $0x20] ss:$12 sps:$4 sm:$0xff]   ;;  %1939 = vmatmul.mubr.bf16.vlgmr.msra.gmra.mxu0 %v9205_v57  ;;  %v8506_v4 = vld [vmem:[%s10957_s3 + $0xb0] sm:$0xff]   ;;  %v788_v13 = vadd.f32 %v8121_v28, %v9099_v22  ;;  %v9238_v14 = vadd.f32 %v9099_v22, %v779_v59 }
  0xf8   : > { %v577_v3 = vsel %vm9142_vm15, %v569_v12, %v576_v54  ;;  %620 = vst [vmem:[#allocation2 + $0x6c] sm:$0xf] %v593_v1  ;;  %v650_v11 = vrot.slane %v649_v61, 4  ;;  %825 = vst [vmem:[#allocation2 + $0x88] sm:$0xf] %v9216_v62  ;;  %v777_v12 = vadd.f32 %v9099_v22, %v9176_v8  ;;  %7523 = vmatpush3.bf16.msra.mxu0 %v8498_v40  ;;  %1946 = vmatprep.mubr.bf16.mxu0 %v9211_v33  ;;  %v8516_v52 = vld [vmem:[%s10957_s3 + $0x20] sm:$0xff]  }
  0xf9   : > { %616 = vst [vmem:[#allocation2 + $0x54] sm:$0xf] %v577_v3  ;;  %830 = vst [vmem:[#allocation2 + $0xc4] sm:$0xf] %v9218_v0  ;;  %v683_v6 = vsel %vm9154_vm0, %v659_v2, %v682_v41  ;;  %v929_v17 = vrot.slane %v849_v42, 4  ;;  %v930_v18 = vrot.slane %v852_v43, 5  ;;  %8166 = vmatprep.mubr.bf16.mxu1 %v8501_v5  ;;  %7524 = vmatprep.subr.bf16.mxu0 %v8504_v46 }
  0xfa   : > { %v833_v8 = vshrl.u32 %v9111_v44, 16  ;;  %684 = vst [vmem:[#allocation2 + $0x74] sm:$0xf] %v683_v6  ;;  %v679_v19 = vsel %vm9154_vm0, %v650_v11, %v678_v55  ;;  %v836_v21 = vshll.u32 %v9111_v44, 16  ;;  %v857_v23 = vshrl.u32 %v9194_v35, 16  ;;  %8167 = vmatmul.mubr.bf16.vlgmr.msra.gmra.mxu1 %v8503_v15  ;;  %v8517_v60 = vld [vmem:[%s10957_s3 + $0xa0] sm:$0xff]  }
  0xfb   : > { %v860_v42 = vshll.u32 %v9194_v35, 16  ;;  %680 = vst [vmem:[#allocation2 + $0x5c] sm:$0xf] %v679_v19  ;;  %v931_v43 = vor.u32 %v930_v18, %v929_v17  ;;  %v904_v25 = vld [vmem:[#allocation2 + $0x78] sm:$0xf]  ;;  %v841_v28 = vshrl.u32 %v9216_v62, 16  ;;  %8175 = vmatpush3.bf16.msra.mxu1 %v9073_v63  ;;  %v9279_v59 = vpack.c.bf16 %v777_v12, %v777_v12 }
  0xfc   : > { %v835_v24 = vrot.slane %v833_v8, 7  ;;  %v920_v27 = vrot.slane %v833_v8, 4  ;;  %v921_v44 = vrot.slane %v836_v21, 5  ;;  %v859_v34 = vrot.slane %v857_v23, 7  ;;  %7525 = vmatpush3.bf16.msra.mxu0 %v8505_v10  ;;  %8176 = vmatprep.subr.bf16.mxu1 %v8506_v4  ;;  %v8515_v63 = vld [vmem:[%s10957_s3 + $0x60] sm:$0xff]   ;;  %v8518_v61 = vld [vmem:[%s10957_s3 + $0x58] sm:$0xff]  }
  0xfd   : > { %v933_v36 = vrot.slane %v860_v42, 5  ;;  %v935_v35 = vrot.slane %v857_v23, 4  ;;  %v932_v38 = vrot.slane %v931_v43, 4  ;;  %v843_v41 = vrot.slane %v841_v28, 7  ;;  %7526 = vmatprep.subr.bf16.mxu0 %v8507_v20  ;;  %v9270_v51 = vld [vmem:[#allocation2 + $0x4c] ss:$12 sps:$4 sm:$0xff]  }
  0xfe   : > { %v838_v39 = vor.u32 %v836_v21, %v835_v24  ;;  %v839_v40 = vrot.slane %v835_v24, 4  ;;  %v922_v47 = vor.u32 %v921_v44, %v920_v27  ;;  %v862_v48 = vor.u32 %v860_v42, %v859_v34  ;;  %v9288_v46 = vld [vmem:[#allocation2] sm:$0xff]  ;;  %v8535_v10 = vld [vmem:[#allocation2 + $0x8] ss:$12 sps:$4 sm:$0xff]   ;;  %828 = vst [vmem:[#allocation2 + $0xac] sm:$0xf] %v9279_v59  ;;  %v9325_v42 = vpop.f32.mrf.mxu0 }
  0xff   : > { %v936_v49 = vor.u32 %v935_v35, %v933_v36  ;;  %v844_v45 = vshll.u32 %v9216_v62, 16  ;;  %v934_v54 = vsel %vm9136_vm14, %v932_v38, %v933_v36  ;;  %v926_v55 = vrot.slane %v841_v28, 4  ;;  %8177 = vmatpush3.bf16.msra.mxu1 %v8506_v4  ;;  %1947 = vmatmul.mubr.bf16.gmra.mxu0 %v9261_v29  ;;  %v969_v2 = vld [vmem:[#allocation2 + $0xa4] sm:$0xf]  ;;  %v8520_v15 = vld [vmem:[%s10957_s3 + $0x18] sm:$0xff]   ;;  %v8524_v20 = vld [vmem:[%s10957_s3 + $0x50] sm:$0xff]  }
 0x100   : > { %v905_v53 = vsel %vm9118_vm13, %v838_v39, %v904_v25  ;;  %v923_v62 = vrot.slane %v922_v47, 4  ;;  %v863_v1 = vsel %vm9142_vm15, %v855_v30, %v862_v48  ;;  %968 = vst [vmem:[#allocation2 + $0x98] sm:$0xf] %v934_v54  ;;  %v9294_v5 = vpack.c.bf16 %v788_v13, %v788_v13  ;;  %7527 = vmatpush3.bf16.msra.mxu0 %v8509_v31  ;;  %v965_v13 = vld [vmem:[#allocation2 + $0x8c] sm:$0xf]  ;;  %v8523_v19 = vld [vmem:[%s10957_s3 + $0x98] sm:$0xff]  }
 0x101   : > { %906 = vst [vmem:[#allocation2 + $0x78] sm:$0xf] %v905_v53  ;;  %v846_v3 = vor.u32 %v844_v45, %v843_v41  ;;  %1954 = vmatprep.mubr.bf16.mxu0 %v9270_v51  ;;  %911 = vst [vmem:[#allocation2 + $0x9c] sm:$0xf] %v863_v1  ;;  %v937_v11 = vrot.slane %v936_v49, 4  ;;  %v924_v4 = vrot.slane %v844_v45, 5  ;;  %v9300_v56 = vpack.c.bf16 %v9238_v14, %v9238_v14 }
 0x102   : > { %v8512_v12 = vld [vmem:[#allocation2 + $0x50] ss:$12 sps:$4 sm:$0xff]   ;;  %8178 = vmatprep.subr.bf16.mxu1 %v8513_v37  ;;  %7528 = vmatprep.subr.bf16.mxu0 %v8515_v63  ;;  %831 = vst [vmem:[#allocation2 + $0xd0] sm:$0xf] %v9294_v5  ;;  %v8514_v6 = vld [vmem:[#allocation2 + $0x68] ss:$12 sps:$4 sm:$0xff]  }
 0x103   : > { %v847_v30 = vsel %vm9142_vm15, %v839_v40, %v846_v3  ;;  %v970_v17 = vsel %vm9154_vm0, %v937_v11, %v969_v2  ;;  %v925_v14 = vsel %vm9136_vm14, %v923_v62, %v924_v4  ;;  %v927_v18 = vor.u32 %v926_v55, %v924_v4  ;;  %829 = vst [vmem:[#allocation2 + $0xb8] sm:$0xf] %v9300_v56  ;;  %v9313_v8 = vld [vmem:[#allocation2 + $0x48] ss:$12 sps:$4 sm:$0xff]   ;;  %v9321_v21 = vld [vmem:[#allocation2 + $0xc] sm:$0xff] }
 0x104   : > { %907 = vst [vmem:[#allocation2 + $0x84] sm:$0xf] %v847_v30  ;;  %8170 = vmatprep.mubr.bf16.mxu1 %v8512_v12  ;;  %8179 = vmatpush3.bf16.msra.mxu1 %v8513_v37  ;;  %v6827_v23 = vcombine.high %v9288_v46, %v9321_v21  ;;  %971 = vst [vmem:[#allocation2 + $0xa4] sm:$0xf] %v970_v17  ;;  %v9327_v31 = vld [vmem:[#allocation2 + $0x64] ss:$12 sps:$4 sm:$0xff]   ;;  %v1055_v37 = vpop.f32.mrf.mxu0 }
 0x105   : > { %964 = vst [vmem:[#allocation2 + $0x80] sm:$0xf] %v925_v14  ;;  %8171 = vmatmul.mubr.bf16.gmra.mxu1 %v8514_v6  ;;  %7529 = vmatpush3.bf16.msra.mxu0 %v8516_v52  ;;  %v928_v43 = vrot.slane %v927_v18, 4  ;;  %v881_v24 = vshrl.u32 %v9218_v0, 16  ;;  %v884_v25 = vshll.u32 %v9218_v0, 16  ;;  %v865_v27 = vshrl.u32 %v9279_v59, 16 }
 0x106   : > { %8180 = vmatprep.subr.bf16.mxu1 %v8517_v60  ;;  %7530 = vmatprep.subr.bf16.mxu0 %v8518_v61  ;;  %v916_v28 = vld [vmem:[#allocation2 + $0xc0] sm:$0xf]  ;;  %v868_v44 = vshll.u32 %v9279_v59, 16  ;;  %v889_v34 = vshrl.u32 %v9294_v5, 16  ;;  %v892_v36 = vshll.u32 %v9294_v5, 16  ;;  %v873_v35 = vshrl.u32 %v9300_v56, 16  ;;  %v8131_v49 = vpop.f32.mrf.mxu0 }
 0x107   : > { %8190 = vmatprep.mubr.bf16.mxu1 %v8535_v10  ;;  %v966_v38 = vsel %vm9154_vm0, %v928_v43, %v965_v13  ;;  %v883_v39 = vrot.slane %v881_v24, 7  ;;  %v947_v0 = vrot.slane %v881_v24, 4  ;;  %v948_v40 = vrot.slane %v884_v25, 5  ;;  %1955 = vmatmul.mubr.bf16.gmra.mxu0 %v9313_v8  ;;  %v8525_v45 = vld [vmem:[%s10957_s3 + $0x10] sm:$0xff]   ;;  %v912_v59 = vld [vmem:[#allocation2 + $0xa8] sm:$0xf] }
 0x108   : > { %8181 = vmatpush3.bf16.msra.mxu1 %v8517_v60  ;;  %967 = vst [vmem:[#allocation2 + $0x8c] sm:$0xf] %v966_v38  ;;  %v867_v41 = vrot.slane %v865_v27, 7  ;;  %v938_v63 = vrot.slane %v865_v27, 4  ;;  %v939_v47 = vrot.slane %v868_v44, 5  ;;  %v891_v48 = vrot.slane %v889_v34, 7  ;;  %1962 = vmatprep.mubr.bf16.mxu0 %v9327_v31 }
 0x109   : > { %7531 = vmatpush3.bf16.msra.mxu0 %v8520_v15  ;;  %v8526_v52 = vld [vmem:[%s10957_s3 + $0x90] sm:$0xff]   ;;  %v886_v53 = vor.u32 %v884_v25, %v883_v39  ;;  %v887_v54 = vrot.slane %v883_v39, 4  ;;  %v949_v55 = vor.u32 %v948_v40, %v947_v0  ;;  %v951_v60 = vrot.slane %v892_v36, 5  ;;  %8182 = vmatprep.subr.bf16.mxu1 %v8523_v19  ;;  %v8527_v61 = vld [vmem:[%s10957_s3 + $0x48] sm:$0xff]   ;;  %v1058_v15 = vpop.f32.mrf.mxu0  ;;  %v8531_v24 = vld [vmem:[%s10957_s3 + $0x40] sm:$0xff]  }
 0x10a   : > { %7532 = vmatprep.subr.bf16.mxu0 %v8524_v20  ;;  %v870_v62 = vor.u32 %v868_v44, %v867_v41  ;;  %v871_v1 = vrot.slane %v867_v41, 4  ;;  %v940_v2 = vor.u32 %v939_v47, %v938_v63  ;;  %v894_v3 = vor.u32 %v892_v36, %v891_v48  ;;  %v8529_v17 = vld [vmem:[%s10957_s3 + $0x8] sm:$0xff]   ;;  %v977_v25 = vld [vmem:[#allocation2 + $0xd4] sm:$0xf]  ;;  %v8532_v36 = vld [vmem:[%s10957_s3] sm:$0xff]  }
 0x10b   : > { %v917_v5 = vsel %vm9118_vm13, %v886_v53, %v916_v28  ;;  %v950_v10 = vrot.slane %v949_v55, 4  ;;  %v953_v11 = vrot.slane %v889_v34, 4  ;;  %v875_v4 = vrot.slane %v873_v35, 7  ;;  %v8530_v14 = vld [vmem:[%s10957_s3 + $0x88] sm:$0xff]   ;;  %v8533_v39 = vld [vmem:[%s10957_s3 + $0x80] sm:$0xff]  }
 0x10c   : > { %8183 = vmatpush3.bf16.msra.mxu1 %v8523_v19  ;;  %918 = vst [vmem:[#allocation2 + $0xc0] sm:$0xf] %v917_v5  ;;  %v913_v12 = vsel %vm9118_vm13, %v870_v62, %v912_v59  ;;  %v941_v30 = vrot.slane %v940_v2, 4  ;;  %v895_v13 = vsel %vm9142_vm15, %v887_v54, %v894_v3  ;;  %v876_v6 = vshll.u32 %v9300_v56, 16  ;;  %v9366_v43 = vld [vmem:[#allocation2 + $0x60] ss:$12 sps:$4 sm:$0xff]  }
 0x10d   : > { %7533 = vmatpush3.bf16.msra.mxu0 %v8525_v45  ;;  %8184 = vmatprep.subr.bf16.mxu1 %v8526_v52  ;;  %914 = vst [vmem:[#allocation2 + $0xa8] sm:$0xf] %v913_v12  ;;  %919 = vst [vmem:[#allocation2 + $0xcc] sm:$0xf] %v895_v13  ;;  %v952_v18 = vsel %vm9136_vm14, %v950_v10, %v951_v60  ;;  %v954_v19 = vor.u32 %v953_v11, %v951_v60  ;;  %v944_v20 = vrot.slane %v873_v35, 4  ;;  %v8538_v60 = vld [vmem:[%s10957_s3 + $0x238] sm:$0xff]  }
 0x10e   : > { %v1064_v56 = vadd.f32 %v9325_v42, %v9099_v22  ;;  %7534 = vmatprep.subr.bf16.mxu0 %v8527_v61  ;;  %976 = vst [vmem:[#allocation2 + $0xc8] sm:$0xf] %v952_v18  ;;  %v878_v27 = vor.u32 %v876_v6, %v875_v4  ;;  %v942_v28 = vrot.slane %v876_v6, 5  ;;  %v1056_v44 = vadd.f32 %v9099_v22, %v1055_v37  ;;  %v8534_v37 = vld [vmem:[%s10957_s3 + $0x1f8] sm:$0xff]   ;;  %v8541_v62 = vld [vmem:[%s10957_s3 + $0x1b0] sm:$0xff]   ;;  %v8543_v6 = vld [vmem:[%s10957_s3 + $0x1e8] sm:$0xff]  }
 0x10f   : > { %v1067_v34 = vadd.f32 %v8131_v49, %v9099_v22  ;;  %v955_v42 = vrot.slane %v954_v19, 4  ;;  %v1059_v38 = vadd.f32 %v9099_v22, %v1058_v15  ;;  %1963 = vmatmul.mubr.bf16.gmra.mxu0 %v9366_v43  ;;  %v973_v63 = vld [vmem:[#allocation2 + $0xbc] sm:$0xf]  ;;  %v6826_v54 = vcombine.low %v9288_v46, %v9321_v21  ;;  %v8540_v46 = vld [vmem:[%s10957_s3 + $0x1f0] sm:$0xff]   ;;  %v265_v2 = vld [vmem:[#allocation2 + $0xd8] sm:$0x1] }
 0x110   : > { %v9376_v35 = vpack.c.bf16 %v1064_v56, %v1064_v56  ;;  %8185 = vmatpush3.bf16.msra.mxu1 %v8526_v52  ;;  %v879_v0 = vsel %vm9142_vm15, %v871_v1, %v878_v27  ;;  %v943_v40 = vsel %vm9136_vm14, %v941_v30, %v942_v28  ;;  %v945_v41 = vor.u32 %v944_v20, %v942_v28  ;;  %v268_v21 = vld [vmem:[#allocation2 + $0xf0] sm:$0x1]  ;;  %v8537_v30 = vld [vmem:[#allocation2 + $0x20] ss:$12 sps:$4 sm:$0xff]   ;;  %v8539_v13 = vld [vmem:[#allocation2 + $0x38] ss:$12 sps:$4 sm:$0xff]  }
 0x111   : > { %7535 = vmatpush3.bf16.msra.mxu0 %v8529_v17  ;;  %8186 = vmatprep.subr.bf16.mxu1 %v8530_v14  ;;  %v978_v22 = vsel %vm9154_vm0, %v955_v42, %v977_v25  ;;  %915 = vst [vmem:[#allocation2 + $0xb4] sm:$0xf] %v879_v0  ;;  %972 = vst [vmem:[#allocation2 + $0xb0] sm:$0xf] %v943_v40  ;;  %v7299_v47 = vpack.c.bf16 %v1056_v44, %v1056_v44  ;;  %v269_v1 = vsel %vm8958_vm4, 0, %v268_v21  ;;  %v8542_v10 = vld [vmem:[%s10957_s3 + $0x230] sm:$0xff]  }
 0x112   : > { %1121 = vst [vmem:[#allocation2 + $0xf4] sm:$0xf] %v9376_v35  ;;  %v9393_v48 = vpack.c.bf16 %v1067_v34, %v1067_v34  ;;  %7536 = vmatprep.subr.bf16.mxu0 %v8531_v24  ;;  %2276 = vmatprep.mubr.bf16.mxu0 %v6827_v23  ;;  %979 = vst [vmem:[#allocation2 + $0xd4] sm:$0xf] %v978_v22  ;;  %v946_v49 = vrot.slane %v945_v41, 4  ;;  %v1144_v45 = vshrl.u32 %v9376_v35, 16 }
 0x113   : > { %v9399_v52 = vpack.c.bf16 %v1059_v38, %v1059_v38  ;;  %v1147_v53 = vshll.u32 %v9376_v35, 16  ;;  %1119 = vst [vmem:[#allocation2 + $0xdc] sm:$0xf] %v7299_v47  ;;  %v8536_v23 = vld [vmem:[%s10957_s3 + $0x1b8] sm:$0xff]   ;;  %v1128_v3 = vshrl.u32 %v7299_v47, 16  ;;  %v1131_v5 = vshll.u32 %v7299_v47, 16  ;;  %v8134_v38 = vpop.f32.mrf.mxu0 }
 0x114   : > { %1122 = vst [vmem:[#allocation2 + $0x100] sm:$0xf] %v9393_v48  ;;  %8187 = vmatpush3.bf16.msra.mxu1 %v8530_v14  ;;  %v974_v55 = vsel %vm9154_vm0, %v946_v49, %v973_v63  ;;  %v1224_v59 = vrot.slane %v1144_v45, 4  ;;  %270 = vst [vmem:[#allocation2 + $0xf0] sm:$0x1] %v269_v1  ;;  %v9425_v11 = vrot.slane %v1144_v45, 7 }
 0x115   : > { %1120 = vst [vmem:[#allocation2 + $0xe8] sm:$0xf] %v9399_v52  ;;  %7537 = vmatpush3.bf16.msra.mxu0 %v8532_v36  ;;  %8188 = vmatprep.subr.bf16.mxu1 %v8533_v39  ;;  %975 = vst [vmem:[#allocation2 + $0xbc] sm:$0xf] %v974_v55  ;;  %v1225_v61 = vrot.slane %v1147_v53, 5  ;;  %v266_v12 = vsel %vm8958_vm4, 0, %v265_v2  ;;  %v1071_v21 = vpop.f32.mrf.mxu0 }
 0x116   : > { %7574 = vmatprep.subr.bf16.mxu0 %v8534_v37  ;;  %267 = vst [vmem:[#allocation2 + $0xd8] sm:$0x1] %v266_v12  ;;  %v9433_v15 = vrot.slane %v1128_v3, 7  ;;  %v1215_v17 = vrot.slane %v1128_v3, 4  ;;  %v1216_v14 = vrot.slane %v1131_v5, 5  ;;  %v1152_v20 = vshrl.u32 %v9393_v48, 16 }
 0x117   : > { %v1226_v4 = vor.u32 %v1225_v61, %v1224_v59  ;;  %v325_v19 = vld [vmem:[#allocation2 + $0x104] sm:$0x8]  ;;  %v1149_v56 = vor.u32 %v1147_v53, %v9425_v11  ;;  %v1150_v24 = vrot.slane %v9425_v11, 4  ;;  %v8544_v28 = vld [vmem:[%s10957_s3 + $0x1a8] sm:$0xff]   ;;  %v1136_v22 = vshrl.u32 %v9399_v52, 16  ;;  %v8551_v11 = vld [vmem:[%s10957_s3 + $0x1d8] sm:$0xff]  }
 0x118   : > { %8189 = vmatpush3.bf16.msra.mxu1 %v8533_v39  ;;  %2277 = vmatmul.mubr.bf16.vlgmr.msra.gmra.mxu0 %v6826_v54  ;;  %v1133_v25 = vor.u32 %v1131_v5, %v9433_v15  ;;  %v1217_v27 = vor.u32 %v1216_v14, %v1215_v17  ;;  %v8546_v44 = vld [vmem:[%s10957_s3 + $0x228] sm:$0xff]   ;;  %v1134_v34 = vrot.slane %v9433_v15, 4  ;;  %v326_v36 = vsel %vm9002_vm7, 0, %v325_v19  ;;  %v8144_v39 = vpop.f32.mrf.mxu1  ;;  %v8548_v37 = vld [vmem:[%s10957_s3 + $0x1e0] sm:$0xff]   ;;  %v8135_v14 = vpop.f32.mrf.mxu0 }
 0x119   : > { %7575 = vmatpush3.bf16.msra.mxu0 %v8536_v23  ;;  %2284 = vmatprep.mubr.bf16.mxu0 %v9207_v58  ;;  %v1227_v18 = vrot.slane %v1226_v4, 4  ;;  %v1155_v58 = vshll.u32 %v9393_v48, 16  ;;  %v1154_v42 = vrot.slane %v1152_v20, 7  ;;  %327 = vst [vmem:[#allocation2 + $0x104] sm:$0x8] %v326_v36  ;;  %v1230_v40 = vrot.slane %v1152_v20, 4 }
 0x11a   : > { %8198 = vmatprep.subr.bf16.mxu1 %v8538_v60  ;;  %7576 = vmatprep.subr.bf16.mxu0 %v8540_v46  ;;  %v1218_v0 = vrot.slane %v1217_v27, 4  ;;  %v322_v41 = vld [vmem:[#allocation2 + $0xec] sm:$0x8]  ;;  %v9456_v63 = vld [vmem:[%s10956_s2] ss:$0 sm:$0xff]  ;;  %v1139_v54 = vshll.u32 %v9399_v52, 16  ;;  %v1350_v61 = vpop.f32.mrf.mxu1  ;;  %v1074_v36 = vpop.f32.mrf.mxu0 }
 0x11b   : > { %8191 = vmatmul.mubr.bf16.vlgmr.msra.gmra.mxu1 %v8537_v30  ;;  %v1228_v35 = vrot.slane %v1155_v58, 5  ;;  %v1080_v47 = vadd.f32 %v9456_v63, %v8134_v38  ;;  %v1203_v48 = vld [vmem:[#allocation2 + $0xf0] sm:$0xf]  ;;  %v1157_v49 = vor.u32 %v1155_v58, %v1154_v42  ;;  %v323_v53 = vsel %vm9002_vm7, 0, %v322_v41  ;;  %v8549_v52 = vld [vmem:[%s10957_s3 + $0x1a0] sm:$0xff]  }
 0x11c   : > { %8194 = vmatprep.mubr.bf16.mxu1 %v8539_v13  ;;  %8199 = vmatpush3.bf16.msra.mxu1 %v8538_v60  ;;  %v1204_v55 = vsel %vm9118_vm13, %v1149_v56, %v1203_v48  ;;  %324 = vst [vmem:[#allocation2 + $0xec] sm:$0x8] %v323_v53  ;;  %v1138_v60 = vrot.slane %v1136_v22, 7  ;;  %v1221_v46 = vrot.slane %v1136_v22, 4  ;;  %v1219_v3 = vrot.slane %v1139_v54, 5  ;;  %v8554_v38 = vld [vmem:[%s10957_s3 + $0x1d0] sm:$0xff]  }
 0x11d   : > { %7577 = vmatpush3.bf16.msra.mxu0 %v8541_v62  ;;  %8200 = vmatprep.subr.bf16.mxu1 %v8542_v10  ;;  %v1229_v45 = vsel %vm9136_vm14, %v1227_v18, %v1228_v35  ;;  %v1199_v59 = vld [vmem:[#allocation2 + $0xd8] sm:$0xf]  ;;  %v1231_v23 = vor.u32 %v1230_v40, %v1228_v35  ;;  %v8545_v62 = vld [vmem:[#allocation2 + $0x50] ss:$12 sps:$4 sm:$0xff]   ;;  %1205 = vst [vmem:[#allocation2 + $0xf0] sm:$0xf] %v1204_v55  ;;  %v8145_v18 = vpop.f32.mrf.mxu1 }
 0x11e   : > { %7578 = vmatprep.subr.bf16.mxu0 %v8543_v6  ;;  %1263 = vst [vmem:[#allocation2 + $0xf8] sm:$0xf] %v1229_v45  ;;  %v1200_v1 = vsel %vm9118_vm13, %v1133_v25, %v1199_v59  ;;  %v1158_v2 = vsel %vm9142_vm15, %v1150_v24, %v1157_v49  ;;  %v9478_v5 = vpack.c.bf16 %v1080_v47, %v1080_v47  ;;  %v8552_v24 = vld [vmem:[%s10957_s3 + $0x198] sm:$0xff]   ;;  %v8555_v41 = vld [vmem:[%s10957_s3 + $0x190] sm:$0xff]   ;;  %v274_v47 = vld [vmem:[#allocation2 + $0x120] sm:$0x1] }
 0x11f   : > { %1201 = vst [vmem:[#allocation2 + $0xd8] sm:$0xf] %v1200_v1  ;;  %1206 = vst [vmem:[#allocation2 + $0xfc] sm:$0xf] %v1158_v2  ;;  %v1232_v4 = vrot.slane %v1231_v23, 4  ;;  %v1141_v12 = vor.u32 %v1139_v54, %v1138_v60  ;;  %v1359_v30 = vadd.f32 %v9456_v63, %v8144_v39  ;;  %v1072_v13 = vadd.f32 %v9456_v63, %v1071_v21  ;;  %v1353_v42 = vpop.f32.mrf.mxu1  ;;  %v8553_v35 = vld [vmem:[%s10957_s3 + $0x218] sm:$0xff]  }
 0x120   : > { %8201 = vmatpush3.bf16.msra.mxu1 %v8542_v10  ;;  %2285 = vmatmul.mubr.bf16.gmra.mxu0 %v9205_v57  ;;  %v8550_v57 = vld [vmem:[%s10957_s3 + $0x220] sm:$0xff]   ;;  %v1220_v6 = vsel %vm9136_vm14, %v1218_v0, %v1219_v3  ;;  %v1222_v15 = vor.u32 %v1221_v46, %v1219_v3  ;;  %1125 = vst [vmem:[#allocation2 + $0x124] sm:$0xf] %v9478_v5  ;;  %v1176_v17 = vshrl.u32 %v9478_v5, 16  ;;  %v1179_v20 = vshll.u32 %v9478_v5, 16  ;;  %v8556_v54 = vld [vmem:[%s10957_s3 + $0x210] sm:$0xff]  }
 0x121   : > { %7579 = vmatpush3.bf16.msra.mxu0 %v8544_v28  ;;  %2292 = vmatprep.mubr.bf16.mxu0 %v9211_v33  ;;  %v8547_v10 = vld [vmem:[#allocation2 + $0x38] ss:$12 sps:$4 sm:$0xff]   ;;  %v1142_v19 = vsel %vm9142_vm15, %v1134_v34, %v1141_v12  ;;  %1259 = vst [vmem:[#allocation2 + $0xe0] sm:$0xf] %v1220_v6  ;;  %v9492_v58 = vpack.c.bf16 %v1359_v30, %v1359_v30  ;;  %v8557_v55 = vld [vmem:[%s10957_s3 + $0x1c8] sm:$0xff]   ;;  %v275_v23 = vsel %vm8958_vm4, 0, %v274_v47 }
 0x122   : > { %8202 = vmatprep.subr.bf16.mxu1 %v8546_v44  ;;  %7580 = vmatprep.subr.bf16.mxu0 %v8548_v37  ;;  %v9494_v56 = vpack.c.bf16 %v1072_v13, %v1072_v13  ;;  %v1264_v25 = vld [vmem:[#allocation2 + $0x104] sm:$0xf]  ;;  %1202 = vst [vmem:[#allocation2 + $0xe4] sm:$0xf] %v1142_v19  ;;  %v1223_v27 = vrot.slane %v1222_v15, 4  ;;  %v1351_v28 = vadd.f32 %v9456_v63, %v1350_v61  ;;  %v9510_v37 = vrot.slane %v1176_v17, 7 }
 0x123   : > { %8195 = vmatmul.mubr.bf16.gmra.mxu1 %v8545_v62  ;;  %v1362_v34 = vadd.f32 %v9456_v63, %v8145_v18  ;;  %v1265_v39 = vsel %vm9154_vm0, %v1232_v4, %v1264_v25  ;;  %1416 = vst [vmem:[#allocation2 + $0x154] sm:$0xf] %v9492_v58  ;;  %v9515_v0 = vadd.f32 %v9456_v63, %v1074_v36  ;;  %v1260_v22 = vld [vmem:[#allocation2 + $0xec] sm:$0xf]  ;;  %v1242_v48 = vrot.slane %v1176_v17, 4 }
 0x124   : > { %8203 = vmatpush3.bf16.msra.mxu1 %v8546_v44  ;;  %8214 = vmatprep.mubr.bf16.mxu1 %v8547_v10  ;;  %v1083_v44 = vadd.f32 %v9456_v63, %v8135_v14  ;;  %1123 = vst [vmem:[#allocation2 + $0x10c] sm:$0xf] %v9494_v56  ;;  %v9518_v40 = vadd.f32 %v9456_v63, %v1353_v42  ;;  %1266 = vst [vmem:[#allocation2 + $0x104] sm:$0xf] %v1265_v39  ;;  %v1182_v46 = vrot.slane %v9510_v37, 4  ;;  %v8558_v19 = vld [vmem:[%s10957_s3 + $0x188] sm:$0xff]  }
 0x125   : > { %7581 = vmatpush3.bf16.msra.mxu0 %v8549_v52  ;;  %8204 = vmatprep.subr.bf16.mxu1 %v8550_v57  ;;  %v9523_v49 = vpack.c.bf16 %v1351_v28, %v1351_v28  ;;  %v9527_v53 = vpack.c.bf16 %v1362_v34, %v1362_v34  ;;  %v1261_v59 = vsel %vm9154_vm0, %v1223_v27, %v1260_v22  ;;  %v280_v21 = vld [vmem:[#allocation2 + $0x150] sm:$0x1]  ;;  %v1243_v61 = vrot.slane %v1179_v20, 5  ;;  %v271_v1 = vld [vmem:[#allocation2 + $0x108] sm:$0x1]  ;;  %v8560_v27 = vld [vmem:[%s10957_s3 + $0x1c0] sm:$0xff]  }
 0x126   : > { %7582 = vmatprep.subr.bf16.mxu0 %v8551_v11  ;;  %v9525_v45 = vpack.c.bf16 %v1083_v44, %v1083_v44  ;;  %v9541_v60 = vor.u32 %v1179_v20, %v9510_v37  ;;  %1262 = vst [vmem:[#allocation2 + $0xec] sm:$0xf] %v1261_v59  ;;  %276 = vst [vmem:[#allocation2 + $0x120] sm:$0x1] %v275_v23  ;;  %v281_v62 = vsel %vm8958_vm4, 0, %v280_v21  ;;  %v1439_v52 = vshrl.u32 %v9492_v58, 16 }
 0x127   : > { %1414 = vst [vmem:[#allocation2 + $0x13c] sm:$0xf] %v9523_v49  ;;  %1417 = vst [vmem:[#allocation2 + $0x160] sm:$0xf] %v9527_v53  ;;  %v272_v2 = vsel %vm8958_vm4, 0, %v271_v1  ;;  %v1160_v3 = vshrl.u32 %v9494_v56, 16  ;;  %v1244_v4 = vor.u32 %v1243_v61, %v1242_v48  ;;  %v9599_v23 = vpack.c.bf16 %v9515_v0, %v9515_v0 }
 0x128   : > { %8205 = vmatpush3.bf16.msra.mxu1 %v8550_v57  ;;  %2293 = vmatmul.mubr.bf16.gmra.mxu0 %v9261_v29  ;;  %v1442_v57 = vshll.u32 %v9492_v58, 16  ;;  %1126 = vst [vmem:[#allocation2 + $0x130] sm:$0xf] %v9525_v45  ;;  %282 = vst [vmem:[#allocation2 + $0x150] sm:$0x1] %v281_v62  ;;  %v1163_v5 = vshll.u32 %v9494_v56, 16 }
 0x129   : > { %7583 = vmatpush3.bf16.msra.mxu0 %v8552_v24  ;;  %2300 = vmatprep.mubr.bf16.mxu0 %v9270_v51  ;;  %v277_v10 = vld [vmem:[#allocation2 + $0x138] sm:$0x1]  ;;  %v1423_v11 = vshrl.u32 %v9523_v49, 16  ;;  %v9557_v12 = vrot.slane %v1439_v52, 7  ;;  %v1519_v30 = vrot.slane %v1439_v52, 4  ;;  %v9559_v6 = vrot.slane %v1160_v3, 7 }
 0x12a   : > { %8206 = vmatprep.subr.bf16.mxu1 %v8553_v35  ;;  %7584 = vmatprep.subr.bf16.mxu0 %v8554_v38  ;;  %v1520_v13 = vrot.slane %v1442_v57, 5  ;;  %273 = vst [vmem:[#allocation2 + $0x108] sm:$0x1] %v272_v2  ;;  %v1233_v15 = vrot.slane %v1160_v3, 4  ;;  %v1234_v17 = vrot.slane %v1163_v5, 5  ;;  %v278_v14 = vsel %vm8958_vm4, 0, %v277_v10 }
 0x12b   : > { %v331_v18 = vld [vmem:[#allocation2 + $0x134] sm:$0x8]  ;;  %v9566_v20 = vrot.slane %v1244_v4, 4  ;;  %v1444_v58 = vor.u32 %v1442_v57, %v9557_v12  ;;  %v1445_v56 = vrot.slane %v9557_v12, 4  ;;  %279 = vst [vmem:[#allocation2 + $0x138] sm:$0x1] %v278_v14  ;;  %v1165_v28 = vor.u32 %v1163_v5, %v9559_v6 }
 0x12c   : > { %8207 = vmatpush3.bf16.msra.mxu1 %v8553_v35  ;;  %v1521_v24 = vor.u32 %v1520_v13, %v1519_v30  ;;  %v8559_v25 = vld [vmem:[%s10957_s3 + $0x208] sm:$0xff]   ;;  %v1166_v44 = vrot.slane %v9559_v6, 4  ;;  %v1235_v34 = vor.u32 %v1234_v17, %v1233_v15  ;;  %v9578_v36 = vrot.slane %v1423_v11, 7  ;;  %v8561_v42 = vld [vmem:[%s10957_s3 + $0x180] sm:$0xff]   ;;  %v328_v57 = vld [vmem:[#allocation2 + $0x11c] sm:$0x8] }
 0x12d   : > { %7585 = vmatpush3.bf16.msra.mxu0 %v8555_v41  ;;  %8208 = vmatprep.subr.bf16.mxu1 %v8556_v54  ;;  %v9586_v35 = vld [vmem:[%s10957_s3 + $0x200] sm:$0xff]   ;;  %v1426_v39 = vshll.u32 %v9523_v49, 16  ;;  %v1510_v41 = vrot.slane %v1423_v11, 4  ;;  %v332_v22 = vsel %vm9002_vm7, 0, %v331_v18  ;;  %v9603_v49 = vpack.c.bf16 %v9518_v40, %v9518_v40  ;;  %v8563_v0 = vld [vmem:[%s10957_s3 + $0x138] sm:$0xff]   ;;  %v9660_v37 = vld [vmem:[%s10957_s3 + $0x170] sm:$0xff]  }
 0x12e   : > { %7586 = vmatprep.subr.bf16.mxu0 %v8557_v55  ;;  %v9588_v38 = vrot.slane %v1521_v24, 4  ;;  %v337_v47 = vld [vmem:[#allocation2 + $0x164] sm:$0x8]  ;;  %v1211_v48 = vld [vmem:[#allocation2 + $0x120] sm:$0xf]  ;;  %v9594_v55 = vrot.slane %v1235_v34, 4 }
 0x12f   : > { %v1429_v59 = vrot.slane %v9578_v36, 4  ;;  %333 = vst [vmem:[#allocation2 + $0x134] sm:$0x8] %v332_v22  ;;  %v1498_v21 = vld [vmem:[#allocation2 + $0x150] sm:$0xf]  ;;  %v1428_v61 = vor.u32 %v1426_v39, %v9578_v36  ;;  %v1511_v62 = vrot.slane %v1426_v39, 5  ;;  %v8148_v39 = vpop.f32.mrf.mxu1 }
 0x130   : > { %8209 = vmatpush3.bf16.msra.mxu1 %v8556_v54  ;;  %2301 = vmatmul.mubr.bf16.gmra.mxu0 %v9313_v8  ;;  %v1212_v54 = vsel %vm9118_vm13, %v9541_v60, %v1211_v48  ;;  %v1184_v52 = vshrl.u32 %v9525_v45, 16  ;;  %v1187_v60 = vshll.u32 %v9525_v45, 16  ;;  %v338_v1 = vsel %vm9002_vm7, 0, %v337_v47  ;;  %1124 = vst [vmem:[#allocation2 + $0x118] sm:$0xf] %v9599_v23  ;;  %v8564_v14 = vld [vmem:[%s10957_s3 + $0xf8] sm:$0xff]  }
 0x131   : > { %7587 = vmatpush3.bf16.msra.mxu0 %v8558_v19  ;;  %2679 = vmatprep.mubr.bf16.mxu0 %v9211_v33  ;;  %1213 = vst [vmem:[#allocation2 + $0x120] sm:$0xf] %v1212_v54  ;;  %v1499_v33 = vsel %vm9118_vm13, %v1444_v58, %v1498_v21  ;;  %v1207_v40 = vld [vmem:[#allocation2 + $0x108] sm:$0xf]  ;;  %v1447_v2 = vshrl.u32 %v9527_v53, 16  ;;  %v1512_v10 = vor.u32 %v1511_v62, %v1510_v41  ;;  %v1450_v15 = vshll.u32 %v9527_v53, 16 }
 0x132   : > { %8210 = vmatprep.subr.bf16.mxu1 %v8559_v25  ;;  %7588 = vmatprep.subr.bf16.mxu0 %v8560_v27  ;;  %v334_v3 = vld [vmem:[#allocation2 + $0x14c] sm:$0x8]  ;;  %1415 = vst [vmem:[#allocation2 + $0x148] sm:$0xf] %v9603_v49  ;;  %1500 = vst [vmem:[#allocation2 + $0x150] sm:$0xf] %v1499_v33  ;;  %v1208_v5 = vsel %vm9118_vm13, %v1165_v28, %v1207_v40 }
 0x133   : > { %v1186_v11 = vrot.slane %v1184_v52, 7  ;;  %v1248_v4 = vrot.slane %v1184_v52, 4  ;;  %339 = vst [vmem:[#allocation2 + $0x164] sm:$0x8] %v338_v1  ;;  %1209 = vst [vmem:[#allocation2 + $0x108] sm:$0xf] %v1208_v5  ;;  %v1366_v1 = vpop.f32.mrf.mxu1 }
 0x134   : > { %8211 = vmatpush3.bf16.msra.mxu1 %v8559_v25  ;;  %v1494_v45 = vld [vmem:[#allocation2 + $0x138] sm:$0xf]  ;;  %v1246_v30 = vrot.slane %v1187_v60, 5  ;;  %v1449_v13 = vrot.slane %v1447_v2, 7  ;;  %v1525_v17 = vrot.slane %v1447_v2, 4  ;;  %v9631_v19 = vrot.slane %v1512_v10, 4 }
 0x135   : > { %7589 = vmatpush3.bf16.msra.mxu0 %v8561_v42  ;;  %8212 = vmatprep.subr.bf16.mxu1 %v9586_v35  ;;  %v1495_v18 = vsel %vm9118_vm13, %v1428_v61, %v1494_v45  ;;  %v1189_v58 = vor.u32 %v1187_v60, %v1186_v11  ;;  %v329_v24 = vsel %vm9002_vm7, 0, %v328_v57  ;;  %v8566_v53 = vld [vmem:[%s10957_s3 + $0x178] sm:$0xff]   ;;  %v8568_v25 = vld [vmem:[%s10957_s3 + $0x130] sm:$0xff]   ;;  %v1523_v42 = vrot.slane %v1450_v15, 5  ;;  %v286_v60 = vld [vmem:[#allocation2 + $0x180] sm:$0x1] }
 0x136   : > { %7626 = vmatprep.subr.bf16.mxu0 %v8563_v0  ;;  %1496 = vst [vmem:[#allocation2 + $0x138] sm:$0xf] %v1495_v18  ;;  %v1247_v27 = vsel %vm9136_vm14, %v9566_v20, %v1246_v30  ;;  %v1249_v28 = vor.u32 %v1248_v4, %v1246_v30  ;;  %v1452_v34 = vor.u32 %v1450_v15, %v1449_v13  ;;  %330 = vst [vmem:[#allocation2 + $0x11c] sm:$0x8] %v329_v24  ;;  %v8569_v41 = vld [vmem:[%s10957_s3 + $0xf0] sm:$0xff]   ;;  %v9687_v4 = vld [vmem:[%s10957_s3 + $0x168] sm:$0xff]  }
 0x137   : > { %v1190_v22 = vsel %vm9142_vm15, %v1182_v46, %v1189_v58  ;;  %1271 = vst [vmem:[#allocation2 + $0x128] sm:$0xf] %v1247_v27  ;;  %v1272_v47 = vld [vmem:[#allocation2 + $0x134] sm:$0xf]  ;;  %v1168_v48 = vshrl.u32 %v9599_v23, 16  ;;  %v1171_v20 = vshll.u32 %v9599_v23, 16  ;;  %v1367_v6 = vadd.f32 %v9456_v63, %v1366_v1 }
 0x138   : > { %v335_v54 = vsel %vm9002_vm7, 0, %v334_v3  ;;  %8213 = vmatpush3.bf16.msra.mxu1 %v9586_v35  ;;  %2680 = vmatmul.mubr.bf16.vlgmr.msra.gmra.mxu0 %v9261_v29  ;;  %v8565_v21 = vld [vmem:[#allocation2 + $0x50] ss:$12 sps:$4 sm:$0xff]   ;;  %v8571_v46 = vld [vmem:[%s10957_s3 + $0x128] sm:$0xff]   ;;  %1214 = vst [vmem:[#allocation2 + $0x12c] sm:$0xf] %v1190_v22  ;;  %v1453_v23 = vsel %vm9142_vm15, %v1445_v56, %v1452_v34  ;;  %v1524_v29 = vsel %vm9136_vm14, %v9588_v38, %v1523_v42  ;;  %v8149_v34 = vpop.f32.mrf.mxu1 }
 0x139   : > { %v1250_v61 = vrot.slane %v1249_v28, 4  ;;  %v1526_v35 = vor.u32 %v1525_v17, %v1523_v42  ;;  %336 = vst [vmem:[#allocation2 + $0x14c] sm:$0x8] %v335_v54  ;;  %7627 = vmatpush3.bf16.msra.mxu0 %v8564_v14  ;;  %2687 = vmatprep.mubr.bf16.mxu0 %v9270_v51  ;;  %v8567_v62 = vld [vmem:[#allocation2 + $0x68] ss:$12 sps:$4 sm:$0xff]   ;;  %v1170_v52 = vrot.slane %v1168_v48, 7  ;;  %v1375_v51 = vadd.f32 %v9456_v63, %v8148_v39 }
 0x13a   : > { %1501 = vst [vmem:[#allocation2 + $0x15c] sm:$0xf] %v1453_v23  ;;  %1558 = vst [vmem:[#allocation2 + $0x158] sm:$0xf] %v1524_v29  ;;  %v1237_v57 = vrot.slane %v1171_v20, 5  ;;  %v1239_v0 = vrot.slane %v1168_v48, 4  ;;  %8222 = vmatprep.subr.bf16.mxu1 %v8566_v53  ;;  %7628 = vmatprep.subr.bf16.mxu0 %v8568_v25 }
 0x13b   : > { %v1431_v12 = vshrl.u32 %v9603_v49, 16  ;;  %v1273_v56 = vsel %vm9154_vm0, %v1250_v61, %v1272_v47  ;;  %v1527_v33 = vrot.slane %v1526_v35, 4  ;;  %v1559_v38 = vld [vmem:[#allocation2 + $0x164] sm:$0xf]  ;;  %v1434_v40 = vshll.u32 %v9603_v49, 16  ;;  %8215 = vmatmul.mubr.bf16.vlgmr.msra.gmra.mxu1 %v8565_v21  ;;  %v8572_v49 = vld [vmem:[%s10957_s3 + $0xe8] sm:$0xff]  }
 0x13c   : > { %1274 = vst [vmem:[#allocation2 + $0x134] sm:$0xf] %v1273_v56  ;;  %v1173_v2 = vor.u32 %v1171_v20, %v1170_v52  ;;  %v1238_v3 = vsel %vm9136_vm14, %v9594_v55, %v1237_v57  ;;  %v1240_v5 = vor.u32 %v1239_v0, %v1237_v57  ;;  %v283_v11 = vld [vmem:[#allocation2 + $0x168] sm:$0x1]  ;;  %8218 = vmatprep.mubr.bf16.mxu1 %v8567_v62  ;;  %v287_v13 = vsel %vm8958_vm4, 0, %v286_v60  ;;  %v8575_v15 = vld [vmem:[%s10957_s3 + $0x120] sm:$0xff]   ;;  %v1369_v57 = vpop.f32.mrf.mxu1 }
 0x13d   : > { %v1433_v10 = vrot.slane %v1431_v12, 7  ;;  %8223 = vmatpush3.bf16.msra.mxu1 %v8566_v53  ;;  %v1560_v45 = vsel %vm9154_vm0, %v1527_v33, %v1559_v38  ;;  %1267 = vst [vmem:[#allocation2 + $0x110] sm:$0xf] %v1238_v3  ;;  %v1514_v30 = vrot.slane %v1434_v40, 5  ;;  %v1516_v55 = vrot.slane %v1431_v12, 4  ;;  %7629 = vmatpush3.bf16.msra.mxu0 %v8569_v41  ;;  %v8576_v39 = vld [vmem:[%s10957_s3 + $0xe0] sm:$0xff]  }
 0x13e   : > { %8224 = vmatprep.subr.bf16.mxu1 %v9660_v37  ;;  %1561 = vst [vmem:[#allocation2 + $0x164] sm:$0xf] %v1560_v45  ;;  %v1174_v17 = vsel %vm9142_vm15, %v1166_v44, %v1173_v2  ;;  %v1241_v14 = vrot.slane %v1240_v5, 4  ;;  %v1268_v18 = vld [vmem:[#allocation2 + $0x11c] sm:$0xf]  ;;  %v7313_v24 = vpack.c.bf16 %v1375_v51, %v1375_v51  ;;  %7630 = vmatprep.subr.bf16.mxu0 %v8571_v46  ;;  %v284_v28 = vsel %vm8958_vm4, 0, %v283_v11 }
 0x13f   : > { %v1436_v58 = vor.u32 %v1434_v40, %v1433_v10  ;;  %288 = vst [vmem:[#allocation2 + $0x180] sm:$0x1] %v287_v13  ;;  %v343_v53 = vld [vmem:[#allocation2 + $0x194] sm:$0x8]  ;;  %1210 = vst [vmem:[#allocation2 + $0x114] sm:$0xf] %v1174_v17  ;;  %v1515_v25 = vsel %vm9136_vm14, %v9631_v19, %v1514_v30  ;;  %v1517_v27 = vor.u32 %v1516_v55, %v1514_v30 }
 0x140   : > { %v340_v44 = vld [vmem:[#allocation2 + $0x17c] sm:$0x8]  ;;  %v8573_v42 = vld [vmem:[#allocation2 + $0x80] ss:$12 sps:$4 sm:$0xff]   ;;  %v1269_v19 = vsel %vm9154_vm0, %v1241_v14, %v1268_v18  ;;  %1554 = vst [vmem:[#allocation2 + $0x140] sm:$0xf] %v1515_v25  ;;  %2688 = vmatmul.mubr.bf16.gmra.mxu0 %v9313_v8  ;;  %v7311_v46 = vpack.c.bf16 %v1367_v6, %v1367_v6  ;;  %v1370_v33 = vadd.f32 %v9456_v63, %v1369_v57 }
 0x141   : > { %v9713_v41 = vld [vmem:[%s10957_s3 + $0x160] sm:$0xff]   ;;  %v1437_v22 = vsel %vm9142_vm15, %v1429_v59, %v1436_v58  ;;  %v1555_v47 = vld [vmem:[#allocation2 + $0x14c] sm:$0xf]  ;;  %1420 = vst [vmem:[#allocation2 + $0x184] sm:$0xf] %v7313_v24  ;;  %v1471_v48 = vshrl.u32 %v7313_v24, 16  ;;  %8225 = vmatpush3.bf16.msra.mxu1 %v9660_v37  ;;  %v1378_v59 = vadd.f32 %v9456_v63, %v8149_v34  ;;  %7631 = vmatpush3.bf16.msra.mxu0 %v8572_v49 }
 0x142   : > { %v1474_v20 = vshll.u32 %v7313_v24, 16  ;;  %285 = vst [vmem:[#allocation2 + $0x168] sm:$0x1] %v284_v28  ;;  %v8579_v54 = vld [vmem:[#allocation2 + $0x80] ss:$12 sps:$4 sm:$0xff]   ;;  %v1518_v21 = vrot.slane %v1517_v27, 4  ;;  %2695 = vmatprep.mubr.bf16.mxu0 %v9327_v31  ;;  %8226 = vmatprep.subr.bf16.mxu1 %v9687_v4  ;;  %v7312_v11 = vpack.c.bf16 %v1370_v33, %v1370_v33 }
 0x143   : > { %1270 = vst [vmem:[#allocation2 + $0x11c] sm:$0xf] %v1269_v19  ;;  %1497 = vst [vmem:[#allocation2 + $0x144] sm:$0xf] %v1437_v22  ;;  %v344_v36 = vsel %vm9002_vm7, 0, %v343_v53  ;;  %v9727_v61 = vrot.slane %v1471_v48, 7  ;;  %7632 = vmatprep.subr.bf16.mxu0 %v8575_v15  ;;  %v7314_v52 = vpack.c.bf16 %v1378_v59, %v1378_v59  ;;  %8219 = vmatmul.mubr.bf16.gmra.mxu1 %v8573_v42 }
 0x144   : > { %v1537_v23 = vrot.slane %v1471_v48, 4  ;;  %v1538_v29 = vrot.slane %v1474_v20, 5  ;;  %345 = vst [vmem:[#allocation2 + $0x194] sm:$0x8] %v344_v36  ;;  %v341_v8 = vsel %vm9002_vm7, 0, %v340_v44  ;;  %v8578_v37 = vld [vmem:[%s10957_s3 + $0x118] sm:$0xff]   ;;  %v1556_v35 = vsel %vm9154_vm0, %v1518_v21, %v1555_v47  ;;  %8238 = vmatprep.mubr.bf16.mxu1 %v8579_v54 }
 0x145   : > { %1418 = vst [vmem:[#allocation2 + $0x16c] sm:$0xf] %v7311_v46  ;;  %v1455_v31 = vshrl.u32 %v7311_v46, 16  ;;  %v1458_v62 = vshll.u32 %v7311_v46, 16  ;;  %342 = vst [vmem:[#allocation2 + $0x17c] sm:$0x8] %v341_v8  ;;  %v1476_v12 = vor.u32 %v1474_v20, %v9727_v61  ;;  %8227 = vmatpush3.bf16.msra.mxu1 %v9687_v4  ;;  %7633 = vmatpush3.bf16.msra.mxu0 %v8576_v39 }
 0x146   : > { %v8580_v0 = vld [vmem:[%s10957_s3 + $0xd8] sm:$0xff]   ;;  %1557 = vst [vmem:[#allocation2 + $0x14c] sm:$0xf] %v1556_v35  ;;  %v1539_v56 = vor.u32 %v1538_v29, %v1537_v23  ;;  %v1506_v38 = vld [vmem:[#allocation2 + $0x180] sm:$0xf]  ;;  %v1479_v1 = vshrl.u32 %v7314_v52, 16  ;;  %8228 = vmatprep.subr.bf16.mxu1 %v9713_v41  ;;  %7634 = vmatprep.subr.bf16.mxu0 %v8578_v37 }
 0x147   : > { %v1457_v40 = vrot.slane %v1455_v31, 7  ;;  %v1528_v60 = vrot.slane %v1455_v31, 4  ;;  %v1529_v51 = vrot.slane %v1458_v62, 5  ;;  %1421 = vst [vmem:[#allocation2 + $0x190] sm:$0xf] %v7314_v52  ;;  %v8583_v3 = vld [vmem:[%s10957_s3 + $0x158] sm:$0xff]   ;;  %v1507_v63 = vsel %vm9118_vm13, %v1476_v12, %v1506_v38 }
 0x148   : > { %v9744_v2 = vld [vmem:[#allocation2 + $0x7c] ss:$12 sps:$4 sm:$0xff]   ;;  %v1540_v5 = vrot.slane %v1539_v56, 4  ;;  %v1482_v10 = vshll.u32 %v7314_v52, 16  ;;  %v8584_v49 = vld [vmem:[%s10957_s3 + $0x110] sm:$0xff]   ;;  %v1477_v4 = vrot.slane %v9727_v61, 4  ;;  %2696 = vmatmul.mubr.bf16.gmra.mxu0 %v9366_v43 }
 0x149   : > { %1508 = vst [vmem:[#allocation2 + $0x180] sm:$0xf] %v1507_v63  ;;  %v1460_v45 = vor.u32 %v1458_v62, %v1457_v40  ;;  %v1502_v30 = vld [vmem:[#allocation2 + $0x168] sm:$0xf]  ;;  %v1530_v55 = vor.u32 %v1529_v51, %v1528_v60  ;;  %v1481_v13 = vrot.slane %v1479_v1, 7  ;;  %v1543_v17 = vrot.slane %v1479_v1, 4  ;;  %8229 = vmatpush3.bf16.msra.mxu1 %v9713_v41  ;;  %7635 = vmatpush3.bf16.msra.mxu0 %v8580_v0 }
 0x14a   : > { %v1541_v15 = vrot.slane %v1482_v10, 5  ;;  %1419 = vst [vmem:[#allocation2 + $0x178] sm:$0xf] %v7312_v11  ;;  %v1463_v14 = vshrl.u32 %v7312_v11, 16  ;;  %v1466_v18 = vshll.u32 %v7312_v11, 16  ;;  %v1461_v58 = vrot.slane %v1457_v40, 4  ;;  %2703 = vmatprep.mubr.bf16.mxu0 %v9744_v2  ;;  %8230 = vmatprep.subr.bf16.mxu1 %v8583_v3 }
 0x14b   : > { %v1503_v24 = vsel %vm9118_vm13, %v1460_v45, %v1502_v30  ;;  %v1531_v53 = vrot.slane %v1530_v55, 4  ;;  %v1484_v25 = vor.u32 %v1482_v10, %v1481_v13  ;;  %v8585_v27 = vld [vmem:[%s10957_s3 + $0xd0] sm:$0xff]   ;;  %7636 = vmatprep.subr.bf16.mxu0 %v8584_v49  ;;  %v8587_v44 = vld [vmem:[%s10957_s3 + $0x108] sm:$0xff]   ;;  %v9785_v36 = vld [vmem:[#allocation2 + $0x78] ss:$12 sps:$4 sm:$0xff]  }
 0x14c   : > { %v8586_v28 = vld [vmem:[%s10957_s3 + $0x150] sm:$0xff]   ;;  %1504 = vst [vmem:[#allocation2 + $0x168] sm:$0xf] %v1503_v24  ;;  %v1542_v43 = vsel %vm9136_vm14, %v1540_v5, %v1541_v15  ;;  %v1544_v6 = vor.u32 %v1543_v17, %v1541_v15  ;;  %v1465_v50 = vrot.slane %v1463_v14, 7  ;;  %v1532_v34 = vrot.slane %v1466_v18, 5  ;;  %v8589_v48 = vld [vmem:[%s10957_s3 + $0xc8] sm:$0xff]  }
 0x14d   : > { %v1485_v42 = vsel %vm9142_vm15, %v1477_v4, %v1484_v25  ;;  %1566 = vst [vmem:[#allocation2 + $0x188] sm:$0xf] %v1542_v43  ;;  %v1567_v39 = vld [vmem:[#allocation2 + $0x194] sm:$0xf]  ;;  %v1534_v41 = vrot.slane %v1463_v14, 4  ;;  %8231 = vmatpush3.bf16.msra.mxu1 %v8583_v3  ;;  %7637 = vmatpush3.bf16.msra.mxu0 %v8585_v27  ;;  %v8590_v54 = vld [vmem:[%s10957_s3 + $0x148] sm:$0xff]  }
 0x14e   : > { %1509 = vst [vmem:[#allocation2 + $0x18c] sm:$0xf] %v1485_v42  ;;  %v1545_v19 = vrot.slane %v1544_v6, 4  ;;  %v1468_v22 = vor.u32 %v1466_v18, %v1465_v50  ;;  %v1533_v47 = vsel %vm9136_vm14, %v1531_v53, %v1532_v34  ;;  %8232 = vmatprep.subr.bf16.mxu1 %v8586_v28  ;;  %v1563_v46 = vld [vmem:[#allocation2 + $0x17c] sm:$0xf]  ;;  %7638 = vmatprep.subr.bf16.mxu0 %v8587_v44  ;;  %v8591_v59 = vld [vmem:[%s10957_s3 + $0x100] sm:$0xff]  }
 0x14f   : > { %v1535_v20 = vor.u32 %v1534_v41, %v1532_v34  ;;  %1562 = vst [vmem:[#allocation2 + $0x170] sm:$0xf] %v1533_v47  ;;  %v8593_v29 = vld [vmem:[%s10957_s3 + $0x140] sm:$0xff]   ;;  %v8594_v8 = vld [vmem:[%s10957_s3 + $0x78] sm:$0xff]   ;;  %v8600_v35 = vld [vmem:[%s10957_s3 + $0x70] sm:$0xff]  }
 0x150   : > { %v1568_v21 = vsel %vm9154_vm0, %v1545_v19, %v1567_v39  ;;  %v1469_v7 = vsel %vm9142_vm15, %v1461_v58, %v1468_v22  ;;  %2704 = vmatmul.mubr.bf16.gmra.mxu0 %v9785_v36  ;;  %v8599_v37 = vld [vmem:[%s10957_s3 + $0xb8] sm:$0xff]   ;;  %v9812_v31 = vld [vmem:[#allocation2 + $0x94] ss:$12 sps:$4 sm:$0xff]   ;;  %v8604_v12 = vld [vmem:[%s10957_s3 + $0x68] sm:$0xff]  }
 0x151   : > { %1569 = vst [vmem:[#allocation2 + $0x194] sm:$0xf] %v1568_v21  ;;  %1505 = vst [vmem:[#allocation2 + $0x174] sm:$0xf] %v1469_v7  ;;  %v1536_v61 = vrot.slane %v1535_v20, 4  ;;  %8233 = vmatpush3.bf16.msra.mxu1 %v8586_v28  ;;  %7639 = vmatpush3.bf16.msra.mxu0 %v8589_v48  ;;  %v8601_v62 = vld [vmem:[%s10957_s3 + $0x30] sm:$0xff]  }
 0x152   : > { %3208 = vmatprep.mubr.bf16.mxu0 %v9744_v2  ;;  %8234 = vmatprep.subr.bf16.mxu1 %v8590_v54  ;;  %v8603_v52 = vld [vmem:[#allocation2 + $0xb0] ss:$12 sps:$4 sm:$0xff]   ;;  %v8598_v57 = vld [vmem:[#allocation2 + $0x98] ss:$12 sps:$4 sm:$0xff]   ;;  %v8606_v56 = vld [vmem:[%s10957_s3 + $0x28] sm:$0xff]  }
 0x153   : > { %v1564_v23 = vsel %vm9154_vm0, %v1536_v61, %v1563_v46  ;;  %7640 = vmatprep.subr.bf16.mxu0 %v8591_v59  ;;  %v8602_v0 = vld [vmem:[%s10957_s3 + $0xb0] sm:$0xff]   ;;  %v8610_v38 = vld [vmem:[%s10957_s3 + $0xa8] sm:$0xff]   ;;  %v8612_v40 = vld [vmem:[%s10957_s3 + $0x60] sm:$0xff]  }
 0x154   : > { %1565 = vst [vmem:[#allocation2 + $0x17c] sm:$0xf] %v1564_v23  ;;  %v9828_v33 = vld [vmem:[#allocation2 + $0x90] ss:$12 sps:$4 sm:$0xff]   ;;  %v9836_v60 = vld [vmem:[#allocation2 + $0xac] ss:$12 sps:$4 sm:$0xff]  }
 0x155   : > { %8235 = vmatpush3.bf16.msra.mxu1 %v8590_v54  ;;  %7641 = vmatpush3.bf16.msra.mxu0 %v8592_v9  ;;  %v8613_v51 = vld [vmem:[%s10957_s3 + $0x20] sm:$0xff]   ;;  %v8609_v3 = vld [vmem:[#allocation2 + $0xc8] ss:$12 sps:$4 sm:$0xff]   ;;  %v8615_v63 = vld [vmem:[%s10957_s3 + $0x58] sm:$0xff]  }
 0x156   : > { %8236 = vmatprep.subr.bf16.mxu1 %v8593_v29  ;;  %7678 = vmatprep.subr.bf16.mxu0 %v8594_v8  ;;  %v8614_v1 = vld [vmem:[%s10957_s3 + $0xa0] sm:$0xff]   ;;  %v8611_v5 = vld [vmem:[#allocation2 + $0x68] ss:$12 sps:$4 sm:$0xff]   ;;  %v8617_v10 = vld [vmem:[%s10957_s3 + $0x18] sm:$0xff]  }
 0x157   : > { %v9852_v11 = vld [vmem:[#allocation2 + $0xa8] ss:$12 sps:$4 sm:$0xff]   ;;  %v8620_v49 = vld [vmem:[%s10957_s3 + $0x98] sm:$0xff]   ;;  %v9860_v45 = vld [vmem:[#allocation2 + $0xc4] ss:$12 sps:$4 sm:$0xff]  }
 0x158   : > { %3209 = vmatmul.mubr.bf16.vlgmr.msra.gmra.mxu0 %v9785_v36  ;;  %v8621_v4 = vld [vmem:[%s10957_s3 + $0x50] sm:$0xff]   ;;  %v8624_v13 = vld [vmem:[%s10957_s3 + $0x48] sm:$0xff]   ;;  %v8631_v18 = vld [vmem:[%s10957_s3 + $0x40] sm:$0xff]  }
 0x159   : > { %8237 = vmatpush3.bf16.msra.mxu1 %v8593_v29  ;;  %7679 = vmatpush3.bf16.msra.mxu0 %v8595_v26  ;;  %v8622_v30 = vld [vmem:[%s10957_s3 + $0x10] sm:$0xff]   ;;  %v8626_v15 = vld [vmem:[%s10957_s3 + $0x8] sm:$0xff]   ;;  %v8632_v24 = vld [vmem:[%s10957_s3] sm:$0xff]  }
 0x15a   : > { %3216 = vmatprep.mubr.bf16.mxu0 %v9812_v31  ;;  %8246 = vmatprep.subr.bf16.mxu1 %v8599_v37  ;;  %v8623_v55 = vld [vmem:[%s10957_s3 + $0x90] sm:$0xff]   ;;  %v9876_v17 = vld [vmem:[#allocation2 + $0xc0] ss:$12 sps:$4 sm:$0xff]   ;;  %v8634_v25 = vld [vmem:[%s10957_s3 + $0x1f8] sm:$0xff]  }
 0x15b   : > { %7680 = vmatprep.subr.bf16.mxu0 %v8600_v35  ;;  %v8630_v14 = vld [vmem:[%s10957_s3 + $0x88] sm:$0xff]   ;;  %v8629_v58 = vld [vmem:[#allocation2 + $0x64] ss:$12 sps:$4 sm:$0xff]   ;;  %v8635_v27 = vld [vmem:[%s10957_s3 + $0x1b8] sm:$0xff]  }
 0x15c   : > { %8239 = vmatmul.mubr.bf16.vlgmr.msra.gmra.mxu1 %v8598_v57  ;;  %v8633_v53 = vld [vmem:[%s10957_s3 + $0x80] sm:$0xff]   ;;  %v8637_v28 = vld [vmem:[%s10957_s3 + $0x238] sm:$0xff]   ;;  %v8639_v43 = vld [vmem:[%s10957_s3 + $0x1f0] sm:$0xff]  }
 0x15d   : > { %8247 = vmatpush3.bf16.msra.mxu1 %v8599_v37  ;;  %8242 = vmatprep.mubr.bf16.mxu1 %v8603_v52  ;;  %v8627_v6 = vld [vmem:[#allocation2 + $0x60] ss:$12 sps:$4 sm:$0xff]   ;;  %v8640_v34 = vld [vmem:[%s10957_s3 + $0x1b0] sm:$0xff]   ;;  %v8638_v42 = vld [vmem:[#allocation2 + $0x98] ss:$12 sps:$4 sm:$0xff]  }
 0x15e   : > { %7681 = vmatpush3.bf16.msra.mxu0 %v8601_v62  ;;  %8248 = vmatprep.subr.bf16.mxu1 %v8602_v0  ;;  %v8636_v50 = vld [vmem:[#allocation2 + $0x80] ss:$12 sps:$4 sm:$0xff]   ;;  %v8641_v44 = vld [vmem:[%s10957_s3 + $0x230] sm:$0xff]   ;;  %v8646_v20 = vld [vmem:[#allocation2 + $0x98] ss:$12 sps:$4 sm:$0xff]  }
 0x15f   : > { %7682 = vmatprep.subr.bf16.mxu0 %v8604_v12  ;;  %v8642_v39 = vld [vmem:[%s10957_s3 + $0x1e8] sm:$0xff]   ;;  %v8648_v22 = vld [vmem:[%s10957_s3 + $0x1a0] sm:$0xff]   ;;  %v8644_v48 = vld [vmem:[#allocation2 + $0xb0] ss:$12 sps:$4 sm:$0xff]  }
 0x160   : > { %3217 = vmatmul.mubr.bf16.gmra.mxu0 %v9828_v33  ;;  %v8643_v41 = vld [vmem:[%s10957_s3 + $0x1a8] sm:$0xff]   ;;  %v8649_v47 = vld [vmem:[%s10957_s3 + $0x220] sm:$0xff]   ;;  %v8650_v54 = vld [vmem:[%s10957_s3 + $0x1d8] sm:$0xff]  }
 0x161   : > { %8249 = vmatpush3.bf16.msra.mxu1 %v8602_v0  ;;  %3224 = vmatprep.mubr.bf16.mxu0 %v9836_v60  ;;  %v8645_v19 = vld [vmem:[%s10957_s3 + $0x228] sm:$0xff]   ;;  %v8651_v21 = vld [vmem:[%s10957_s3 + $0x198] sm:$0xff]   ;;  %v8653_v46 = vld [vmem:[%s10957_s3 + $0x1d0] sm:$0xff]  }
 0x162   : > { %7683 = vmatpush3.bf16.msra.mxu0 %v8606_v56  ;;  %8250 = vmatprep.subr.bf16.mxu1 %v8610_v38  ;;  %v8652_v7 = vld [vmem:[%s10957_s3 + $0x218] sm:$0xff]   ;;  %v8655_v59 = vld [vmem:[%s10957_s3 + $0x210] sm:$0xff]   ;;  %v8656_v61 = vld [vmem:[%s10957_s3 + $0x1c8] sm:$0xff]  }
 0x163   : > { %7684 = vmatprep.subr.bf16.mxu0 %v8612_v40  ;;  %v8657_v23 = vld [vmem:[%s10957_s3 + $0x188] sm:$0xff]   ;;  %v8659_v29 = vld [vmem:[%s10957_s3 + $0x1c0] sm:$0xff]   ;;  %v8662_v37 = vld [vmem:[%s10957_s3 + $0x138] sm:$0xff]  }
 0x164   : > { %8243 = vmatmul.mubr.bf16.gmra.mxu1 %v8609_v3  ;;  %v8658_v9 = vld [vmem:[%s10957_s3 + $0x208] sm:$0xff]   ;;  %v8660_v8 = vld [vmem:[%s10957_s3 + $0x180] sm:$0xff]   ;;  %v8663_v35 = vld [vmem:[%s10957_s3 + $0xf8] sm:$0xff]  }
 0x165   : > { %8251 = vmatpush3.bf16.msra.mxu1 %v8610_v38  ;;  %8262 = vmatprep.mubr.bf16.mxu1 %v8611_v5  ;;  %v8661_v26 = vld [vmem:[%s10957_s3 + $0x200] sm:$0xff]   ;;  %v8667_v62 = vld [vmem:[%s10957_s3 + $0x130] sm:$0xff]   ;;  %v8670_v56 = vld [vmem:[%s10957_s3 + $0x128] sm:$0xff]  }
 0x166   : > { %7685 = vmatpush3.bf16.msra.mxu0 %v8613_v51  ;;  %8252 = vmatprep.subr.bf16.mxu1 %v8614_v1  ;;  %v8664_v52 = vld [vmem:[#allocation2 + $0xb0] ss:$12 sps:$4 sm:$0xff]   ;;  %v8666_v12 = vld [vmem:[#allocation2 + $0xc8] ss:$12 sps:$4 sm:$0xff]   ;;  %v8674_v40 = vld [vmem:[%s10957_s3 + $0x120] sm:$0xff]  }
 0x167   : > { %7686 = vmatprep.subr.bf16.mxu0 %v8615_v63  ;;  %v8668_v57 = vld [vmem:[%s10957_s3 + $0xf0] sm:$0xff]   ;;  %v8673_v38 = vld [vmem:[%s10957_s3 + $0x168] sm:$0xff]   ;;  %v8676_v3 = vld [vmem:[%s10957_s3 + $0x160] sm:$0xff]  }
 0x168   : > { %3225 = vmatmul.mubr.bf16.gmra.mxu0 %v9852_v11  ;;  %v8669_v0 = vld [vmem:[%s10957_s3 + $0x170] sm:$0xff]   ;;  %v8678_v51 = vld [vmem:[#allocation2 + $0xe0] ss:$12 sps:$4 sm:$0xff]   ;;  %v8677_v63 = vld [vmem:[%s10957_s3 + $0x118] sm:$0xff]  }
 0x169   : > { %8253 = vmatpush3.bf16.msra.mxu1 %v8614_v1  ;;  %3232 = vmatprep.mubr.bf16.mxu0 %v9860_v45  ;;  %v8675_v1 = vld [vmem:[%s10957_s3 + $0xe0] sm:$0xff]   ;;  %v8679_v5 = vld [vmem:[%s10957_s3 + $0xd8] sm:$0xff]  }
 0x16a   : > { %7687 = vmatpush3.bf16.msra.mxu0 %v8617_v10  ;;  %8254 = vmatprep.subr.bf16.mxu1 %v8620_v49  ;;  %v8682_v10 = vld [vmem:[%s10957_s3 + $0x158] sm:$0xff]  }
 0x16b   : > { %7688 = vmatprep.subr.bf16.mxu0 %v8621_v4  ;;  %v8684_v4 = vld [vmem:[%s10957_s3 + $0xd0] sm:$0xff]  }
 0x16d   : > { %8255 = vmatpush3.bf16.msra.mxu1 %v8620_v49  ;;  %v10022_v49 = vld [vmem:[#allocation2 + $0xdc] ss:$12 sps:$4 sm:$0xff]  }
 0x16e   : > { %7689 = vmatpush3.bf16.msra.mxu0 %v8622_v30  ;;  %8256 = vmatprep.subr.bf16.mxu1 %v8623_v55  ;;  %v8686_v30 = vld [vmem:[%s10957_s3 + $0x108] sm:$0xff]  }
 0x16f   : > { %7690 = vmatprep.subr.bf16.mxu0 %v8624_v13  ;;  %v8688_v13 = vld [vmem:[%s10957_s3 + $0xc8] sm:$0xff]  }
 0x170   : > { %3233 = vmatmul.mubr.bf16.gmra.mxu0 %v9876_v17 }
 0x171   : > { %8257 = vmatpush3.bf16.msra.mxu1 %v8623_v55  ;;  %3546 = vmatprep.mubr.bf16.mxu0 %v8629_v58  ;;  %v10035_v55 = vld [vmem:[#allocation2 + $0xd8] ss:$12 sps:$4 sm:$0xff]  }
 0x172   : > { %7691 = vmatpush3.bf16.msra.mxu0 %v8626_v15  ;;  %8258 = vmatprep.subr.bf16.mxu1 %v8630_v14  ;;  %v8689_v15 = vld [vmem:[%s10957_s3 + $0x148] sm:$0xff]   ;;  %v8693_v58 = vld [vmem:[%s10957_s3 + $0x78] sm:$0xff]  }
 0x173   : > { %7692 = vmatprep.subr.bf16.mxu0 %v8631_v18  ;;  %v8692_v18 = vld [vmem:[%s10957_s3 + $0x140] sm:$0xff]  }
 0x175   : > { %8259 = vmatpush3.bf16.msra.mxu1 %v8630_v14  ;;  %v8691_v14 = vld [vmem:[%s10957_s3 + $0xc0] sm:$0xff]  }
 0x176   : > { %7693 = vmatpush3.bf16.msra.mxu0 %v8632_v24  ;;  %8260 = vmatprep.subr.bf16.mxu1 %v8633_v53  ;;  %v8694_v24 = vld [vmem:[%s10957_s3 + $0x38] sm:$0xff]  }
 0x177   : > { %7730 = vmatprep.subr.bf16.mxu0 %v8634_v25  ;;  %v8700_v25 = vld [vmem:[%s10957_s3 + $0x70] sm:$0xff]  }
 0x179   : > { %8261 = vmatpush3.bf16.msra.mxu1 %v8633_v53  ;;  %3547 = vmatmul.mubr.bf16.vlgmr.msra.gmra.mxu0 %v8627_v6  ;;  %v8699_v53 = vld [vmem:[%s10957_s3 + $0xb8] sm:$0xff]  }
 0x17a   : > { %7731 = vmatpush3.bf16.msra.mxu0 %v8635_v27  ;;  %3554 = vmatprep.mubr.bf16.mxu0 %v9744_v2  ;;  %v8647_v2 = vld [vmem:[%s10957_s3 + $0x1e0] sm:$0xff]  }
 0x17b   : > { %8270 = vmatprep.subr.bf16.mxu1 %v8637_v28  ;;  %7732 = vmatprep.subr.bf16.mxu0 %v8639_v43  ;;  %v10066_v27 = vld [vmem:[#allocation2 + $0xf4] ss:$12 sps:$4 sm:$0xff]   ;;  %v8703_v43 = vld [vmem:[#allocation2 + $0x110] ss:$12 sps:$4 sm:$0xff]   ;;  %v8698_v6 = vld [vmem:[#allocation2 + $0xf8] ss:$12 sps:$4 sm:$0xff]  }
 0x17c   : > { %8263 = vmatmul.mubr.bf16.vlgmr.msra.gmra.mxu1 %v8636_v50  ;;  %v8701_v50 = vld [vmem:[%s10957_s3 + $0x30] sm:$0xff]  }
 0x17d   : > { %8266 = vmatprep.mubr.bf16.mxu1 %v8638_v42  ;;  %8271 = vmatpush3.bf16.msra.mxu1 %v8637_v28  ;;  %v8704_v42 = vld [vmem:[%s10957_s3 + $0x68] sm:$0xff]  }
 0x17e   : > { %7733 = vmatpush3.bf16.msra.mxu0 %v8640_v34  ;;  %8272 = vmatprep.subr.bf16.mxu1 %v8641_v44  ;;  %v8702_v34 = vld [vmem:[%s10957_s3 + $0xb0] sm:$0xff]  }
 0x17f   : > { %7734 = vmatprep.subr.bf16.mxu0 %v8642_v39 }
 0x181   : > { %8273 = vmatpush3.bf16.msra.mxu1 %v8641_v44  ;;  %3555 = vmatmul.mubr.bf16.gmra.mxu0 %v9785_v36  ;;  %v8654_v36 = vld [vmem:[%s10957_s3 + $0x190] sm:$0xff]  }
 0x182   : > { %7735 = vmatpush3.bf16.msra.mxu0 %v8643_v41  ;;  %3562 = vmatprep.mubr.bf16.mxu0 %v9812_v31 }
 0x183   : > { %8274 = vmatprep.subr.bf16.mxu1 %v8645_v19  ;;  %7736 = vmatprep.subr.bf16.mxu0 %v8647_v2  ;;  %v10086_v2 = vld [vmem:[#allocation2 + $0xf0] ss:$12 sps:$4 sm:$0xff]  }
 0x184   : > { %8267 = vmatmul.mubr.bf16.gmra.mxu1 %v8644_v48  ;;  %v8712_v48 = vld [vmem:[%s10957_s3 + $0x60] sm:$0xff]  }
 0x185   : > { %8275 = vmatpush3.bf16.msra.mxu1 %v8645_v19  ;;  %8286 = vmatprep.mubr.bf16.mxu1 %v8646_v20  ;;  %v8705_v19 = vld [vmem:[%s10957_s3 + $0x28] sm:$0xff]  }
 0x186   : > { %7737 = vmatpush3.bf16.msra.mxu0 %v8648_v22  ;;  %8276 = vmatprep.subr.bf16.mxu1 %v8649_v47 }
 0x187   : > { %7738 = vmatprep.subr.bf16.mxu0 %v8650_v54  ;;  %v10098_v54 = vld [vmem:[#allocation2 + $0x10c] ss:$12 sps:$4 sm:$0xff]  }
 0x189   : > { %8277 = vmatpush3.bf16.msra.mxu1 %v8649_v47  ;;  %3563 = vmatmul.mubr.bf16.gmra.mxu0 %v9828_v33  ;;  %v8710_v47 = vld [vmem:[%s10957_s3 + $0xa8] sm:$0xff]  }
 0x18a   : > { %7739 = vmatpush3.bf16.msra.mxu0 %v8651_v21  ;;  %3570 = vmatprep.mubr.bf16.mxu0 %v9836_v60 }
 0x18b   : > { %8278 = vmatprep.subr.bf16.mxu1 %v8652_v7  ;;  %7740 = vmatprep.subr.bf16.mxu0 %v8653_v46  ;;  %v8713_v46 = vld [vmem:[%s10957_s3 + $0x20] sm:$0xff]  }
 0x18d   : > { %8279 = vmatpush3.bf16.msra.mxu1 %v8652_v7  ;;  %v8709_v7 = vld [vmem:[#allocation2 + $0x128] ss:$12 sps:$4 sm:$0xff]  }
 0x18e   : > { %7741 = vmatpush3.bf16.msra.mxu0 %v8654_v36  ;;  %8280 = vmatprep.subr.bf16.mxu1 %v8655_v59  ;;  %v8714_v36 = vld [vmem:[%s10957_s3 + $0xa0] sm:$0xff]  }
 0x18f   : > { %7742 = vmatprep.subr.bf16.mxu0 %v8656_v61  ;;  %v8711_v61 = vld [vmem:[#allocation2 + $0xc8] ss:$12 sps:$4 sm:$0xff]  }
 0x191   : > { %8281 = vmatpush3.bf16.msra.mxu1 %v8655_v59  ;;  %3571 = vmatmul.mubr.bf16.gmra.mxu0 %v9852_v11 }
 0x192   : > { %7743 = vmatpush3.bf16.msra.mxu0 %v8657_v23  ;;  %3949 = vmatprep.mubr.bf16.mxu0 %v9812_v31  ;;  %v8665_v31 = vld [vmem:[%s10957_s3 + $0x178] sm:$0xff]  }
 0x193   : > { %8282 = vmatprep.subr.bf16.mxu1 %v8658_v9  ;;  %7744 = vmatprep.subr.bf16.mxu0 %v8659_v29  ;;  %v8715_v23 = vld [vmem:[%s10957_s3 + $0x58] sm:$0xff]  }
 0x195   : > { %8283 = vmatpush3.bf16.msra.mxu1 %v8658_v9 }
 0x196   : > { %7745 = vmatpush3.bf16.msra.mxu0 %v8660_v8  ;;  %8284 = vmatprep.subr.bf16.mxu1 %v8661_v26 }
 0x197   : > { %7782 = vmatprep.subr.bf16.mxu0 %v8662_v37  ;;  %v10120_v37 = vld [vmem:[#allocation2 + $0x108] ss:$12 sps:$4 sm:$0xff]  }
 0x199   : > { %8285 = vmatpush3.bf16.msra.mxu1 %v8661_v26  ;;  %3950 = vmatmul.mubr.bf16.vlgmr.msra.gmra.mxu0 %v9828_v33  ;;  %v8671_v33 = vld [vmem:[%s10957_s3 + $0xe8] sm:$0xff]   ;;  %v8716_v26 = vld [vmem:[%s10957_s3 + $0x18] sm:$0xff]  }
 0x19a   : > { %7783 = vmatpush3.bf16.msra.mxu0 %v8663_v35  ;;  %3957 = vmatprep.mubr.bf16.mxu0 %v9836_v60  ;;  %v8672_v60 = vld [vmem:[#allocation2 + $0xe0] ss:$12 sps:$4 sm:$0xff]  }
 0x19b   : > { %8294 = vmatprep.subr.bf16.mxu1 %v8665_v31  ;;  %7784 = vmatprep.subr.bf16.mxu0 %v8667_v62  ;;  %v8721_v62 = vld [vmem:[%s10957_s3 + $0x50] sm:$0xff]  }
 0x19c   : > { %8287 = vmatmul.mubr.bf16.vlgmr.msra.gmra.mxu1 %v8664_v52 }
 0x19d   : > { %8290 = vmatprep.mubr.bf16.mxu1 %v8666_v12  ;;  %8295 = vmatpush3.bf16.msra.mxu1 %v8665_v31  ;;  %v8720_v31 = vld [vmem:[%s10957_s3 + $0x98] sm:$0xff]   ;;  %v8722_v12 = vld [vmem:[%s10957_s3 + $0x10] sm:$0xff]  }
 0x19e   : > { %7785 = vmatpush3.bf16.msra.mxu0 %v8668_v57  ;;  %8296 = vmatprep.subr.bf16.mxu1 %v8669_v0  ;;  %v10132_v57 = vld [vmem:[#allocation2 + $0x124] ss:$12 sps:$4 sm:$0xff]  }
 0x19f   : > { %7786 = vmatprep.subr.bf16.mxu0 %v8670_v56  ;;  %v8723_v56 = vld [vmem:[%s10957_s3 + $0x90] sm:$0xff]  }
 0x1a1   : > { %8297 = vmatpush3.bf16.msra.mxu1 %v8669_v0  ;;  %3958 = vmatmul.mubr.bf16.gmra.mxu0 %v9852_v11  ;;  %v8683_v11 = vld [vmem:[%s10957_s3 + $0x110] sm:$0xff]  }
 0x1a2   : > { %7787 = vmatpush3.bf16.msra.mxu0 %v8671_v33  ;;  %3965 = vmatprep.mubr.bf16.mxu0 %v9860_v45  ;;  %v8685_v45 = vld [vmem:[%s10957_s3 + $0x150] sm:$0xff]  }
 0x1a3   : > { %8298 = vmatprep.subr.bf16.mxu1 %v8673_v38  ;;  %7788 = vmatprep.subr.bf16.mxu0 %v8674_v40 }
 0x1a4   : > { %8291 = vmatmul.mubr.bf16.gmra.mxu1 %v8672_v60 }
 0x1a5   : > { %8299 = vmatpush3.bf16.msra.mxu1 %v8673_v38  ;;  %8310 = vmatprep.mubr.bf16.mxu1 %v8678_v51  ;;  %v8724_v38 = vld [vmem:[%s10957_s3 + $0x48] sm:$0xff]  }
 0x1a6   : > { %7789 = vmatpush3.bf16.msra.mxu0 %v8675_v1  ;;  %8300 = vmatprep.subr.bf16.mxu1 %v8676_v3  ;;  %v8725_v1 = vld [vmem:[%s10957_s3 + $0x8] sm:$0xff]  }
 0x1a7   : > { %7790 = vmatprep.subr.bf16.mxu0 %v8677_v63 }
 0x1a9   : > { %8301 = vmatpush3.bf16.msra.mxu1 %v8676_v3  ;;  %3966 = vmatmul.mubr.bf16.gmra.mxu0 %v9876_v17  ;;  %v8690_v17 = vld [vmem:[%s10957_s3 + $0x100] sm:$0xff]  }
 0x1aa   : > { %7791 = vmatpush3.bf16.msra.mxu0 %v8679_v5  ;;  %3973 = vmatprep.mubr.bf16.mxu0 %v10022_v49  ;;  %v10154_v3 = vld [vmem:[#allocation2 + $0x120] ss:$12 sps:$4 sm:$0xff]  }
 0x1ab   : > { %8302 = vmatprep.subr.bf16.mxu1 %v8682_v10  ;;  %7792 = vmatprep.subr.bf16.mxu0 %v8683_v11  ;;  %v8729_v5 = vld [vmem:[%s10957_s3 + $0x88] sm:$0xff]  }
 0x1ad   : > { %8303 = vmatpush3.bf16.msra.mxu1 %v8682_v10  ;;  %v8730_v10 = vld [vmem:[%s10957_s3 + $0x40] sm:$0xff]  }
 0x1ae   : > { %7793 = vmatpush3.bf16.msra.mxu0 %v8684_v4  ;;  %8304 = vmatprep.subr.bf16.mxu1 %v8685_v45  ;;  %v8728_v4 = vld [vmem:[#allocation2 + $0xc4] ss:$12 sps:$4 sm:$0xff]  }
 0x1af   : > { %7794 = vmatprep.subr.bf16.mxu0 %v8686_v30  ;;  %v8731_v30 = vld [vmem:[%s10957_s3] sm:$0xff]  }
 0x1b1   : > { %8305 = vmatpush3.bf16.msra.mxu1 %v8685_v45  ;;  %3974 = vmatmul.mubr.bf16.gmra.mxu0 %v10035_v55 }
 0x1b2   : > { %7795 = vmatpush3.bf16.msra.mxu0 %v8688_v13  ;;  %4473 = vmatprep.mubr.bf16.mxu0 %v10022_v49  ;;  %v8732_v13 = vld [vmem:[%s10957_s3 + $0x80] sm:$0xff]  }
 0x1b3   : > { %8306 = vmatprep.subr.bf16.mxu1 %v8689_v15  ;;  %7796 = vmatprep.subr.bf16.mxu0 %v8690_v17  ;;  %v8733_v17 = vld [vmem:[%s10957_s3 + $0x1f8] sm:$0xff]  }
 0x1b5   : > { %8307 = vmatpush3.bf16.msra.mxu1 %v8689_v15 }
 0x1b6   : > { %7797 = vmatpush3.bf16.msra.mxu0 %v8691_v14  ;;  %8308 = vmatprep.subr.bf16.mxu1 %v8692_v18 }
 0x1b7   : > { %7834 = vmatprep.subr.bf16.mxu0 %v8693_v58  ;;  %v7486_v28 = vpop.f32.mrf.mxu0 }
 0x1b9   : > { %8309 = vmatpush3.bf16.msra.mxu1 %v8692_v18  ;;  %4474 = vmatmul.mubr.bf16.vlgmr.msra.gmra.mxu0 %v10035_v55  ;;  %v7487_v44 = vpop.f32.mrf.mxu0 }
 0x1ba   : > { %7835 = vmatpush3.bf16.msra.mxu0 %v8694_v24  ;;  %4481 = vmatprep.mubr.bf16.mxu0 %v10066_v27  ;;  %v10079_v39 = vadd.f32 %v7487_v44, %v7486_v28  ;;  %v10096_v20 = vpop.f32.mrf.mxu1  ;;  %v8734_v24 = vld [vmem:[%s10957_s3 + $0x1b8] sm:$0xff]   ;;  %v8739_v44 = vld [vmem:[%s10957_s3 + $0x1b0] sm:$0xff]  }
 0x1bb   : > { %8318 = vmatprep.subr.bf16.mxu1 %v8699_v53  ;;  %7836 = vmatprep.subr.bf16.mxu0 %v8700_v25  ;;  %v10081_v41 = vpop.f32.mrf.mxu0  ;;  %v8736_v28 = vld [vmem:[%s10957_s3 + $0x238] sm:$0xff]  }
 0x1bc   : > { %8311 = vmatmul.mubr.bf16.vlgmr.msra.gmra.mxu1 %v8698_v6  ;;  %v10111_v9 = vpop.f32.mrf.mxu1 }
 0x1bd   : > { %8319 = vmatpush3.bf16.msra.mxu1 %v8699_v53  ;;  %8314 = vmatprep.mubr.bf16.mxu1 %v8703_v43  ;;  %v10088_v22 = vpop.f32.mrf.mxu0  ;;  %v8726_v53 = vld [vmem:[#allocation2 + $0xc0] ss:$12 sps:$4 sm:$0xff]   ;;  %v8738_v43 = vld [vmem:[%s10957_s3 + $0x1f0] sm:$0xff]  }
 0x1be   : > { %7837 = vmatpush3.bf16.msra.mxu0 %v8701_v50  ;;  %8320 = vmatprep.subr.bf16.mxu1 %v8702_v34  ;;  %v10130_v52 = vpop.f32.mrf.mxu1 }
 0x1bf   : > { %7838 = vmatprep.subr.bf16.mxu0 %v8704_v42  ;;  %v7492_v21 = vpop.f32.mrf.mxu0  ;;  %v8740_v42 = vld [vmem:[%s10957_s3 + $0x230] sm:$0xff]  }
 0x1c0   : > { %v10145_v40 = vpop.f32.mrf.mxu1 }
 0x1c1   : > { %8321 = vmatpush3.bf16.msra.mxu1 %v8702_v34  ;;  %4482 = vmatmul.mubr.bf16.gmra.mxu0 %v10086_v2  ;;  %v7493_v59 = vpop.f32.mrf.mxu0  ;;  %v8735_v34 = vld [vmem:[#allocation2 + $0xe0] ss:$12 sps:$4 sm:$0xff]  }
 0x1c2   : > { %7839 = vmatpush3.bf16.msra.mxu0 %v8705_v19  ;;  %4489 = vmatprep.mubr.bf16.mxu0 %v10098_v54  ;;  %v10113_v29 = vadd.f32 %v7493_v59, %v7492_v21  ;;  %v8744_v59 = vld [vmem:[%s10957_s3 + $0x228] sm:$0xff]  }
 0x1c3   : > { %8322 = vmatprep.subr.bf16.mxu1 %v8710_v47  ;;  %7840 = vmatprep.subr.bf16.mxu0 %v8712_v48  ;;  %v10115_v8 = vpop.f32.mrf.mxu0  ;;  %v8741_v48 = vld [vmem:[%s10957_s3 + $0x1e8] sm:$0xff]  }
 0x1c4   : > { %8315 = vmatmul.mubr.bf16.gmra.mxu1 %v8709_v7 }
 0x1c5   : > { %8323 = vmatpush3.bf16.msra.mxu1 %v8710_v47  ;;  %8334 = vmatprep.mubr.bf16.mxu1 %v8711_v61  ;;  %v10122_v35 = vpop.f32.mrf.mxu0  ;;  %v10164_v11 = vpop.f32.mrf.mxu1  ;;  %v8737_v47 = vld [vmem:[#allocation2 + $0xf8] ss:$12 sps:$4 sm:$0xff]  }
 0x1c6   : > { %7841 = vmatpush3.bf16.msra.mxu0 %v8713_v46  ;;  %8324 = vmatprep.subr.bf16.mxu1 %v8714_v36  ;;  %v8742_v46 = vld [vmem:[%s10957_s3 + $0x1a8] sm:$0xff]   ;;  %v8746_v61 = vld [vmem:[%s10957_s3 + $0x1e0] sm:$0xff]  }
 0x1c7   : > { %7842 = vmatprep.subr.bf16.mxu0 %v8715_v23  ;;  %v7498_v0 = vpop.f32.mrf.mxu0  ;;  %v10176_v14 = vpop.f32.mrf.mxu1 }
 0x1c9   : > { %8325 = vmatpush3.bf16.msra.mxu1 %v8714_v36  ;;  %4490 = vmatmul.mubr.bf16.gmra.mxu0 %v10120_v37  ;;  %v7499_v33 = vpop.f32.mrf.mxu0  ;;  %v10193_v6 = vpop.f32.mrf.mxu1 }
 0x1ca   : > { %7843 = vmatpush3.bf16.msra.mxu0 %v8716_v26  ;;  %4497 = vmatprep.mubr.bf16.mxu0 %v10132_v57  ;;  %v10147_v60 = vadd.f32 %v7499_v33, %v7498_v0  ;;  %v8748_v0 = vld [vmem:[%s10957_s3 + $0x220] sm:$0xff]  }
 0x1cb   : > { %8326 = vmatprep.subr.bf16.mxu1 %v8720_v31  ;;  %7844 = vmatprep.subr.bf16.mxu0 %v8721_v62  ;;  %v10149_v51 = vpop.f32.mrf.mxu0  ;;  %v10209_v21 = vpop.f32.mrf.mxu1  ;;  %v8747_v62 = vld [vmem:[%s10957_s3 + $0x1a0] sm:$0xff]  }
 0x1cd   : > { %8327 = vmatpush3.bf16.msra.mxu1 %v8720_v31  ;;  %v10156_v63 = vpop.f32.mrf.mxu0  ;;  %v8743_v31 = vld [vmem:[#allocation2 + $0x110] ss:$12 sps:$4 sm:$0xff]  }
 0x1ce   : > { %7845 = vmatpush3.bf16.msra.mxu0 %v8722_v12  ;;  %8328 = vmatprep.subr.bf16.mxu1 %v8723_v56 }
 0x1cf   : > { %7846 = vmatprep.subr.bf16.mxu0 %v8724_v38  ;;  %v7504_v45 = vpop.f32.mrf.mxu0 }
 0x1d1   : > { %8329 = vmatpush3.bf16.msra.mxu1 %v8723_v56  ;;  %4498 = vmatmul.mubr.bf16.gmra.mxu0 %v10154_v3  ;;  %v7505_v15 = vpop.f32.mrf.mxu0  ;;  %v8745_v56 = vld [vmem:[#allocation2 + $0xf8] ss:$12 sps:$4 sm:$0xff]  }
 0x1d2   : > { %7847 = vmatpush3.bf16.msra.mxu0 %v8725_v1  ;;  %4811 = vmatprep.mubr.bf16.mxu0 %v8728_v4  ;;  %v10178_v18 = vadd.f32 %v7505_v15, %v7504_v45  ;;  %v8750_v1 = vld [vmem:[%s10957_s3 + $0x198] sm:$0xff]   ;;  %v8752_v4 = vld [vmem:[%s10957_s3 + $0x1d0] sm:$0xff]  }
 0x1d3   : > { %8330 = vmatprep.subr.bf16.mxu1 %v8729_v5  ;;  %7848 = vmatprep.subr.bf16.mxu0 %v8730_v10  ;;  %v10180_v58 = vpop.f32.mrf.mxu0  ;;  %v8751_v10 = vld [vmem:[%s10957_s3 + $0x218] sm:$0xff]   ;;  %v8754_v15 = vld [vmem:[%s10957_s3 + $0x210] sm:$0xff]  }
 0x1d5   : > { %8331 = vmatpush3.bf16.msra.mxu1 %v8729_v5  ;;  %v10185_v25 = vpop.f32.mrf.mxu0 }
 0x1d6   : > { %7849 = vmatpush3.bf16.msra.mxu0 %v8731_v30  ;;  %8332 = vmatprep.subr.bf16.mxu1 %v8732_v13 }
 0x1d7   : > { %7886 = vmatprep.subr.bf16.mxu0 %v8733_v17 }
 0x1d8   : > { %v10195_v50 = vpop.f32.mrf.mxu0 }
 0x1d9   : > { %8333 = vmatpush3.bf16.msra.mxu1 %v8732_v13  ;;  %4812 = vmatmul.mubr.bf16.vlgmr.msra.gmra.mxu0 %v8726_v53  ;;  %v8753_v13 = vld [vmem:[%s10957_s3 + $0x190] sm:$0xff]  }
 0x1da   : > { %7887 = vmatpush3.bf16.msra.mxu0 %v8734_v24  ;;  %4819 = vmatprep.mubr.bf16.mxu0 %v10022_v49  ;;  %v10204_v19 = vpop.f32.mrf.mxu0  ;;  %v8755_v24 = vld [vmem:[%s10957_s3 + $0x1c8] sm:$0xff]  }
 0x1db   : > { %8342 = vmatprep.subr.bf16.mxu1 %v8736_v28  ;;  %7888 = vmatprep.subr.bf16.mxu0 %v8738_v43  ;;  %v10213_v7 = vpop.f32.mrf.mxu1  ;;  %v8756_v43 = vld [vmem:[%s10957_s3 + $0x188] sm:$0xff]  }
 0x1dc   : > { %8335 = vmatmul.mubr.bf16.vlgmr.msra.gmra.mxu1 %v8735_v34  ;;  %v10211_v49 = vpop.f32.mrf.mxu0 }
 0x1dd   : > { %8338 = vmatprep.mubr.bf16.mxu1 %v8737_v47  ;;  %8343 = vmatpush3.bf16.msra.mxu1 %v8736_v28  ;;  %v10229_v26 = vpop.f32.mrf.mxu1 }
 0x1de   : > { %7889 = vmatpush3.bf16.msra.mxu0 %v8739_v44  ;;  %8344 = vmatprep.subr.bf16.mxu1 %v8740_v42  ;;  %v10218_v36 = vpop.f32.mrf.mxu0  ;;  %v8757_v44 = vld [vmem:[%s10957_s3 + $0x208] sm:$0xff]  }
 0x1df   : > { %7890 = vmatprep.subr.bf16.mxu0 %v8741_v48  ;;  %v10245_v38 = vpop.f32.mrf.mxu1 }
 0x1e0   : > { %v10226_v23 = vpop.f32.mrf.mxu0 }
 0x1e1   : > { %8345 = vmatpush3.bf16.msra.mxu1 %v8740_v42  ;;  %4820 = vmatmul.mubr.bf16.gmra.mxu0 %v10035_v55  ;;  %v8749_v55 = vld [vmem:[%s10957_s3 + $0x1d8] sm:$0xff]   ;;  %v10261_v30 = vpop.f32.mrf.mxu1  ;;  %v8758_v42 = vld [vmem:[%s10957_s3 + $0x1c0] sm:$0xff]  }
 0x1e2   : > { %7891 = vmatpush3.bf16.msra.mxu0 %v8742_v46  ;;  %4827 = vmatprep.mubr.bf16.mxu0 %v10066_v27  ;;  %v10238_v12 = vpop.f32.mrf.mxu0  ;;  %v8759_v46 = vld [vmem:[%s10957_s3 + $0x180] sm:$0xff]  }
 0x1e3   : > { %8346 = vmatprep.subr.bf16.mxu1 %v8744_v59  ;;  %7892 = vmatprep.subr.bf16.mxu0 %v8746_v61  ;;  %v10277_v28 = vpop.f32.mrf.mxu1  ;;  %v346_v61 = vld [vmem:[#allocation2 + $0x1ac] sm:$0x8] }
 0x1e4   : > { %8339 = vmatmul.mubr.bf16.gmra.mxu1 %v8743_v31  ;;  %v10243_v33 = vpop.f32.mrf.mxu0 }
 0x1e5   : > { %8347 = vmatpush3.bf16.msra.mxu1 %v8744_v59  ;;  %8358 = vmatprep.mubr.bf16.mxu1 %v8745_v56  ;;  %v10293_v48 = vpop.f32.mrf.mxu1  ;;  %v8760_v59 = vld [vmem:[%s10957_s3 + $0x200] sm:$0xff]  }
 0x1e6   : > { %7893 = vmatpush3.bf16.msra.mxu0 %v8747_v62  ;;  %8348 = vmatprep.subr.bf16.mxu1 %v8748_v0  ;;  %v10250_v5 = vpop.f32.mrf.mxu0  ;;  %v8761_v62 = vld [vmem:[%s10957_s3 + $0x138] sm:$0xff]  }
 0x1e7   : > { %7894 = vmatprep.subr.bf16.mxu0 %v8749_v55  ;;  %v10311_v56 = vpop.f32.mrf.mxu1  ;;  %v8762_v55 = vld [vmem:[%s10957_s3 + $0xf8] sm:$0xff]  }
 0x1e8   : > { %v10258_v45 = vpop.f32.mrf.mxu0 }
 0x1e9   : > { %8349 = vmatpush3.bf16.msra.mxu1 %v8748_v0  ;;  %4828 = vmatmul.mubr.bf16.gmra.mxu0 %v10086_v2 }
 0x1ea   : > { %7895 = vmatpush3.bf16.msra.mxu0 %v8750_v1  ;;  %4835 = vmatprep.mubr.bf16.mxu0 %v10098_v54  ;;  %v10270_v17 = vpop.f32.mrf.mxu0 }
 0x1eb   : > { %8350 = vmatprep.subr.bf16.mxu1 %v8751_v10  ;;  %7896 = vmatprep.subr.bf16.mxu0 %v8752_v4  ;;  %v7491_v4 = vadd.f32 %v10088_v22, %v10081_v41  ;;  %v8768_v41 = vld [vmem:[%s10957_s3 + $0x170] sm:$0xff]  }
 0x1ec   : > { %v10275_v53 = vpop.f32.mrf.mxu0 }
 0x1ed   : > { %8351 = vmatpush3.bf16.msra.mxu1 %v8751_v10  ;;  %v8766_v10 = vld [vmem:[%s10957_s3 + $0x130] sm:$0xff]   ;;  %v2009_v16 = vadd.f32 %v7491_v4, %v10145_v40  ;;  %v8774_v40 = vld [vmem:[%s10957_s3 + $0x120] sm:$0xff]   ;;  %v7546_v4 = vadd.f32 %v10238_v12, %v10226_v23 }
 0x1ee   : > { %7897 = vmatpush3.bf16.msra.mxu0 %v8753_v13  ;;  %8352 = vmatprep.subr.bf16.mxu1 %v8754_v15  ;;  %v10282_v34 = vpop.f32.mrf.mxu0  ;;  %v7540_v13 = vadd.f32 %v10204_v19, %v10195_v50  ;;  %v7543_v50 = vadd.f32 %v10218_v36, %v10211_v49  ;;  %v8765_v19 = vld [vmem:[#allocation2 + $0x128] ss:$12 sps:$4 sm:$0xff]   ;;  %v8776_v23 = vld [vmem:[%s10957_s3 + $0x160] sm:$0xff]  }
 0x1ef   : > { %7898 = vmatprep.subr.bf16.mxu0 %v8755_v24  ;;  %v289_v24 = vld [vmem:[#allocation2 + $0x198] sm:$0x1]  ;;  %v8770_v49 = vld [vmem:[%s10957_s3 + $0xe8] sm:$0xff]  }
 0x1f0   : > { %v10290_v47 = vpop.f32.mrf.mxu0  ;;  %v290_v22 = vsel %vm8958_vm4, 0, %v289_v24  ;;  %v2282_v36 = vadd.f32 %v7543_v50, %v2009_v16  ;;  %v8773_v12 = vld [vmem:[#allocation2 + $0x140] ss:$12 sps:$4 sm:$0xff]   ;;  %v7503_v16 = vadd.f32 %v10156_v63, %v10149_v51  ;;  %v10409_v63 = vld [vmem:[#allocation2 + $0x13c] ss:$12 sps:$4 sm:$0xff]  }
 0x1f1   : > { %8353 = vmatpush3.bf16.msra.mxu1 %v8754_v15  ;;  %4836 = vmatmul.mubr.bf16.gmra.mxu0 %v10120_v37  ;;  %291 = vst [vmem:[#allocation2 + $0x198] sm:$0x1] %v290_v22  ;;  %v7549_v22 = vadd.f32 %v10250_v5, %v10243_v33 }
 0x1f2   : > { %7899 = vmatpush3.bf16.msra.mxu0 %v8756_v43  ;;  %5214 = vmatprep.mubr.bf16.mxu0 %v10066_v27  ;;  %v10302_v31 = vpop.f32.mrf.mxu0  ;;  %v347_v27 = vsel %vm9002_vm7, 0, %v346_v61  ;;  %v10329_v43 = vpop.f32.mrf.mxu1 }
 0x1f3   : > { %8354 = vmatprep.subr.bf16.mxu1 %v8757_v44  ;;  %7900 = vmatprep.subr.bf16.mxu0 %v8758_v42  ;;  %348 = vst [vmem:[#allocation2 + $0x1ac] sm:$0x8] %v347_v27  ;;  %v8767_v42 = vld [vmem:[%s10957_s3 + $0xf0] sm:$0xff]  }
 0x1f4   : > { %v10309_v0 = vpop.f32.mrf.mxu0 }
 0x1f5   : > { %8355 = vmatpush3.bf16.msra.mxu1 %v8757_v44  ;;  %v8763_v44 = vld [vmem:[#allocation2 + $0x110] ss:$12 sps:$4 sm:$0xff]  }
 0x1f6   : > { %7901 = vmatpush3.bf16.msra.mxu0 %v8759_v46  ;;  %8356 = vmatprep.subr.bf16.mxu1 %v8760_v59  ;;  %v10316_v1 = vpop.f32.mrf.mxu0  ;;  %v8769_v46 = vld [vmem:[%s10957_s3 + $0x128] sm:$0xff]  }
 0x1f7   : > { %7938 = vmatprep.subr.bf16.mxu0 %v8761_v62 }
 0x1f8   : > { %v7590_v15 = vpop.f32.mrf.mxu0 }
 0x1f9   : > { %8357 = vmatpush3.bf16.msra.mxu1 %v8760_v59  ;;  %5215 = vmatmul.mubr.bf16.vlgmr.msra.gmra.mxu0 %v10086_v2  ;;  %v2006_v2 = vadd.f32 %v10079_v39, %v10111_v9 }
 0x1fa   : > { %7939 = vmatpush3.bf16.msra.mxu0 %v8762_v55  ;;  %5222 = vmatprep.mubr.bf16.mxu0 %v10098_v54  ;;  %v7591_v54 = vpop.f32.mrf.mxu0 }
 0x1fb   : > { %8366 = vmatprep.subr.bf16.mxu1 %v8764_v32  ;;  %7940 = vmatprep.subr.bf16.mxu0 %v8766_v10  ;;  %v8216_v59 = vpop.f32.mrf.mxu1  ;;  %v7592_v61 = vadd.f32 %v7591_v54, %v7590_v15  ;;  %v2279_v62 = vadd.f32 %v7540_v13, %v2006_v2  ;;  %v8772_v10 = vld [vmem:[%s10957_s3 + $0x168] sm:$0xff]  }
 0x1fc   : > { %8359 = vmatmul.mubr.bf16.vlgmr.msra.gmra.mxu1 %v8763_v44  ;;  %v7593_v39 = vpop.f32.mrf.mxu0 }
 0x1fd   : > { %8362 = vmatprep.mubr.bf16.mxu1 %v8765_v19  ;;  %8367 = vmatpush3.bf16.msra.mxu1 %v8764_v32  ;;  %v2746_v9 = vpop.f32.mrf.mxu1  ;;  %v7497_v32 = vadd.f32 %v10122_v35, %v10115_v8  ;;  %v2344_v24 = vadd.f32 %v10229_v26, %v2279_v62  ;;  %v8771_v8 = vld [vmem:[#allocation2 + $0x140] ss:$12 sps:$4 sm:$0xff]  }
 0x1fe   : > { %7941 = vmatpush3.bf16.msra.mxu0 %v8767_v42  ;;  %8368 = vmatprep.subr.bf16.mxu1 %v8768_v41  ;;  %v2747_v27 = vadd.f32 %v7592_v61, %v2746_v9  ;;  %v7594_v55 = vpop.f32.mrf.mxu0  ;;  %v2014_v42 = vadd.f32 %v10096_v20, %v10113_v29  ;;  %v8775_v35 = vld [vmem:[%s10957_s3 + $0xe0] sm:$0xff]  }
 0x1ff   : > { %7942 = vmatprep.subr.bf16.mxu0 %v8769_v46  ;;  %v8217_v13 = vpop.f32.mrf.mxu1  ;;  %v7595_v15 = vadd.f32 %v7594_v55, %v7593_v39  ;;  %v2017_v33 = vadd.f32 %v10130_v52, %v7497_v32  ;;  %v8778_v52 = vld [vmem:[%s10957_s3 + $0xd8] sm:$0xff]   ;;  %v2022_v55 = vadd.f32 %v10147_v60, %v10176_v14  ;;  %v8784_v60 = vld [vmem:[%s10957_s3 + $0xd0] sm:$0xff]  }
 0x200   : > { %v7596_v44 = vpop.f32.mrf.mxu0  ;;  %v2777_v26 = vadd.f32 %v2747_v27, %v2344_v24  ;;  %v2287_v5 = vadd.f32 %v7546_v4, %v2014_v42  ;;  %v7552_v27 = vadd.f32 %v10270_v17, %v10258_v45  ;;  %v8785_v14 = vld [vmem:[%s10957_s3 + $0x150] sm:$0xff]  }
 0x201   : > { %8369 = vmatpush3.bf16.msra.mxu1 %v8768_v41  ;;  %5223 = vmatmul.mubr.bf16.gmra.mxu0 %v10120_v37  ;;  %v2749_v2 = vpop.f32.mrf.mxu1  ;;  %v2347_v37 = vadd.f32 %v10261_v30, %v2282_v36  ;;  %v10382_v41 = vld [vmem:[%s10958_s4] ss:$0 sm:$0xff]  ;;  %v2290_v46 = vadd.f32 %v7549_v22, %v2017_v33  ;;  %v7561_v33 = vadd.f32 %v10316_v1, %v10309_v0  ;;  %v8792_v0 = vld [vmem:[%s10957_s3 + $0x78] sm:$0xff]  }
 0x202   : > { %7943 = vmatpush3.bf16.msra.mxu0 %v8770_v49  ;;  %5230 = vmatprep.mubr.bf16.mxu0 %v10132_v57  ;;  %v2750_v20 = vadd.f32 %v7595_v15, %v2749_v2  ;;  %v7597_v29 = vpop.f32.mrf.mxu0  ;;  %v8777_v57 = vld [vmem:[%s10957_s3 + $0x118] sm:$0xff]   ;;  %v2791_v62 = vadd.f32 %v10382_v41, %v2777_v26  ;;  %v2352_v36 = vadd.f32 %v10213_v7, %v2287_v5  ;;  %v8788_v26 = vld [vmem:[%s10957_s3 + $0x148] sm:$0xff]  }
 0x203   : > { %8370 = vmatprep.subr.bf16.mxu1 %v8772_v10  ;;  %7944 = vmatprep.subr.bf16.mxu0 %v8774_v40  ;;  %v7598_v30 = vadd.f32 %v7597_v29, %v7596_v44  ;;  %v10384_v54 = vpop.f32.mrf.mxu1  ;;  %v8782_v49 = vld [vmem:[%s10957_s3 + $0x158] sm:$0xff]   ;;  %v2355_v17 = vadd.f32 %v10245_v38, %v2290_v46  ;;  %v8786_v38 = vld [vmem:[%s10957_s3 + $0x108] sm:$0xff]  }
 0x204   : > { %8363 = vmatmul.mubr.bf16.gmra.mxu1 %v8771_v8  ;;  %v2778_v50 = vadd.f32 %v2750_v20, %v2347_v37  ;;  %v7599_v19 = vpop.f32.mrf.mxu0  ;;  %v8787_v8 = vld [vmem:[%s10957_s3 + $0xc8] sm:$0xff]   ;;  %v8789_v20 = vld [vmem:[%s10957_s3 + $0x100] sm:$0xff]  }
 0x205   : > { %8371 = vmatpush3.bf16.msra.mxu1 %v8772_v10  ;;  %8382 = vmatprep.mubr.bf16.mxu1 %v8773_v12  ;;  %v2755_v61 = vadd.f32 %v8216_v59, %v7598_v30  ;;  %v8783_v59 = vld [vmem:[%s10957_s3 + $0x110] sm:$0xff]   ;;  %v7555_v10 = vadd.f32 %v10282_v34, %v10275_v53  ;;  %v2762_v40 = vpop.f32.mrf.mxu1  ;;  %v2025_v53 = vadd.f32 %v7503_v16, %v10209_v21 }
 0x206   : > { %7945 = vmatpush3.bf16.msra.mxu0 %v8775_v35  ;;  %8372 = vmatprep.subr.bf16.mxu1 %v8776_v23  ;;  %v2792_v39 = vadd.f32 %v10382_v41, %v2778_v50  ;;  %v7600_v9 = vpop.f32.mrf.mxu0  ;;  %v2295_v34 = vadd.f32 %v7552_v27, %v2022_v55  ;;  %v7509_v35 = vadd.f32 %v10185_v25, %v10180_v58 }
 0x207   : > { %7946 = vmatprep.subr.bf16.mxu0 %v8777_v57  ;;  %v7601_v51 = vadd.f32 %v7600_v9, %v7599_v19  ;;  %v2779_v32 = vadd.f32 %v2755_v61, %v2352_v36  ;;  %v2298_v24 = vadd.f32 %v7555_v10, %v2025_v53  ;;  %v10429_v44 = vpop.f32.mrf.mxu1  ;;  %v7558_v12 = vadd.f32 %v10302_v31, %v10290_v47 }
 0x208   : > { %v7350_v7 = vpack.c.bf16 %v2792_v39, %v2791_v62  ;;  %v7602_v45 = vpop.f32.mrf.mxu0  ;;  %v2360_v29 = vadd.f32 %v10293_v48, %v2295_v34  ;;  %v2030_v25 = vadd.f32 %v10164_v11, %v10178_v18  ;;  %v8790_v11 = vld [vmem:[%s10957_s3 + $0xc0] sm:$0xff]   ;;  %v2033_v47 = vadd.f32 %v10193_v6, %v7509_v35  ;;  %v8793_v6 = vld [vmem:[%s10957_s3 + $0x38] sm:$0xff]   ;;  %v8804_v34 = vld [vmem:[%s10957_s3 + $0x28] sm:$0xff]  }
 0x209   : > { %8373 = vmatpush3.bf16.msra.mxu1 %v8776_v23  ;;  %5231 = vmatmul.mubr.bf16.gmra.mxu0 %v10154_v3  ;;  %v2758_v4 = vadd.f32 %v8217_v13, %v7601_v51  ;;  %v2793_v22 = vadd.f32 %v10382_v41, %v2779_v32  ;;  %v10438_v23 = vld [vmem:[#allocation2 + $0x138] ss:$12 sps:$4 sm:$0xff]   ;;  %v2765_v5 = vpop.f32.mrf.mxu1  ;;  %v2363_v50 = vadd.f32 %v10329_v43, %v2298_v24  ;;  %v10480_v51 = vld [vmem:[#allocation2 + $0x154] ss:$12 sps:$4 sm:$0xff]   ;;  %v8809_v24 = vld [vmem:[%s10957_s3 + $0xa8] sm:$0xff]  }
 0x20a   : > { %7947 = vmatpush3.bf16.msra.mxu0 %v8778_v52  ;;  %5238 = vmatprep.mubr.bf16.mxu0 %v10409_v63  ;;  %7351 = vst [vmem:[%s10407_s16] sm:$0xff] %v7350_v7   ;;  %v7603_v3 = vpop.f32.mrf.mxu0  ;;  %v8791_v18 = vld [vmem:[%s10957_s3 + $0x140] sm:$0xff]   ;;  %v2303_v1 = vadd.f32 %v7558_v12, %v2030_v25  ;;  %v2306_v61 = vadd.f32 %v7561_v33, %v2033_v47  ;;  %v8815_v25 = vld [vmem:[%s10957_s3 + $0x18] sm:$0xff]   ;;  %v10540_v33 = vld [vmem:[#allocation2 + $0x168] ss:$12 sps:$4 sm:$0xff]  }
 0x20b   : > { %8374 = vmatprep.subr.bf16.mxu1 %v8782_v49  ;;  %7948 = vmatprep.subr.bf16.mxu0 %v8783_v59  ;;  %v2780_v13 = vadd.f32 %v2758_v4, %v2355_v17  ;;  %v7604_v15 = vadd.f32 %v7603_v3, %v7602_v45  ;;  %v8800_v59 = vld [vmem:[%s10957_s3 + $0x70] sm:$0xff]   ;;  %v8797_v45 = vld [vmem:[#allocation2 + $0x158] ss:$12 sps:$4 sm:$0xff]  }
 0x20c   : > { %v7605_v42 = vpop.f32.mrf.mxu0  ;;  %v2368_v36 = vadd.f32 %v10277_v28, %v2303_v1  ;;  %v2371_v10 = vadd.f32 %v10311_v56, %v2306_v61  ;;  %v8801_v28 = vld [vmem:[%s10957_s3 + $0x30] sm:$0xff]   ;;  %v8803_v56 = vld [vmem:[%s10957_s3 + $0x68] sm:$0xff]   ;;  %v8812_v35 = vld [vmem:[%s10957_s3 + $0x20] sm:$0xff]  }
 0x20d   : > { %8375 = vmatpush3.bf16.msra.mxu1 %v8782_v49  ;;  %v2794_v21 = vadd.f32 %v10382_v41, %v2780_v13  ;;  %v2763_v2 = vadd.f32 %v7604_v15, %v2762_v40  ;;  %v8798_v49 = vld [vmem:[%s10957_s3 + $0xb8] sm:$0xff]   ;;  %v8802_v17 = vld [vmem:[%s10957_s3 + $0xb0] sm:$0xff]   ;;  %v8824_v61 = vld [vmem:[%s10957_s3 + $0x8] sm:$0xff]  }
 0x20e   : > { %7949 = vmatpush3.bf16.msra.mxu0 %v8784_v60  ;;  %8376 = vmatprep.subr.bf16.mxu1 %v8785_v14  ;;  %v7606_v37 = vpop.f32.mrf.mxu0  ;;  %v8799_v4 = vld [vmem:[#allocation2 + $0x170] ss:$12 sps:$4 sm:$0xff]  }
 0x20f   : > { %7950 = vmatprep.subr.bf16.mxu0 %v8786_v38  ;;  %v7355_v57 = vpack.c.bf16 %v2794_v21, %v2793_v22  ;;  %v7607_v58 = vadd.f32 %v7606_v37, %v7605_v42  ;;  %v2781_v48 = vadd.f32 %v2763_v2, %v2360_v29  ;;  %v10505_v13 = vld [vmem:[#allocation2 + $0x150] ss:$12 sps:$4 sm:$0xff]   ;;  %v10517_v21 = vld [vmem:[#allocation2 + $0x16c] ss:$12 sps:$4 sm:$0xff]   ;;  %v8813_v37 = vld [vmem:[%s10957_s3 + $0xa0] sm:$0xff]  }
 0x210   : > { %v7608_v30 = vpop.f32.mrf.mxu0  ;;  %v8814_v29 = vld [vmem:[%s10957_s3 + $0x58] sm:$0xff]   ;;  %v8822_v47 = vld [vmem:[%s10957_s3 + $0x90] sm:$0xff]  }
 0x211   : > { %8377 = vmatpush3.bf16.msra.mxu1 %v8785_v14  ;;  %5239 = vmatmul.mubr.bf16.gmra.mxu0 %v10438_v23  ;;  %7427 = vst [vmem:[%s10407_s16 + $0x8] sm:$0xff] %v7355_v57   ;;  %v2766_v19 = vadd.f32 %v7607_v58, %v2765_v5  ;;  %v2795_v16 = vadd.f32 %v10382_v41, %v2781_v48 }
 0x212   : > { %7951 = vmatpush3.bf16.msra.mxu0 %v8787_v8  ;;  %5738 = vmatprep.mubr.bf16.mxu0 %v10409_v63  ;;  %v7609_v31 = vpop.f32.mrf.mxu0  ;;  %v8808_v8 = vld [vmem:[#allocation2 + $0x188] ss:$12 sps:$4 sm:$0xff]  }
 0x213   : > { %8378 = vmatprep.subr.bf16.mxu1 %v8788_v26  ;;  %7952 = vmatprep.subr.bf16.mxu0 %v8789_v20  ;;  %v2782_v43 = vadd.f32 %v2766_v19, %v2363_v50  ;;  %v7610_v46 = vadd.f32 %v7609_v31, %v7608_v30  ;;  %v8810_v20 = vld [vmem:[#allocation2 + $0x128] ss:$12 sps:$4 sm:$0xff]   ;;  %v8819_v30 = vld [vmem:[%s10957_s3 + $0x98] sm:$0xff]   ;;  %v10552_v19 = vld [vmem:[#allocation2 + $0x184] ss:$12 sps:$4 sm:$0xff]  }
 0x214   : > { %v7611_v52 = vpop.f32.mrf.mxu0  ;;  %v8820_v50 = vld [vmem:[%s10957_s3 + $0x50] sm:$0xff]  }
 0x215   : > { %8379 = vmatpush3.bf16.msra.mxu1 %v8788_v26  ;;  %v2796_v62 = vadd.f32 %v10382_v41, %v2782_v43  ;;  %v2771_v39 = vadd.f32 %v10384_v54, %v7610_v46 }
 0x216   : > { %7953 = vmatpush3.bf16.msra.mxu0 %v8790_v11  ;;  %8380 = vmatprep.subr.bf16.mxu1 %v8791_v18  ;;  %v7612_v9 = vpop.f32.mrf.mxu0 }
 0x217   : > { %7990 = vmatprep.subr.bf16.mxu0 %v8792_v0  ;;  %v7360_v54 = vpack.c.bf16 %v2796_v62, %v2795_v16  ;;  %v7613_v27 = vadd.f32 %v7612_v9, %v7611_v52  ;;  %v2783_v7 = vadd.f32 %v2771_v39, %v2368_v36  ;;  %v8823_v0 = vld [vmem:[%s10957_s3 + $0x48] sm:$0xff]   ;;  %v8829_v39 = vld [vmem:[%s10957_s3 + $0x40] sm:$0xff]  }
 0x218   : > { %v7642_v55 = vpop.f32.mrf.mxu0  ;;  %v10574_v52 = vld [vmem:[#allocation2 + $0x180] ss:$12 sps:$4 sm:$0xff]   ;;  %v8827_v9 = vld [vmem:[#allocation2 + $0x124] ss:$12 sps:$4 sm:$0xff]  }
 0x219   : > { %8381 = vmatpush3.bf16.msra.mxu1 %v8791_v18  ;;  %5739 = vmatmul.mubr.bf16.vlgmr.msra.gmra.mxu0 %v10438_v23  ;;  %7428 = vst [vmem:[%s10407_s16 + $0x10] sm:$0xff] %v7360_v54   ;;  %v2774_v40 = vadd.f32 %v10429_v44, %v7613_v27  ;;  %v2797_v3 = vadd.f32 %v10382_v41, %v2783_v7  ;;  %v8811_v44 = vld [vmem:[%s10957_s3 + $0x60] sm:$0xff]   ;;  %v8821_v18 = vld [vmem:[%s10957_s3 + $0x10] sm:$0xff]   ;;  %v8828_v62 = vld [vmem:[%s10957_s3 + $0x88] sm:$0xff]  }
 0x21a   : > { %7991 = vmatpush3.bf16.msra.mxu0 %v8793_v6  ;;  %5746 = vmatprep.mubr.bf16.mxu0 %v10480_v51  ;;  %v7643_v32 = vpop.f32.mrf.mxu0  ;;  %v8831_v36 = vld [vmem:[%s10957_s3 + $0x80] sm:$0xff]   ;;  %v8832_v27 = vld [vmem:[%s10957_s3 + $0x1f8] sm:$0xff]  }
 0x21b   : > { %8390 = vmatprep.subr.bf16.mxu1 %v8798_v49  ;;  %7992 = vmatprep.subr.bf16.mxu0 %v8800_v59  ;;  %v2784_v60 = vadd.f32 %v2774_v40, %v2371_v10  ;;  %v10496_v14 = vadd.f32 %v7643_v32, %v7642_v55  ;;  %v8830_v59 = vld [vmem:[%s10957_s3] sm:$0xff]   ;;  %v8833_v40 = vld [vmem:[%s10957_s3 + $0x1b8] sm:$0xff]   ;;  %v8837_v32 = vld [vmem:[%s10957_s3 + $0x1f0] sm:$0xff]  }
 0x21c   : > { %8383 = vmatmul.mubr.bf16.vlgmr.msra.gmra.mxu1 %v8797_v45  ;;  %v10498_v53 = vpop.f32.mrf.mxu0  ;;  %v10515_v22 = vpop.f32.mrf.mxu1  ;;  %v8825_v45 = vld [vmem:[#allocation2 + $0x120] ss:$12 sps:$4 sm:$0xff]  }
 0x21d   : > { %8386 = vmatprep.mubr.bf16.mxu1 %v8799_v4  ;;  %8391 = vmatpush3.bf16.msra.mxu1 %v8798_v49  ;;  %v2798_v38 = vadd.f32 %v10382_v41, %v2784_v60  ;;  %v8834_v60 = vld [vmem:[#allocation2 + $0x140] ss:$12 sps:$4 sm:$0xff]  }
 0x21e   : > { %7993 = vmatpush3.bf16.msra.mxu0 %v8801_v28  ;;  %8392 = vmatprep.subr.bf16.mxu1 %v8802_v17  ;;  %v10507_v15 = vpop.f32.mrf.mxu0  ;;  %v10531_v12 = vpop.f32.mrf.mxu1 }
 0x21f   : > { %7994 = vmatprep.subr.bf16.mxu0 %v8803_v56  ;;  %v7365_v42 = vpack.c.bf16 %v2798_v38, %v2797_v3  ;;  %v8838_v3 = vld [vmem:[%s10957_s3 + $0x1b0] sm:$0xff]  }
 0x220   : > { %v7648_v2 = vpop.f32.mrf.mxu0  ;;  %v10550_v48 = vpop.f32.mrf.mxu1  ;;  %v8839_v38 = vld [vmem:[%s10957_s3 + $0x230] sm:$0xff]  }
 0x221   : > { %8393 = vmatpush3.bf16.msra.mxu1 %v8802_v17  ;;  %5747 = vmatmul.mubr.bf16.gmra.mxu0 %v10505_v13  ;;  %7429 = vst [vmem:[%s10407_s16 + $0x18] sm:$0xff] %v7365_v42   ;;  %v8835_v17 = vld [vmem:[%s10957_s3 + $0x238] sm:$0xff]  }
 0x222   : > { %7995 = vmatpush3.bf16.msra.mxu0 %v8804_v34  ;;  %5754 = vmatprep.mubr.bf16.mxu0 %v10517_v21  ;;  %v7649_v26 = vpop.f32.mrf.mxu0  ;;  %v10565_v1 = vpop.f32.mrf.mxu1 }
 0x223   : > { %8394 = vmatprep.subr.bf16.mxu1 %v8809_v24  ;;  %7996 = vmatprep.subr.bf16.mxu0 %v8811_v44  ;;  %v10533_v57 = vadd.f32 %v7649_v26, %v7648_v2  ;;  %v8840_v44 = vld [vmem:[%s10957_s3 + $0x1e8] sm:$0xff]   ;;  %v8845_v26 = vld [vmem:[%s10957_s3 + $0x1e0] sm:$0xff]  }
 0x224   : > { %8387 = vmatmul.mubr.bf16.gmra.mxu1 %v8808_v8  ;;  %v10535_v58 = vpop.f32.mrf.mxu0  ;;  %v10584_v6 = vpop.f32.mrf.mxu1  ;;  %v8841_v8 = vld [vmem:[%s10957_s3 + $0x1a8] sm:$0xff]  }
 0x225   : > { %8395 = vmatpush3.bf16.msra.mxu1 %v8809_v24  ;;  %8406 = vmatprep.mubr.bf16.mxu1 %v8810_v20  ;;  %v8836_v24 = vld [vmem:[#allocation2 + $0x158] ss:$12 sps:$4 sm:$0xff]  }
 0x226   : > { %7997 = vmatpush3.bf16.msra.mxu0 %v8812_v35  ;;  %8396 = vmatprep.subr.bf16.mxu1 %v8813_v37  ;;  %v10542_v5 = vpop.f32.mrf.mxu0  ;;  %v10596_v55 = vpop.f32.mrf.mxu1 }
 0x227   : > { %7998 = vmatprep.subr.bf16.mxu0 %v8814_v29 }
 0x228   : > { %v7654_v11 = vpop.f32.mrf.mxu0  ;;  %v10613_v4 = vpop.f32.mrf.mxu1 }
 0x229   : > { %8397 = vmatpush3.bf16.msra.mxu1 %v8813_v37  ;;  %5755 = vmatmul.mubr.bf16.gmra.mxu0 %v10540_v33  ;;  %v8843_v37 = vld [vmem:[%s10957_s3 + $0x228] sm:$0xff]  }
 0x22a   : > { %7999 = vmatpush3.bf16.msra.mxu0 %v8815_v25  ;;  %5762 = vmatprep.mubr.bf16.mxu0 %v10552_v19  ;;  %v7655_v31 = vpop.f32.mrf.mxu0  ;;  %v10629_v42 = vpop.f32.mrf.mxu1  ;;  %v8842_v25 = vld [vmem:[#allocation2 + $0x170] ss:$12 sps:$4 sm:$0xff]  }
 0x22b   : > { %8398 = vmatprep.subr.bf16.mxu1 %v8819_v30  ;;  %8000 = vmatprep.subr.bf16.mxu0 %v8820_v50  ;;  %v10567_v43 = vadd.f32 %v7655_v31, %v7654_v11  ;;  %v8847_v50 = vld [vmem:[%s10957_s3 + $0x220] sm:$0xff]  }
 0x22c   : > { %v10569_v46 = vpop.f32.mrf.mxu0 }
 0x22d   : > { %8399 = vmatpush3.bf16.msra.mxu1 %v8819_v30  ;;  %v8846_v30 = vld [vmem:[%s10957_s3 + $0x1a0] sm:$0xff]  }
 0x22e   : > { %8001 = vmatpush3.bf16.msra.mxu0 %v8821_v18  ;;  %8400 = vmatprep.subr.bf16.mxu1 %v8822_v47  ;;  %v10576_v16 = vpop.f32.mrf.mxu0  ;;  %v8844_v18 = vld [vmem:[#allocation2 + $0x158] ss:$12 sps:$4 sm:$0xff]  }
 0x22f   : > { %8002 = vmatprep.subr.bf16.mxu0 %v8823_v0  ;;  %v8849_v0 = vld [vmem:[%s10957_s3 + $0x198] sm:$0xff]  }
 0x230   : > { %v7660_v49 = vpop.f32.mrf.mxu0 }
 0x231   : > { %8401 = vmatpush3.bf16.msra.mxu1 %v8822_v47  ;;  %5763 = vmatmul.mubr.bf16.gmra.mxu0 %v10574_v52 }
 0x232   : > { %8003 = vmatpush3.bf16.msra.mxu0 %v8824_v61  ;;  %6076 = vmatprep.mubr.bf16.mxu0 %v8827_v9  ;;  %v7661_v54 = vpop.f32.mrf.mxu0 }
 0x233   : > { %8402 = vmatprep.subr.bf16.mxu1 %v8828_v62  ;;  %8004 = vmatprep.subr.bf16.mxu0 %v8829_v39  ;;  %v10598_v10 = vadd.f32 %v7661_v54, %v7660_v49  ;;  %v8851_v39 = vld [vmem:[%s10957_s3 + $0x1d0] sm:$0xff]  }
 0x234   : > { %v10600_v7 = vpop.f32.mrf.mxu0 }
 0x235   : > { %8403 = vmatpush3.bf16.msra.mxu1 %v8828_v62  ;;  %v8850_v62 = vld [vmem:[%s10957_s3 + $0x218] sm:$0xff]  }
 0x236   : > { %8005 = vmatpush3.bf16.msra.mxu0 %v8830_v59  ;;  %8404 = vmatprep.subr.bf16.mxu1 %v8831_v36  ;;  %v10605_v28 = vpop.f32.mrf.mxu0  ;;  %v8852_v59 = vld [vmem:[%s10957_s3 + $0x190] sm:$0xff]  }
 0x237   : > { %8042 = vmatprep.subr.bf16.mxu0 %v8832_v27  ;;  %v8854_v27 = vld [vmem:[%s10957_s3 + $0x1c8] sm:$0xff]  }
 0x239   : > { %8405 = vmatpush3.bf16.msra.mxu1 %v8831_v36  ;;  %v10615_v56 = vpop.f32.mrf.mxu0  ;;  %6077 = vmatmul.mubr.bf16.vlgmr.msra.gmra.mxu0 %v8825_v45  ;;  %v8853_v36 = vld [vmem:[%s10957_s3 + $0x210] sm:$0xff]  }
 0x23a   : > { %8043 = vmatpush3.bf16.msra.mxu0 %v8833_v40  ;;  %6084 = vmatprep.mubr.bf16.mxu0 %v10409_v63 }
 0x23b   : > { %8414 = vmatprep.subr.bf16.mxu1 %v8835_v17  ;;  %v10624_v34 = vpop.f32.mrf.mxu0  ;;  %8044 = vmatprep.subr.bf16.mxu0 %v8837_v32 }
 0x23c   : > { %8407 = vmatmul.mubr.bf16.vlgmr.msra.gmra.mxu1 %v8834_v60  ;;  %v10633_v2 = vpop.f32.mrf.mxu1  ;;  %v8856_v60 = vld [vmem:[%s10957_s3 + $0x208] sm:$0xff]  }
 0x23d   : > { %8410 = vmatprep.mubr.bf16.mxu1 %v8836_v24  ;;  %8415 = vmatpush3.bf16.msra.mxu1 %v8835_v17  ;;  %v10631_v63 = vpop.f32.mrf.mxu0  ;;  %v8855_v17 = vld [vmem:[%s10957_s3 + $0x188] sm:$0xff]  }
 0x23e   : > { %8045 = vmatpush3.bf16.msra.mxu0 %v8838_v3  ;;  %8416 = vmatprep.subr.bf16.mxu1 %v8839_v38  ;;  %v10649_v29 = vpop.f32.mrf.mxu1  ;;  %v8857_v3 = vld [vmem:[%s10957_s3 + $0x1c0] sm:$0xff]  }
 0x23f   : > { %v10638_v35 = vpop.f32.mrf.mxu0  ;;  %8046 = vmatprep.subr.bf16.mxu0 %v8840_v44  ;;  %v8858_v44 = vld [vmem:[%s10957_s3 + $0x180] sm:$0xff]  }
 0x240   : > { %v10665_v31 = vpop.f32.mrf.mxu1 }
 0x241   : > { %8417 = vmatpush3.bf16.msra.mxu1 %v8839_v38  ;;  %v10646_v20 = vpop.f32.mrf.mxu0  ;;  %6085 = vmatmul.mubr.bf16.gmra.mxu0 %v10438_v23  ;;  %v8848_v23 = vld [vmem:[%s10957_s3 + $0x1d8] sm:$0xff]  }
 0x242   : > { %8047 = vmatpush3.bf16.msra.mxu0 %v8841_v8  ;;  %6092 = vmatprep.mubr.bf16.mxu0 %v10480_v51  ;;  %v10681_v49 = vpop.f32.mrf.mxu1  ;;  %v8859_v8 = vld [vmem:[%s10957_s3 + $0x200] sm:$0xff]  }
 0x243   : > { %8418 = vmatprep.subr.bf16.mxu1 %v8843_v37  ;;  %v10658_v11 = vpop.f32.mrf.mxu0  ;;  %8048 = vmatprep.subr.bf16.mxu0 %v8845_v26 }
 0x244   : > { %8411 = vmatmul.mubr.bf16.gmra.mxu1 %v8842_v25  ;;  %v10697_v45 = vpop.f32.mrf.mxu1 }
 0x245   : > { %8419 = vmatpush3.bf16.msra.mxu1 %v8843_v37  ;;  %8430 = vmatprep.mubr.bf16.mxu1 %v8844_v18  ;;  %v10663_v47 = vpop.f32.mrf.mxu0 }
 0x246   : > { %8049 = vmatpush3.bf16.msra.mxu0 %v8846_v30  ;;  %8420 = vmatprep.subr.bf16.mxu1 %v8847_v50  ;;  %v10713_v24 = vpop.f32.mrf.mxu1  ;;  %v7647_v30 = vadd.f32 %v10507_v15, %v10498_v53  ;;  %v8861_v53 = vld [vmem:[#allocation2 + $0x188] ss:$12 sps:$4 sm:$0xff]  }
 0x247   : > { %v10670_v61 = vpop.f32.mrf.mxu0  ;;  %8050 = vmatprep.subr.bf16.mxu0 %v8848_v23 }
 0x248   : > { %v10726_v25 = vpop.f32.mrf.mxu1 }
 0x249   : > { %8421 = vmatpush3.bf16.msra.mxu1 %v8847_v50  ;;  %v10678_v9 = vpop.f32.mrf.mxu0  ;;  %6093 = vmatmul.mubr.bf16.gmra.mxu0 %v10505_v13  ;;  %v7696_v50 = vadd.f32 %v10624_v34, %v10615_v56  ;;  %v3279_v34 = vadd.f32 %v7647_v30, %v10565_v1  ;;  %v3284_v1 = vadd.f32 %v10515_v22, %v10533_v57 }
 0x24a   : > { %8051 = vmatpush3.bf16.msra.mxu0 %v8849_v0  ;;  %6100 = vmatprep.mubr.bf16.mxu0 %v10517_v21  ;;  %v10735_v23 = vpop.f32.mrf.mxu1  ;;  %v8860_v0 = vld [vmem:[#allocation2 + $0x170] ss:$12 sps:$4 sm:$0xff]   ;;  %v7705_v30 = vadd.f32 %v10670_v61, %v10663_v47 }
 0x24b   : > { %8422 = vmatprep.subr.bf16.mxu1 %v8850_v62  ;;  %v10690_v54 = vpop.f32.mrf.mxu0  ;;  %8052 = vmatprep.subr.bf16.mxu0 %v8851_v39  ;;  %v7699_v39 = vadd.f32 %v10638_v35, %v10631_v63  ;;  %v8865_v47 = vld [vmem:[#allocation2 + $0xc] sm:$0xff] }
 0x24d   : > { %8423 = vmatpush3.bf16.msra.mxu1 %v8850_v62  ;;  %v10695_v40 = vpop.f32.mrf.mxu0  ;;  %v3276_v62 = vadd.f32 %v10496_v14, %v10531_v12  ;;  %v7653_v14 = vadd.f32 %v10542_v5, %v10535_v58  ;;  %v7702_v12 = vadd.f32 %v10658_v11, %v10646_v20 }
 0x24e   : > { %8053 = vmatpush3.bf16.msra.mxu0 %v8852_v59  ;;  %8424 = vmatprep.subr.bf16.mxu1 %v8853_v36 }
 0x24f   : > { %v10702_v32 = vpop.f32.mrf.mxu0  ;;  %8054 = vmatprep.subr.bf16.mxu0 %v8854_v27 }
 0x251   : > { %8425 = vmatpush3.bf16.msra.mxu1 %v8853_v36  ;;  %v10710_v38 = vpop.f32.mrf.mxu0  ;;  %6101 = vmatmul.mubr.bf16.gmra.mxu0 %v10540_v33  ;;  %v3549_v36 = vadd.f32 %v7696_v50, %v3276_v62 }
 0x252   : > { %8055 = vmatpush3.bf16.msra.mxu0 %v8855_v17  ;;  %6479 = vmatprep.mubr.bf16.mxu0 %v10480_v51  ;;  %v3552_v17 = vadd.f32 %v7699_v39, %v3279_v34  ;;  %v7708_v34 = vadd.f32 %v10690_v54, %v10678_v9 }
 0x253   : > { %8426 = vmatprep.subr.bf16.mxu1 %v8856_v60  ;;  %v10722_v37 = vpop.f32.mrf.mxu0  ;;  %8056 = vmatprep.subr.bf16.mxu0 %v8857_v3  ;;  %v8862_v3 = vld [vmem:[#allocation2 + $0x1a0] ss:$12 sps:$4 sm:$0xff]  }
 0x254   : > { %v3617_v58 = vadd.f32 %v10681_v49, %v3552_v17 }
 0x255   : > { %8427 = vmatpush3.bf16.msra.mxu1 %v8856_v60  ;;  %v10724_v26 = vpop.f32.mrf.mxu0 }
 0x256   : > { %8057 = vmatpush3.bf16.msra.mxu0 %v8858_v44  ;;  %8428 = vmatprep.subr.bf16.mxu1 %v8859_v8  ;;  %v3614_v44 = vadd.f32 %v10649_v29, %v3549_v36  ;;  %v3287_v29 = vadd.f32 %v10550_v48, %v7653_v14 }
 0x257   : > { %v10728_v51 = vpop.f32.mrf.mxu0 }
 0x258   : > { %v3560_v57 = vadd.f32 %v7705_v30, %v3287_v29  ;;  %v3300_v30 = vadd.f32 %v10584_v6, %v10598_v10 }
 0x259   : > { %8429 = vmatpush3.bf16.msra.mxu1 %v8859_v8  ;;  %v7746_v18 = vpop.f32.mrf.mxu0  ;;  %6480 = vmatmul.mubr.bf16.vlgmr.msra.gmra.mxu0 %v10505_v13 }
 0x25a   : > { %6487 = vmatprep.mubr.bf16.mxu0 %v10517_v21 }
 0x25b   : > { %v7747_v59 = vpop.f32.mrf.mxu0 }
 0x25c   : > { %v8288_v15 = vpop.f32.mrf.mxu1  ;;  %8431 = vmatmul.mubr.bf16.vlgmr.msra.gmra.mxu1 %v8860_v0  ;;  %v7748_v56 = vadd.f32 %v7747_v59, %v7746_v18  ;;  %v6187_v18 = vld [vmem:[#allocation2 + $0x198] sm:$0xff]  ;;  %v3557_v0 = vadd.f32 %v7702_v12, %v3284_v1 }
 0x25d   : > { %8434 = vmatprep.mubr.bf16.mxu1 %v8861_v53  ;;  %v7749_v13 = vpop.f32.mrf.mxu0  ;;  %v7237_v61 = vcombine.high %v6187_v18, %v8865_v47 }
 0x25e   : > { %v4016_v27 = vpop.f32.mrf.mxu1  ;;  %v3622_v48 = vadd.f32 %v10633_v2, %v3557_v0 }
 0x25f   : > { %v4017_v21 = vadd.f32 %v7748_v56, %v4016_v27  ;;  %v7750_v60 = vpop.f32.mrf.mxu0  ;;  %v7659_v56 = vadd.f32 %v10576_v16, %v10569_v46 }
 0x260   : > { %v8289_v63 = vpop.f32.mrf.mxu1  ;;  %v7751_v35 = vadd.f32 %v7750_v60, %v7749_v13  ;;  %v7711_v60 = vadd.f32 %v10702_v32, %v10695_v40  ;;  %v7665_v32 = vadd.f32 %v10605_v28, %v10600_v7 }
 0x261   : > { %v7752_v8 = vpop.f32.mrf.mxu0  ;;  %6488 = vmatmul.mubr.bf16.gmra.mxu0 %v10540_v33  ;;  %v4047_v5 = vadd.f32 %v4017_v21, %v3614_v44  ;;  %v3625_v21 = vadd.f32 %v10665_v31, %v3560_v57  ;;  %v3295_v9 = vadd.f32 %v7659_v56, %v10629_v42  ;;  %v7714_v42 = vadd.f32 %v10722_v37, %v10710_v38 }
 0x262   : > { %v4019_v50 = vpop.f32.mrf.mxu1  ;;  %6495 = vmatprep.mubr.bf16.mxu0 %v10552_v19  ;;  %v3303_v38 = vadd.f32 %v10613_v4, %v7665_v32 }
 0x263   : > { %v4020_v20 = vadd.f32 %v7751_v35, %v4019_v50  ;;  %v7753_v11 = vpop.f32.mrf.mxu0  ;;  %v4055_v19 = vadd.f32 %v10382_v41, %v4047_v5  ;;  %v7236_v35 = vcombine.low %v6187_v18, %v8865_v47  ;;  %v3573_v37 = vadd.f32 %v7714_v42, %v3300_v30 }
 0x264   : > { %v7754_v62 = vadd.f32 %v7753_v11, %v7752_v8  ;;  %8435 = vmatmul.mubr.bf16.gmra.mxu1 %v8862_v3  ;;  %v8292_v39 = vpop.f32.mrf.mxu1  ;;  %v3568_v3 = vadd.f32 %v7711_v60, %v3295_v9 }
 0x265   : > { %v4048_v33 = vadd.f32 %v4020_v20, %v3617_v58  ;;  %v7755_v22 = vpop.f32.mrf.mxu0  ;;  %v7717_v20 = vadd.f32 %v10728_v51, %v10724_v26  ;;  %v3638_v26 = vadd.f32 %v10697_v45, %v3573_v37 }
 0x266   : > { %v4025_v59 = vadd.f32 %v8288_v15, %v7754_v62  ;;  %v3292_v15 = vadd.f32 %v10567_v43, %v10596_v55  ;;  %v4032_v27 = vpop.f32.mrf.mxu1  ;;  %v3633_v5 = vadd.f32 %v10735_v23, %v3568_v3 }
 0x267   : > { %v4056_v49 = vadd.f32 %v10382_v41, %v4048_v33  ;;  %v7756_v53 = vpop.f32.mrf.mxu0  ;;  %v3576_v6 = vadd.f32 %v7717_v20, %v3303_v38 }
 0x268   : > { %v7757_v36 = vadd.f32 %v7756_v53, %v7755_v22  ;;  %v4049_v46 = vadd.f32 %v4025_v59, %v3622_v48  ;;  %v3565_v54 = vadd.f32 %v7708_v34, %v3292_v15  ;;  %v8293_v55 = vpop.f32.mrf.mxu1 }
 0x269   : > { %v7370_v13 = vpack.c.bf16 %v4056_v49, %v4055_v19  ;;  %v7758_v17 = vpop.f32.mrf.mxu0  ;;  %6496 = vmatmul.mubr.bf16.gmra.mxu0 %v10574_v52  ;;  %v3641_v57 = vadd.f32 %v10726_v25, %v3576_v6 }
 0x26a   : > { %v4028_v16 = vadd.f32 %v8289_v63, %v7757_v36  ;;  %6503 = vmatprep.mubr.bf16.mxu0 %v7237_v61  ;;  %v4057_v52 = vadd.f32 %v10382_v41, %v4049_v46  ;;  %v3630_v44 = vadd.f32 %v10713_v24, %v3565_v54  ;;  %v4035_v50 = vpop.f32.mrf.mxu1 }
 0x26b   : > { %7430 = vst [vmem:[%s10407_s16 + $0x20] sm:$0xff] %v7370_v13   ;;  %v7759_v2 = vpop.f32.mrf.mxu0 }
 0x26c   : > { %v4050_v14 = vadd.f32 %v4028_v16, %v3625_v21  ;;  %v7760_v43 = vadd.f32 %v7759_v2, %v7758_v17 }
 0x26d   : > { %v7761_v12 = vpop.f32.mrf.mxu0 }
 0x26e   : > { %v4058_v31 = vadd.f32 %v10382_v41, %v4050_v14  ;;  %v4033_v40 = vadd.f32 %v7760_v43, %v4032_v27 }
 0x26f   : > { %v7762_v63 = vpop.f32.mrf.mxu0 }
 0x270   : > { %v7375_v8 = vpack.c.bf16 %v4058_v31, %v4057_v52  ;;  %v7763_v1 = vadd.f32 %v7762_v63, %v7761_v12  ;;  %v4051_v7 = vadd.f32 %v4033_v40, %v3630_v44 }
 0x271   : > { %v7764_v58 = vpop.f32.mrf.mxu0  ;;  %6504 = vmatmul.mubr.bf16.gmra.mxu0 %v7236_v35 }
 0x272   : > { %7431 = vst [vmem:[%s10407_s16 + $0x28] sm:$0xff] %v7375_v8   ;;  %v4036_v28 = vadd.f32 %v7763_v1, %v4035_v50  ;;  %v4059_v10 = vadd.f32 %v10382_v41, %v4051_v7 }
 0x273   : > { %v7765_v24 = vpop.f32.mrf.mxu0 }
 0x274   : > { %v4052_v11 = vadd.f32 %v4036_v28, %v3633_v5  ;;  %v7766_v18 = vadd.f32 %v7765_v24, %v7764_v58 }
 0x275   : > { %v7767_v29 = vpop.f32.mrf.mxu0 }
 0x276   : > { %v4060_v0 = vadd.f32 %v10382_v41, %v4052_v11  ;;  %v4041_v23 = vadd.f32 %v8292_v39, %v7766_v18 }
 0x277   : > { %v7768_v62 = vpop.f32.mrf.mxu0 }
 0x278   : > { %v7380_v51 = vpack.c.bf16 %v4060_v0, %v4059_v10  ;;  %v7769_v33 = vadd.f32 %v7768_v62, %v7767_v29  ;;  %v4053_v4 = vadd.f32 %v4041_v23, %v3638_v26 }
 0x279   : > { %v7798_v22 = vpop.f32.mrf.mxu0 }
 0x27a   : > { %7432 = vst [vmem:[%s10407_s16 + $0x30] sm:$0xff] %v7380_v51   ;;  %v4044_v59 = vadd.f32 %v8293_v55, %v7769_v33  ;;  %v4061_v53 = vadd.f32 %v10382_v41, %v4053_v4 }
 0x27b   : > { %v7799_v47 = vpop.f32.mrf.mxu0 }
 0x27c   : > { %v4054_v61 = vadd.f32 %v4044_v59, %v3641_v57  ;;  %v7800_v19 = vadd.f32 %v7799_v47, %v7798_v22  ;;  %v10792_v45 = vpop.f32.mrf.mxu1 }
 0x27d   : > { %v7801_v49 = vpop.f32.mrf.mxu0 }
 0x27e   : > { %v4062_v39 = vadd.f32 %v10382_v41, %v4054_v61  ;;  %v4540_v15 = vpop.f32.mrf.mxu1 }
 0x27f   : > { %v7802_v56 = vpop.f32.mrf.mxu0  ;;  %v4541_v51 = vadd.f32 %v7800_v19, %v4540_v15 }
 0x280   : > { %v7385_v48 = vpack.c.bf16 %v4062_v39, %v4061_v53  ;;  %v10797_v17 = vpop.f32.mrf.mxu1  ;;  %v7803_v0 = vadd.f32 %v7802_v56, %v7801_v49 }
 0x281   : > { %v7804_v34 = vpop.f32.mrf.mxu0 }
 0x282   : > { %7433 = vst [vmem:[%s10407_s16 + $0x38] sm:$0xff] %v7385_v48   ;;  %v4543_v46 = vpop.f32.mrf.mxu1 }
 0x283   : > { %v7805_v36 = vpop.f32.mrf.mxu0  ;;  %v4544_v59 = vadd.f32 %v7803_v0, %v4543_v46 }
 0x284   : > { %v10795_v25 = vadd.f32 %v7805_v36, %v7804_v34  ;;  %v10805_v9 = vpop.f32.mrf.mxu1 }
 0x285   : > { %v7807_v13 = vpop.f32.mrf.mxu0 }
 0x286   : > { %v10807_v43 = vpop.f32.mrf.mxu1  ;;  %v4549_v19 = vadd.f32 %v10792_v45, %v10795_v25 }
 0x287   : > { %v7808_v27 = vpop.f32.mrf.mxu0 }
 0x288   : > { %v10815_v3 = vpop.f32.mrf.mxu1  ;;  %v7809_v36 = vadd.f32 %v7808_v27, %v7807_v13 }
 0x289   : > { %v7810_v21 = vpop.f32.mrf.mxu0 }
 0x28a   : > { %v10817_v40 = vpop.f32.mrf.mxu1 }
 0x28b   : > { %v7811_v60 = vpop.f32.mrf.mxu0 }
 0x28c   : > { %v10799_v16 = vadd.f32 %v7811_v60, %v7810_v21 }
 0x28d   : > { %v10801_v41 = vpop.f32.mrf.mxu0 }
 0x28f   : > { %v10803_v2 = vpop.f32.mrf.mxu0 }
 0x291   : > { %v7816_v54 = vpop.f32.mrf.mxu0 }
 0x293   : > { %v7817_v14 = vpop.f32.mrf.mxu0 }
 0x294   : > { %v10809_v55 = vadd.f32 %v7817_v14, %v7816_v54 }
 0x295   : > { %v10811_v12 = vpop.f32.mrf.mxu0 }
 0x297   : > { %v10813_v35 = vpop.f32.mrf.mxu0 }
 0x299   : > { %v7850_v52 = vpop.f32.mrf.mxu0 }
 0x29b   : > { %v7851_v31 = vpop.f32.mrf.mxu0 }
 0x29c   : > { %v8336_v63 = vpop.f32.mrf.mxu1  ;;  %v7852_v23 = vadd.f32 %v7851_v31, %v7850_v52 }
 0x29d   : > { %v7853_v32 = vpop.f32.mrf.mxu0 }
 0x29e   : > { %v4878_v8 = vpop.f32.mrf.mxu1  ;;  %v4814_v47 = vadd.f32 %v7852_v23, %v4541_v51 }
 0x29f   : > { %v7854_v44 = vpop.f32.mrf.mxu0 }
 0x2a0   : > { %v10819_v50 = vpop.f32.mrf.mxu1  ;;  %v7855_v33 = vadd.f32 %v7854_v44, %v7853_v32  ;;  %v4879_v56 = vadd.f32 %v4878_v8, %v4814_v47  ;;  %v4552_v44 = vadd.f32 %v10797_v17, %v7809_v36  ;;  %v10843_v8 = vld [vmem:[%s10958_s4] ss:$0 sm:$0xff]  ;;  %v7815_v17 = vadd.f32 %v10803_v2, %v10801_v41 }
 0x2a1   : > { %v7856_v42 = vpop.f32.mrf.mxu0 }
 0x2a2   : > { %v4881_v20 = vpop.f32.mrf.mxu1  ;;  %v4817_v39 = vadd.f32 %v7855_v33, %v4544_v59  ;;  %v4557_v33 = vadd.f32 %v10799_v16, %v10807_v43 }
 0x2a3   : > { %v7857_v1 = vpop.f32.mrf.mxu0 }
 0x2a4   : > { %v10821_v24 = vpop.f32.mrf.mxu1  ;;  %v7858_v21 = vadd.f32 %v7857_v1, %v7856_v42  ;;  %v4882_v52 = vadd.f32 %v4881_v20, %v4817_v39 }
 0x2a5   : > { %v7859_v30 = vpop.f32.mrf.mxu0 }
 0x2a6   : > { %v10825_v11 = vpop.f32.mrf.mxu1  ;;  %v4822_v0 = vadd.f32 %v7858_v21, %v4549_v19 }
 0x2a7   : > { %v7860_v58 = vpop.f32.mrf.mxu0 }
 0x2a8   : > { %v10831_v6 = vpop.f32.mrf.mxu1  ;;  %v7861_v15 = vadd.f32 %v7860_v58, %v7859_v30  ;;  %v4887_v58 = vadd.f32 %v8336_v63, %v4822_v0 }
 0x2a9   : > { %v7862_v5 = vpop.f32.mrf.mxu0 }
 0x2aa   : > { %v10835_v26 = vpop.f32.mrf.mxu1  ;;  %v4825_v42 = vadd.f32 %v7861_v15, %v4552_v44 }
 0x2ab   : > { %v7863_v7 = vpop.f32.mrf.mxu0 }
 0x2ac   : > { %v7864_v20 = vadd.f32 %v7863_v7, %v7862_v5  ;;  %v4890_v59 = vadd.f32 %v10819_v50, %v4825_v42  ;;  %v7821_v50 = vadd.f32 %v10813_v35, %v10811_v12 }
 0x2ad   : > { %v7865_v28 = vpop.f32.mrf.mxu0 }
 0x2af   : > { %v7866_v38 = vpop.f32.mrf.mxu0 }
 0x2b0   : > { %v7867_v47 = vadd.f32 %v7866_v38, %v7865_v28 }
 0x2b1   : > { %v10823_v37 = vpop.f32.mrf.mxu0 }
 0x2b3   : > { %v10827_v18 = vpop.f32.mrf.mxu0 }
 0x2b5   : > { %v10829_v29 = vpop.f32.mrf.mxu0 }
 0x2b7   : > { %v10833_v10 = vpop.f32.mrf.mxu0 }
 0x2b8   : > { %v7873_v15 = vadd.f32 %v10833_v10, %v10829_v29 }
 0x2b9   : > { %v7902_v62 = vpop.f32.mrf.mxu0 }
 0x2bb   : > { %v7903_v22 = vpop.f32.mrf.mxu0 }
 0x2bc   : > { %v8360_v57 = vpop.f32.mrf.mxu1  ;;  %v7904_v4 = vadd.f32 %v7903_v22, %v7902_v62 }
 0x2bd   : > { %v7905_v61 = vpop.f32.mrf.mxu0 }
 0x2be   : > { %v5281_v53 = vpop.f32.mrf.mxu1 }
 0x2bf   : > { %v5282_v48 = vadd.f32 %v7904_v4, %v5281_v53  ;;  %v7906_v34 = vpop.f32.mrf.mxu0 }
 0x2c0   : > { %v8361_v60 = vpop.f32.mrf.mxu1  ;;  %v7907_v49 = vadd.f32 %v7906_v34, %v7905_v61  ;;  %v4830_v34 = vadd.f32 %v7864_v20, %v4557_v33 }
 0x2c1   : > { %v7908_v54 = vpop.f32.mrf.mxu0  ;;  %v5312_v31 = vadd.f32 %v5282_v48, %v4879_v56  ;;  %v4560_v48 = vadd.f32 %v7815_v17, %v10817_v40  ;;  %v7870_v40 = vadd.f32 %v10827_v18, %v10823_v37 }
 0x2c2   : > { %v5284_v14 = vpop.f32.mrf.mxu1  ;;  %v4895_v38 = vadd.f32 %v10825_v11, %v4830_v34  ;;  %v4568_v11 = vadd.f32 %v10815_v3, %v7821_v50 }
 0x2c3   : > { %v5285_v46 = vadd.f32 %v7907_v49, %v5284_v14  ;;  %v7909_v32 = vpop.f32.mrf.mxu0  ;;  %v5320_v45 = vadd.f32 %v10843_v8, %v5312_v31  ;;  %v4833_v7 = vadd.f32 %v7867_v47, %v4560_v48  ;;  %v4565_v49 = vadd.f32 %v10805_v9, %v10809_v55 }
 0x2c4   : > { %v7910_v23 = vadd.f32 %v7909_v32, %v7908_v54  ;;  %v8364_v13 = vpop.f32.mrf.mxu1 }
 0x2c5   : > { %v5313_v62 = vadd.f32 %v5285_v46, %v4882_v52  ;;  %v7911_v27 = vpop.f32.mrf.mxu0  ;;  %v4898_v19 = vadd.f32 %v10835_v26, %v4833_v7  ;;  %v4838_v37 = vadd.f32 %v7870_v40, %v4565_v49  ;;  %v4841_v46 = vadd.f32 %v7873_v15, %v4568_v11 }
 0x2c6   : > { %v5290_v1 = vadd.f32 %v8360_v57, %v7910_v23  ;;  %v5297_v57 = vpop.f32.mrf.mxu1 }
 0x2c7   : > { %v5321_v25 = vadd.f32 %v10843_v8, %v5313_v62  ;;  %v7912_v30 = vpop.f32.mrf.mxu0  ;;  %v4903_v29 = vadd.f32 %v10821_v24, %v4838_v37  ;;  %v4906_v23 = vadd.f32 %v10831_v6, %v4841_v46 }
 0x2c8   : > { %v7913_v51 = vadd.f32 %v7912_v30, %v7911_v27  ;;  %v5314_v61 = vadd.f32 %v5290_v1, %v4887_v58  ;;  %v8365_v63 = vpop.f32.mrf.mxu1 }
 0x2c9   : > { %v7390_v22 = vpack.c.bf16 %v5321_v25, %v5320_v45  ;;  %v7914_v4 = vpop.f32.mrf.mxu0 }
 0x2ca   : > { %v5293_v53 = vadd.f32 %v8361_v60, %v7913_v51  ;;  %v5322_v16 = vadd.f32 %v10843_v8, %v5314_v61  ;;  %v5300_v56 = vpop.f32.mrf.mxu1 }
 0x2cb   : > { %7434 = vst [vmem:[%s10407_s16 + $0x40] sm:$0xff] %v7390_v22   ;;  %v7915_v39 = vpop.f32.mrf.mxu0 }
 0x2cc   : > { %v5315_v41 = vadd.f32 %v5293_v53, %v4890_v59  ;;  %v7916_v2 = vadd.f32 %v7915_v39, %v7914_v4 }
 0x2cd   : > { %v7917_v5 = vpop.f32.mrf.mxu0 }
 0x2ce   : > { %v5323_v43 = vadd.f32 %v10843_v8, %v5315_v41  ;;  %v5298_v36 = vadd.f32 %v7916_v2, %v5297_v57 }
 0x2cf   : > { %v7918_v28 = vpop.f32.mrf.mxu0 }
 0x2d0   : > { %v7395_v21 = vpack.c.bf16 %v5323_v43, %v5322_v16  ;;  %v7919_v60 = vadd.f32 %v7918_v28, %v7917_v5  ;;  %v5316_v12 = vadd.f32 %v5298_v36, %v4895_v38 }
 0x2d1   : > { %v7920_v54 = vpop.f32.mrf.mxu0 }
 0x2d2   : > { %7435 = vst [vmem:[%s10407_s16 + $0x48] sm:$0xff] %v7395_v21   ;;  %v5301_v35 = vadd.f32 %v7919_v60, %v5300_v56  ;;  %v5324_v9 = vadd.f32 %v10843_v8, %v5316_v12 }
 0x2d3   : > { %v7921_v14 = vpop.f32.mrf.mxu0 }
 0x2d4   : > { %v5317_v18 = vadd.f32 %v5301_v35, %v4898_v19  ;;  %v7922_v52 = vadd.f32 %v7921_v14, %v7920_v54 }
 0x2d5   : > { %v7923_v31 = vpop.f32.mrf.mxu0 }
 0x2d6   : > { %v5325_v55 = vadd.f32 %v10843_v8, %v5317_v18  ;;  %v5306_v26 = vadd.f32 %v8364_v13, %v7922_v52 }
 0x2d7   : > { %v7924_v32 = vpop.f32.mrf.mxu0 }
 0x2d8   : > { %v7400_v10 = vpack.c.bf16 %v5325_v55, %v5324_v9  ;;  %v7925_v44 = vadd.f32 %v7924_v32, %v7923_v31  ;;  %v5318_v3 = vadd.f32 %v5306_v26, %v4903_v29 }
 0x2d9   : > { %v7954_v0 = vpop.f32.mrf.mxu0 }
 0x2da   : > { %7436 = vst [vmem:[%s10407_s16 + $0x50] sm:$0xff] %v7400_v10   ;;  %v5309_v62 = vadd.f32 %v8365_v63, %v7925_v44  ;;  %v5326_v25 = vadd.f32 %v10843_v8, %v5318_v3 }
 0x2db   : > { %v7955_v27 = vpop.f32.mrf.mxu0 }
 0x2dc   : > { %v5319_v42 = vadd.f32 %v5309_v62, %v4906_v23  ;;  %v7956_v1 = vadd.f32 %v7955_v27, %v7954_v0  ;;  %v10875_v24 = vpop.f32.mrf.mxu1 }
 0x2dd   : > { %v7957_v45 = vpop.f32.mrf.mxu0 }
 0x2de   : > { %v5327_v13 = vadd.f32 %v10843_v8, %v5319_v42  ;;  %v5805_v51 = vpop.f32.mrf.mxu1 }
 0x2df   : > { %v7958_v30 = vpop.f32.mrf.mxu0  ;;  %v5806_v44 = vadd.f32 %v7956_v1, %v5805_v51 }
 0x2e0   : > { %v7405_v17 = vpack.c.bf16 %v5327_v13, %v5326_v25  ;;  %v10880_v57 = vpop.f32.mrf.mxu1  ;;  %v7959_v26 = vadd.f32 %v7958_v30, %v7957_v45 }
 0x2e1   : > { %v7960_v58 = vpop.f32.mrf.mxu0 }
 0x2e2   : > { %7437 = vst [vmem:[%s10407_s16 + $0x58] sm:$0xff] %v7405_v17   ;;  %v5808_v47 = vpop.f32.mrf.mxu1 }
 0x2e3   : > { %v7961_v20 = vpop.f32.mrf.mxu0  ;;  %v5809_v27 = vadd.f32 %v7959_v26, %v5808_v47 }
 0x2e4   : > { %v10878_v6 = vadd.f32 %v7961_v20, %v7960_v58  ;;  %v10888_v48 = vpop.f32.mrf.mxu1 }
 0x2e5   : > { %v7963_v33 = vpop.f32.mrf.mxu0 }
 0x2e6   : > { %v10890_v2 = vpop.f32.mrf.mxu1  ;;  %v5814_v1 = vadd.f32 %v10875_v24, %v10878_v6 }
 0x2e7   : > { %v7964_v22 = vpop.f32.mrf.mxu0 }
 0x2e8   : > { %v10898_v16 = vpop.f32.mrf.mxu1 }
 0x2e9   : > { %v7966_v4 = vpop.f32.mrf.mxu0 }
 0x2ea   : > { %v10900_v50 = vpop.f32.mrf.mxu1 }
 0x2eb   : > { %v7967_v59 = vpop.f32.mrf.mxu0 }
 0x2ec   : > { %v10882_v61 = vadd.f32 %v7967_v59, %v7966_v4  ;;  %v7965_v4 = vadd.f32 %v7964_v22, %v7963_v33 }
 0x2ed   : > { %v10884_v53 = vpop.f32.mrf.mxu0 }
 0x2ee   : > { %v5817_v26 = vadd.f32 %v10880_v57, %v7965_v4 }
 0x2ef   : > { %v10886_v39 = vpop.f32.mrf.mxu0 }
 0x2f1   : > { %v7972_v34 = vpop.f32.mrf.mxu0 }
 0x2f3   : > { %v7973_v41 = vpop.f32.mrf.mxu0 }
 0x2f4   : > { %v10892_v63 = vadd.f32 %v7973_v41, %v7972_v34 }
 0x2f5   : > { %v10894_v5 = vpop.f32.mrf.mxu0 }
 0x2f7   : > { %v10896_v7 = vpop.f32.mrf.mxu0 }
 0x2f9   : > { %v8006_v43 = vpop.f32.mrf.mxu0 }
 0x2fb   : > { %v8007_v36 = vpop.f32.mrf.mxu0 }
 0x2fc   : > { %v8408_v38 = vpop.f32.mrf.mxu1  ;;  %v8008_v32 = vadd.f32 %v8007_v36, %v8006_v43 }
 0x2fd   : > { %v8009_v28 = vpop.f32.mrf.mxu0 }
 0x2fe   : > { %v6143_v60 = vpop.f32.mrf.mxu1  ;;  %v6079_v42 = vadd.f32 %v8008_v32, %v5806_v44 }
 0x2ff   : > { %v8010_v40 = vpop.f32.mrf.mxu0 }
 0x300   : > { %v8409_v54 = vpop.f32.mrf.mxu1  ;;  %v8011_v0 = vadd.f32 %v8010_v40, %v8009_v28  ;;  %v6144_v30 = vadd.f32 %v6143_v60, %v6079_v42 }
 0x301   : > { %v8012_v21 = vpop.f32.mrf.mxu0 }
 0x302   : > { %v6146_v12 = vpop.f32.mrf.mxu1  ;;  %v6082_v17 = vadd.f32 %v8011_v0, %v5809_v27 }
 0x303   : > { %v8013_v49 = vpop.f32.mrf.mxu0 }
 0x304   : > { %v10902_v11 = vpop.f32.mrf.mxu1  ;;  %v8014_v59 = vadd.f32 %v8013_v49, %v8012_v21  ;;  %v6147_v36 = vadd.f32 %v6146_v12, %v6082_v17 }
 0x305   : > { %v8015_v56 = vpop.f32.mrf.mxu0 }
 0x306   : > { %v10906_v52 = vpop.f32.mrf.mxu1  ;;  %v6087_v32 = vadd.f32 %v8014_v59, %v5814_v1 }
 0x307   : > { %v8016_v19 = vpop.f32.mrf.mxu0 }
 0x308   : > { %v10912_v9 = vpop.f32.mrf.mxu1  ;;  %v8017_v51 = vadd.f32 %v8016_v19, %v8015_v56  ;;  %v7971_v19 = vadd.f32 %v10886_v39, %v10884_v53  ;;  %v6152_v12 = vadd.f32 %v8408_v38, %v6087_v32 }
 0x309   : > { %v8018_v15 = vpop.f32.mrf.mxu0 }
 0x30a   : > { %v10916_v10 = vpop.f32.mrf.mxu1  ;;  %v6090_v21 = vadd.f32 %v8017_v51, %v5817_v26 }
 0x30b   : > { %v8019_v35 = vpop.f32.mrf.mxu0 }
 0x30c   : > { %v8020_v0 = vadd.f32 %v8019_v35, %v8018_v15  ;;  %v6155_v42 = vadd.f32 %v8409_v54, %v6090_v21  ;;  %v7977_v54 = vadd.f32 %v10896_v7, %v10894_v5 }
 0x30d   : > { %v8021_v14 = vpop.f32.mrf.mxu0 }
 0x30f   : > { %v8022_v37 = vpop.f32.mrf.mxu0 }
 0x311   : > { %v10904_v18 = vpop.f32.mrf.mxu0 }
 0x313   : > { %v10908_v31 = vpop.f32.mrf.mxu0 }
 0x315   : > { %v10910_v46 = vpop.f32.mrf.mxu0 }
 0x317   : > { %v10914_v55 = vpop.f32.mrf.mxu0 }
 0x318   : > { %v8029_v1 = vadd.f32 %v10914_v55, %v10910_v46 }
 0x319   : > { %v8058_v29 = vpop.f32.mrf.mxu0 }
 0x31b   : > { %v8059_v23 = vpop.f32.mrf.mxu0 }
 0x31c   : > { %v8432_v3 = vpop.f32.mrf.mxu1  ;;  %v8060_v62 = vadd.f32 %v8059_v23, %v8058_v29  ;;  %v5822_v23 = vadd.f32 %v10882_v61, %v10890_v2 }
 0x31d   : > { %v8061_v25 = vpop.f32.mrf.mxu0 }
 0x31e   : > { %v6546_v13 = vpop.f32.mrf.mxu1  ;;  %v6095_v4 = vadd.f32 %v8020_v0, %v5822_v23 }
 0x31f   : > { %v6547_v58 = vadd.f32 %v8060_v62, %v6546_v13  ;;  %v8062_v20 = vpop.f32.mrf.mxu0 }
 0x320   : > { %v8433_v34 = vpop.f32.mrf.mxu1  ;;  %v8063_v45 = vadd.f32 %v8062_v20, %v8061_v25  ;;  %v5825_v20 = vadd.f32 %v7971_v19, %v10900_v50 }
 0x321   : > { %v8064_v41 = vpop.f32.mrf.mxu0  ;;  %v6577_v28 = vadd.f32 %v6547_v58, %v6144_v30  ;;  %v5830_v30 = vadd.f32 %v10888_v48, %v10892_v63 }
 0x322   : > { %v6549_v43 = vpop.f32.mrf.mxu1 }
 0x323   : > { %v6550_v47 = vadd.f32 %v8063_v45, %v6549_v43  ;;  %v8065_v40 = vpop.f32.mrf.mxu0  ;;  %v6585_v60 = vadd.f32 %v10843_v8, %v6577_v28 }
 0x324   : > { %v8066_v29 = vadd.f32 %v8065_v40, %v8064_v41  ;;  %v8436_v44 = vpop.f32.mrf.mxu1 }
 0x325   : > { %v6578_v33 = vadd.f32 %v6550_v47, %v6147_v36  ;;  %v8067_v22 = vpop.f32.mrf.mxu0 }
 0x326   : > { %v6555_v49 = vadd.f32 %v8432_v3, %v8066_v29  ;;  %v6562_v56 = vpop.f32.mrf.mxu1  ;;  %v8023_v3 = vadd.f32 %v8022_v37, %v8021_v14  ;;  %v8026_v37 = vadd.f32 %v10908_v31, %v10904_v18  ;;  %v5833_v18 = vadd.f32 %v10898_v16, %v7977_v54 }
 0x327   : > { %v6586_v24 = vadd.f32 %v10843_v8, %v6578_v33  ;;  %v8068_v6 = vpop.f32.mrf.mxu0 }
 0x328   : > { %v8069_v57 = vadd.f32 %v8068_v6, %v8067_v22  ;;  %v6579_v25 = vadd.f32 %v6555_v49, %v6152_v12  ;;  %v8437_v58 = vpop.f32.mrf.mxu1  ;;  %v6098_v38 = vadd.f32 %v8023_v3, %v5825_v20  ;;  %v6103_v31 = vadd.f32 %v8026_v37, %v5830_v30 }
 0x329   : > { %v7410_v62 = vpack.c.bf16 %v6586_v24, %v6585_v60  ;;  %v8070_v27 = vpop.f32.mrf.mxu0  ;;  %v6106_v47 = vadd.f32 %v8029_v1, %v5833_v18 }
 0x32a   : > { %v6558_v13 = vadd.f32 %v8433_v34, %v8069_v57  ;;  %v6587_v15 = vadd.f32 %v10843_v8, %v6579_v25  ;;  %v6565_v14 = vpop.f32.mrf.mxu1  ;;  %v6160_v34 = vadd.f32 %v10906_v52, %v6095_v4  ;;  %v6163_v5 = vadd.f32 %v10916_v10, %v6098_v38 }
 0x32b   : > { %7438 = vst [vmem:[%s10407_s16 + $0x60] sm:$0xff] %v7410_v62   ;;  %v8071_v17 = vpop.f32.mrf.mxu0  ;;  %v6168_v40 = vadd.f32 %v10902_v11, %v6103_v31  ;;  %v6171_v32 = vadd.f32 %v10912_v9, %v6106_v47 }
 0x32c   : > { %v6580_v59 = vadd.f32 %v6558_v13, %v6155_v42  ;;  %v8072_v53 = vadd.f32 %v8071_v17, %v8070_v27 }
 0x32d   : > { %v8073_v39 = vpop.f32.mrf.mxu0 }
 0x32e   : > { %v6588_v61 = vadd.f32 %v10843_v8, %v6580_v59  ;;  %v6563_v2 = vadd.f32 %v8072_v53, %v6562_v56 }
 0x32f   : > { %v8074_v35 = vpop.f32.mrf.mxu0 }
 0x330   : > { %v7415_v50 = vpack.c.bf16 %v6588_v61, %v6587_v15  ;;  %v8075_v45 = vadd.f32 %v8074_v35, %v8073_v39  ;;  %v6581_v51 = vadd.f32 %v6563_v2, %v6160_v34 }
 0x331   : > { %v8076_v41 = vpop.f32.mrf.mxu0 }
 0x332   : > { %7439 = vst [vmem:[%s10407_s16 + $0x68] sm:$0xff] %v7415_v50   ;;  %v6566_v7 = vadd.f32 %v8075_v45, %v6565_v14  ;;  %v6589_v48 = vadd.f32 %v10843_v8, %v6581_v51 }
 0x333   : > { %v8077_v43 = vpop.f32.mrf.mxu0 }
 0x334   : > { %v6582_v36 = vadd.f32 %v6566_v7, %v6163_v5  ;;  %v8078_v52 = vadd.f32 %v8077_v43, %v8076_v41 }
 0x335   : > { %v8079_v28 = vpop.f32.mrf.mxu0 }
 0x336   : > { %v6590_v63 = vadd.f32 %v10843_v8, %v6582_v36  ;;  %v6571_v46 = vadd.f32 %v8436_v44, %v8078_v52 }
 0x337   : > { %v8080_v55 = vpop.f32.mrf.mxu0 }
 0x338   : > { %v7420_v10 = vpack.c.bf16 %v6590_v63, %v6589_v48  ;;  %v8081_v26 = vadd.f32 %v8080_v55, %v8079_v28  ;;  %v6583_v16 = vadd.f32 %v6571_v46, %v6168_v40 }
 0x33a   : > { %7440 = vst [vmem:[%s10407_s16 + $0x70] sm:$0xff] %v7420_v10   ;;  %v6574_v29 = vadd.f32 %v8437_v58, %v8081_v26  ;;  %v6591_v22 = vadd.f32 %v10843_v8, %v6583_v16 }
 0x33c   : > { %v6584_v33 = vadd.f32 %v6574_v29, %v6171_v32 }
 0x33e   : > { %v6592_v21 = vadd.f32 %v10843_v8, %v6584_v33 }
 0x340   : > { %v7425_v49 = vpack.c.bf16 %v6592_v21, %v6591_v22 }
 0x342   : > { %7441 = vst [vmem:[%s10407_s16 + $0x78] sm:$0xff] %v7425_v49  }
 0x343 PF: > { %s15_s18 = sadd.s32 1, %s8873_s18  }
 0x344   : > { %p12_p4 = scmp.ge.s32.totalorder %s15_s18, 4  }
 0x346   :  { %14 = sbr.rel (!%p12_p4) target bundleno = 1 (0x1), region = 88 }

</bundles_post_ra>
